<compile_context>
chip_gen: v7x
topology: tpu7x:2x2x1
jax: 0.10.0
libtpu: 0.0.40
codegen_flags: <defaults>
</compile_context>

<pallas_src>
import functools

import jax
import jax.numpy as jnp
from jax import lax
from jax.experimental import pallas as pl
from jax.experimental.pallas import tpu as pltpu


def _round_up(x, m):
    return (x + m - 1) // m * m


# ------------------------------- Pallas kernel ------------------------------ #

def _bottleneck_kernel(xp_ref, mask_ref, w1_ref, b1_ref, w2_ref, b2_ref,
                       w3_ref, b3_ref, wds_ref, bds_ref, o_ref, h1_scr,
                       *, Wp, Mout):
    """Fused Bottleneck for one image (one grid step = one batch element).

    xp_ref  : (1, M2, Cp)   f32  spatially zero-padded + channel-padded image, flattened
                                 over the padded (Hp x Wp) grid (rows) x channels (lanes).
    mask_ref: (M2, 1)       f32  1.0 at interior (non-pad) pixels, 0.0 on the pad ring.
    w*_ref  : bf16 matmul weights with the BN scale folded into the output columns.
    b*_ref  : (1, Cout)     f32  folded BN shift.
    o_ref   : (1, Mout, Coutp) f32  output window (padded rows 1..H, all Wp columns).
    h1_scr  : (M2, Cp)      f32  VMEM scratch for the conv1 activations.
    """
    s0 = Wp + 1  # flat offset of padded pixel (row=1, col=1) == image pixel (0, 0)

    # conv1 (1x1) + BN1 + ReLU over the whole padded tile, then re-zero the pad ring
    # (relu(0 @ w + b) != 0) so the 3x3 conv below sees a proper zero border.
    x = xp_ref[0]                                        # (M2, Cp) f32
    xb = x.astype(jnp.bfloat16)
    h1 = jnp.dot(xb, w1_ref[...], preferred_element_type=jnp.float32)
    h1 = jnp.maximum(h1 + b1_ref[...], 0.0) * mask_ref[...]
    h1_scr[...] = h1

    # conv2 (3x3, pad=1, stride=1) + BN2 + ReLU: nine shifted-window matmuls.
    # A spatial shift (kh, kw) on the padded grid is a flat row offset of kh*Wp + kw.
    acc = None
    for kh in range(3):
        for kw in range(3):
            tap = h1_scr[pl.ds(kh * Wp + kw, Mout), :].astype(jnp.bfloat16)
            part = jnp.dot(tap, w2_ref[kh * 3 + kw],
                           preferred_element_type=jnp.float32)
            acc = part if acc is None else acc + part
    h2 = jnp.maximum(acc + b2_ref[...], 0.0).astype(jnp.bfloat16)

    # conv3 (1x1) + BN3, fused with the downsample identity (1x1 conv + BN_ds),
    # the residual add and the final ReLU.
    y = jnp.dot(h2, w3_ref[...], preferred_element_type=jnp.float32) + b3_ref[...]
    xw = xp_ref[0, pl.ds(s0, Mout), :].astype(jnp.bfloat16)
    ident = jnp.dot(xw, wds_ref[...], preferred_element_type=jnp.float32) + bds_ref[...]
    o_ref[0] = jnp.maximum(y + ident, 0.0).astype(o_ref.dtype)


# ------------------------------ parameter prep ------------------------------ #

def _prepare_params(params, C, E=4):
    """Fold BN scales into the conv weights, pad channels to multiples of 128, cast bf16."""
    Cp = _round_up(C, 128)
    Cop = _round_up(C * E, 128)

    def fold_1x1(w_oihw, scale, cin_p, cout_p):
        cout, cin = w_oihw.shape[0], w_oihw.shape[1]
        w2d = (w_oihw[:, :, 0, 0] * scale[:, None]).T          # (cin, cout), f32
        w2d = jnp.pad(w2d, ((0, cin_p - cin), (0, cout_p - cout)))
        return w2d.astype(jnp.bfloat16)

    def pad_bias(b, n):
        return jnp.pad(b, (0, n - b.shape[0])).reshape(1, n).astype(jnp.float32)

    # conv2: (cout, cin, 3, 3) -> (9, Cp, Cp), tap k = kh*3 + kw, layout [cin, cout]
    w2 = params["w2"] * params["bn2_s"][:, None, None, None]
    w2 = jnp.transpose(w2, (2, 3, 1, 0)).reshape(9, C, C)
    w2 = jnp.pad(w2, ((0, 0), (0, Cp - C), (0, Cp - C))).astype(jnp.bfloat16)

    return dict(
        Cp=Cp, Cop=Cop,
        w1=fold_1x1(params["w1"], params["bn1_s"], Cp, Cp),
        w2=w2,
        w3=fold_1x1(params["w3"], params["bn3_s"], Cp, Cop),
        wds=fold_1x1(params["wds"], params["bnds_s"], Cp, Cop),
        b1=pad_bias(params["bn1_b"], Cp),
        b2=pad_bias(params["bn2_b"], Cp),
        b3=pad_bias(params["bn3_b"], Cop),
        bds=pad_bias(params["bnds_b"], Cop),
    )


# ------------------------------ forward wrapper ------------------------------ #

def bottleneck_forward(x_nchw, params):
    N, C, H, W = x_nchw.shape
    E = 4
    pp = _prepare_params(params, C, E)
    Cp, Cop = pp["Cp"], pp["Cop"]

    # Padded spatial grid: 1 row top / 2 rows bottom, 1 col left, right-pad so that
    # Wp is a multiple of 8 and >= W + 2  (keeps every in-kernel reshape/slice tile-aligned
    # and lets every 3x3 tap be a pure flat-offset slice with no row wrap-around).
    Wp = _round_up(W + 2, 8)
    Hp = H + 3
    M2 = Hp * Wp          # padded rows per image
    Mout = H * Wp         # output window rows per image

    x = jnp.transpose(x_nchw, (0, 2, 3, 1)).astype(jnp.float32)            # NHWC
    xp = jnp.pad(x, ((0, 0), (1, 2), (1, Wp - W - 1), (0, Cp - C)))         # (N, Hp, Wp, Cp)
    xp = xp.reshape(N, M2, Cp)

    # interior mask over the padded grid
    rr = jnp.arange(Hp)
    cc = jnp.arange(Wp)
    m2d = ((rr >= 1) & (rr <= H))[:, None] & ((cc >= 1) & (cc <= W))[None, :]
    mask = m2d.astype(jnp.float32).reshape(M2, 1)

    kernel = functools.partial(_bottleneck_kernel, Wp=Wp, Mout=Mout)

    flops = 2 * N * (M2 * Cp * Cp + 9 * Mout * Cp * Cp + 2 * Mout * Cp * Cop)
    bytes_accessed = (N * M2 * Cp * 4 + M2 * 4
                      + (10 * Cp * Cp + 2 * Cp * Cop) * 2
                      + (2 * Cp + 2 * Cop) * 4
                      + N * Mout * Cop * 4)

    out = pl.pallas_call(
        kernel,
        grid=(N,),
        in_specs=[
            pl.BlockSpec((1, M2, Cp), lambda n: (n, 0, 0)),    # xp
            pl.BlockSpec((M2, 1), lambda n: (0, 0)),           # mask
            pl.BlockSpec((Cp, Cp), lambda n: (0, 0)),          # w1
            pl.BlockSpec((1, Cp), lambda n: (0, 0)),           # b1
            pl.BlockSpec((9, Cp, Cp), lambda n: (0, 0, 0)),    # w2
            pl.BlockSpec((1, Cp), lambda n: (0, 0)),           # b2
            pl.BlockSpec((Cp, Cop), lambda n: (0, 0)),         # w3
            pl.BlockSpec((1, Cop), lambda n: (0, 0)),          # b3
            pl.BlockSpec((Cp, Cop), lambda n: (0, 0)),         # wds
            pl.BlockSpec((1, Cop), lambda n: (0, 0)),          # bds
        ],
        out_specs=pl.BlockSpec((1, Mout, Cop), lambda n: (n, 0, 0)),
        out_shape=jax.ShapeDtypeStruct((N, Mout, Cop), jnp.float32),
        scratch_shapes=[pltpu.VMEM((M2, Cp), jnp.float32)],
        compiler_params=pltpu.CompilerParams(
            dimension_semantics=("parallel",),
            vmem_limit_bytes=32 * 1024 * 1024),
        cost_estimate=pl.CostEstimate(
            flops=int(flops), transcendentals=0, bytes_accessed=int(bytes_accessed)),
    )(xp, mask, pp["w1"], pp["b1"], pp["w2"], pp["b2"],
      pp["w3"], pp["b3"], pp["wds"], pp["bds"])

    # window index j == (h)*Wp + (w) for image pixel (h, w); drop pad columns / channels.
    out = out.reshape(N, H, Wp, Cop)[:, :, :W, :C * E]
    return jnp.transpose(out, (0, 3, 1, 2))                    # back to NCHW


# --------------------------- reference (pure JAX) --------------------------- #

def _ref_conv(x_nhwc, w_oihw, padding):
    w_hwio = jnp.transpose(w_oihw, (2, 3, 1, 0))
    return lax.conv_general_dilated(
        x_nhwc, w_hwio, window_strides=(1, 1), padding=padding,
        dimension_numbers=("NHWC", "HWIO", "NHWC"))


def bottleneck_reference(x_nchw, params):
    """Same math (folded BN, bf16 weights/activations, f32 accumulation) via XLA convs."""
    def fold(w, s):
        return (w * s[:, None, None, None]).astype(jnp.bfloat16).astype(jnp.float32)

    def b2f(a):
        return a.astype(jnp.bfloat16).astype(jnp.float32)

    w1 = fold(params["w1"], params["bn1_s"])
    w2 = fold(params["w2"], params["bn2_s"])
    w3 = fold(params["w3"], params["bn3_s"])
    wds = fold(params["wds"], params["bnds_s"])

    x = jnp.transpose(x_nchw, (0, 2, 3, 1)).astype(jnp.float32)
    xb = b2f(x)
    h1 = jnp.maximum(_ref_conv(xb, w1, "VALID") + params["bn1_b"], 0.0)
    h2 = jnp.maximum(_ref_conv(b2f(h1), w2, [(1, 1), (1, 1)]) + params["bn2_b"], 0.0)
    ident = _ref_conv(xb, wds, "VALID") + params["bnds_b"]
    out = jnp.maximum(_ref_conv(b2f(h2), w3, "VALID") + params["bn3_b"] + ident, 0.0)
    return jnp.transpose(out, (0, 3, 1, 2))


# ------------------------------ parameter init ------------------------------ #

def _folded_bn(key, ch, eps=1e-5):
    k1, k2, k3, k4 = jax.random.split(key, 4)
    gamma = jax.random.uniform(k1, (ch,), minval=0.5, maxval=1.5)
    beta = 0.1 * jax.random.normal(k2, (ch,))
    mean = 0.1 * jax.random.normal(k3, (ch,))
    var = jax.random.uniform(k4, (ch,), minval=0.5, maxval=1.5)
    scale = gamma / jnp.sqrt(var + eps)
    bias = beta - mean * scale
    return scale.astype(jnp.float32), bias.astype(jnp.float32)


def make_params(key, c_in, expansion=4):
    keys = jax.random.split(key, 8)
    c_out = c_in * expansion
    p = {}
    p["w1"] = jax.random.normal(keys[0], (c_in, c_in, 1, 1)) / jnp.sqrt(c_in)
    p["w2"] = jax.random.normal(keys[1], (c_in, c_in, 3, 3)) / jnp.sqrt(9 * c_in)
    p["w3"] = jax.random.normal(keys[2], (c_out, c_in, 1, 1)) / jnp.sqrt(c_in)
    p["wds"] = jax.random.normal(keys[3], (c_out, c_in, 1, 1)) / jnp.sqrt(c_in)
    p["bn1_s"], p["bn1_b"] = _folded_bn(keys[4], c_in)
    p["bn2_s"], p["bn2_b"] = _folded_bn(keys[5], c_in)
    p["bn3_s"], p["bn3_b"] = _folded_bn(keys[6], c_out)
    p["bnds_s"], p["bnds_b"] = _folded_bn(keys[7], c_out)
    return {k: jnp.asarray(v, jnp.float32) for k, v in p.items()}


# ----------------------------------- main ----------------------------------- #

if __name__ == "__main__":
    # TODO(synk): the original forward `nn.ReLU(self.block(x) + identity)` builds Modules and
    # `nn.Sequential(self.conv1(), ...)` calls convs with no args; we implement the intended
    # Bottleneck semantics (inference-mode BatchNorm, ReLU activation, 1x1-conv+BN downsample).
    key = jax.random.PRNGKey(0)
    kx, kp = jax.random.split(key)

    N, C, H, W = 2, 4, 16, 16
    x = jax.random.normal(kx, (N, C, H, W), dtype=jnp.float32)
    params = make_params(kp, C)

    out = jax.block_until_ready(jax.jit(bottleneck_forward)(x, params))
    ref = jax.block_until_ready(bottleneck_reference(x, params))

    assert out.shape == (N, C * 4, H, W), out.shape
    # bf16 weights/activations with f32 accumulation: allow for bf16-rounding tie flips.
    assert jnp.allclose(out, ref, atol=2e-2, rtol=2e-2), float(jnp.max(jnp.abs(out - ref)))
    print("KERNEL_OK")
</pallas_src>

<mosaic_0001>
module attributes {stable_mosaic.version = 11 : i64} {
  func.func @_bottleneck_kernel(%arg0: i32, %arg1: memref<1x456x128xf32, #tpu.memory_space<vmem>>, %arg2: memref<456x1xf32, #tpu.memory_space<vmem>>, %arg3: memref<128x128xbf16, #tpu.memory_space<vmem>>, %arg4: memref<1x128xf32, #tpu.memory_space<vmem>>, %arg5: memref<9x128x128xbf16, #tpu.memory_space<vmem>>, %arg6: memref<1x128xf32, #tpu.memory_space<vmem>>, %arg7: memref<128x128xbf16, #tpu.memory_space<vmem>>, %arg8: memref<1x128xf32, #tpu.memory_space<vmem>>, %arg9: memref<128x128xbf16, #tpu.memory_space<vmem>>, %arg10: memref<1x128xf32, #tpu.memory_space<vmem>>, %arg11: memref<1x384x128xf32, #tpu.memory_space<vmem>>, %arg12: memref<456x128xf32, #tpu.memory_space<vmem>>) attributes {dimension_semantics = [#tpu.dimension_semantics<parallel>], iteration_bounds = array<i64: 2>, scalar_prefetch = 0 : i64, scratch_operands = 1 : i64, tpu.core_type = #tpu.core_type<tc>, window_params = [{transform_indices = @transform_0, window_bounds = array<i64: 1, 456, 128>}, {pipeline_mode = #tpu.pipeline_mode<synchronous>, transform_indices = @transform_1, window_bounds = array<i64: 456, 1>}, {pipeline_mode = #tpu.pipeline_mode<synchronous>, transform_indices = @transform_2, window_bounds = array<i64: 128, 128>}, {pipeline_mode = #tpu.pipeline_mode<synchronous>, transform_indices = @transform_3, window_bounds = array<i64: 1, 128>}, {pipeline_mode = #tpu.pipeline_mode<synchronous>, transform_indices = @transform_4, window_bounds = array<i64: 9, 128, 128>}, {pipeline_mode = #tpu.pipeline_mode<synchronous>, transform_indices = @transform_5, window_bounds = array<i64: 1, 128>}, {pipeline_mode = #tpu.pipeline_mode<synchronous>, transform_indices = @transform_6, window_bounds = array<i64: 128, 128>}, {pipeline_mode = #tpu.pipeline_mode<synchronous>, transform_indices = @transform_7, window_bounds = array<i64: 1, 128>}, {pipeline_mode = #tpu.pipeline_mode<synchronous>, transform_indices = @transform_8, window_bounds = array<i64: 128, 128>}, {pipeline_mode = #tpu.pipeline_mode<synchronous>, transform_indices = @transform_9, window_bounds = array<i64: 1, 128>}, {transform_indices = @transform_10, window_bounds = array<i64: 1, 384, 128>}]} {
    %c0 = arith.constant 0 : index
    %c0_0 = arith.constant 0 : index
    %c0_1 = arith.constant 0 : index
    %0 = vector.load %arg1[%c0, %c0_0, %c0_1] : memref<1x456x128xf32, #tpu.memory_space<vmem>>, vector<1x456x128xf32>
    %1 = vector.shape_cast %0 : vector<1x456x128xf32> to vector<456x128xf32>
    %2 = arith.truncf %1 : vector<456x128xf32> to vector<456x128xbf16>
    %c0_2 = arith.constant 0 : index
    %c0_3 = arith.constant 0 : index
    %3 = vector.load %arg3[%c0_2, %c0_3] : memref<128x128xbf16, #tpu.memory_space<vmem>>, vector<128x128xbf16>
    %cst = arith.constant dense<0.000000e+00> : vector<456x128xf32>
    %4 = tpu.matmul %2, %3, %cst {dimension_numbers = #tpu.dot_dimension_numbers<[1], [0], [0], [1], [0, 0, 1, 1], [], []>} : vector<456x128xbf16>, vector<128x128xbf16>, vector<456x128xf32> -> vector<456x128xf32>
    %c0_4 = arith.constant 0 : index
    %c0_5 = arith.constant 0 : index
    %5 = vector.load %arg4[%c0_4, %c0_5] : memref<1x128xf32, #tpu.memory_space<vmem>>, vector<1x128xf32>
    %6 = vector.broadcast %5 : vector<1x128xf32> to vector<456x128xf32>
    %7 = arith.addf %4, %6 : vector<456x128xf32>
    %cst_6 = arith.constant 0.000000e+00 : f32
    %8 = vector.broadcast %cst_6 : f32 to vector<456x128xf32>
    %9 = arith.maximumf %7, %8 : vector<456x128xf32>
    %c0_7 = arith.constant 0 : index
    %c0_8 = arith.constant 0 : index
    %10 = vector.load %arg2[%c0_7, %c0_8] : memref<456x1xf32, #tpu.memory_space<vmem>>, vector<456x1xf32>
    %11 = vector.broadcast %10 : vector<456x1xf32> to vector<456x128xf32>
    %12 = arith.mulf %9, %11 : vector<456x128xf32>
    %c0_9 = arith.constant 0 : index
    %c0_10 = arith.constant 0 : index
    %13 = vector.load %arg12[%c0_9, %c0_10] : memref<456x128xf32, #tpu.memory_space<vmem>>, vector<456x128xf32>
    tpu.vector_store %arg12[%c0_9, %c0_10], %12 {strides = array<i32>} : memref<456x128xf32, #tpu.memory_space<vmem>>, vector<456x128xf32>,
    %c0_11 = arith.constant 0 : index
    %c0_12 = arith.constant 0 : index
    %14 = vector.load %arg12[%c0_11, %c0_12] : memref<456x128xf32, #tpu.memory_space<vmem>>, vector<384x128xf32>
    %15 = arith.truncf %14 : vector<384x128xf32> to vector<384x128xbf16>
    %c0_13 = arith.constant 0 : index
    %c0_14 = arith.constant 0 : index
    %c0_15 = arith.constant 0 : index
    %16 = vector.load %arg5[%c0_13, %c0_14, %c0_15] : memref<9x128x128xbf16, #tpu.memory_space<vmem>>, vector<1x128x128xbf16>
    %17 = vector.shape_cast %16 : vector<1x128x128xbf16> to vector<128x128xbf16>
    %cst_16 = arith.constant dense<0.000000e+00> : vector<384x128xf32>
    %18 = tpu.matmul %15, %17, %cst_16 {dimension_numbers = #tpu.dot_dimension_numbers<[1], [0], [0], [1], [0, 0, 1, 1], [], []>} : vector<384x128xbf16>, vector<128x128xbf16>, vector<384x128xf32> -> vector<384x128xf32>
    %c1 = arith.constant 1 : index
    %c0_17 = arith.constant 0 : index
    %19 = vector.load %arg12[%c1, %c0_17] : memref<456x128xf32, #tpu.memory_space<vmem>>, vector<384x128xf32>
    %20 = arith.truncf %19 : vector<384x128xf32> to vector<384x128xbf16>
    %c1_18 = arith.constant 1 : index
    %c0_19 = arith.constant 0 : index
    %c0_20 = arith.constant 0 : index
    %21 = vector.load %arg5[%c1_18, %c0_19, %c0_20] : memref<9x128x128xbf16, #tpu.memory_space<vmem>>, vector<1x128x128xbf16>
    %22 = vector.shape_cast %21 : vector<1x128x128xbf16> to vector<128x128xbf16>
    %cst_21 = arith.constant dense<0.000000e+00> : vector<384x128xf32>
    %23 = tpu.matmul %20, %22, %cst_21 {dimension_numbers = #tpu.dot_dimension_numbers<[1], [0], [0], [1], [0, 0, 1, 1], [], []>} : vector<384x128xbf16>, vector<128x128xbf16>, vector<384x128xf32> -> vector<384x128xf32>
    %24 = arith.addf %18, %23 : vector<384x128xf32>
    %c2 = arith.constant 2 : index
    %c0_22 = arith.constant 0 : index
    %25 = vector.load %arg12[%c2, %c0_22] : memref<456x128xf32, #tpu.memory_space<vmem>>, vector<384x128xf32>
    %26 = arith.truncf %25 : vector<384x128xf32> to vector<384x128xbf16>
    %c2_23 = arith.constant 2 : index
    %c0_24 = arith.constant 0 : index
    %c0_25 = arith.constant 0 : index
    %27 = vector.load %arg5[%c2_23, %c0_24, %c0_25] : memref<9x128x128xbf16, #tpu.memory_space<vmem>>, vector<1x128x128xbf16>
    %28 = vector.shape_cast %27 : vector<1x128x128xbf16> to vector<128x128xbf16>
    %cst_26 = arith.constant dense<0.000000e+00> : vector<384x128xf32>
    %29 = tpu.matmul %26, %28, %cst_26 {dimension_numbers = #tpu.dot_dimension_numbers<[1], [0], [0], [1], [0, 0, 1, 1], [], []>} : vector<384x128xbf16>, vector<128x128xbf16>, vector<384x128xf32> -> vector<384x128xf32>
    %30 = arith.addf %24, %29 : vector<384x128xf32>
    %c24 = arith.constant 24 : index
    %c0_27 = arith.constant 0 : index
    %31 = vector.load %arg12[%c24, %c0_27] : memref<456x128xf32, #tpu.memory_space<vmem>>, vector<384x128xf32>
    %32 = arith.truncf %31 : vector<384x128xf32> to vector<384x128xbf16>
    %c3 = arith.constant 3 : index
    %c0_28 = arith.constant 0 : index
    %c0_29 = arith.constant 0 : index
    %33 = vector.load %arg5[%c3, %c0_28, %c0_29] : memref<9x128x128xbf16, #tpu.memory_space<vmem>>, vector<1x128x128xbf16>
    %34 = vector.shape_cast %33 : vector<1x128x128xbf16> to vector<128x128xbf16>
    %cst_30 = arith.constant dense<0.000000e+00> : vector<384x128xf32>
    %35 = tpu.matmul %32, %34, %cst_30 {dimension_numbers = #tpu.dot_dimension_numbers<[1], [0], [0], [1], [0, 0, 1, 1], [], []>} : vector<384x128xbf16>, vector<128x128xbf16>, vector<384x128xf32> -> vector<384x128xf32>
    %36 = arith.addf %30, %35 : vector<384x128xf32>
    %c25 = arith.constant 25 : index
    %c0_31 = arith.constant 0 : index
    %37 = vector.load %arg12[%c25, %c0_31] : memref<456x128xf32, #tpu.memory_space<vmem>>, vector<384x128xf32>
    %38 = arith.truncf %37 : vector<384x128xf32> to vector<384x128xbf16>
    %c4 = arith.constant 4 : index
    %c0_32 = arith.constant 0 : index
    %c0_33 = arith.constant 0 : index
    %39 = vector.load %arg5[%c4, %c0_32, %c0_33] : memref<9x128x128xbf16, #tpu.memory_space<vmem>>, vector<1x128x128xbf16>
    %40 = vector.shape_cast %39 : vector<1x128x128xbf16> to vector<128x128xbf16>
    %cst_34 = arith.constant dense<0.000000e+00> : vector<384x128xf32>
    %41 = tpu.matmul %38, %40, %cst_34 {dimension_numbers = #tpu.dot_dimension_numbers<[1], [0], [0], [1], [0, 0, 1, 1], [], []>} : vector<384x128xbf16>, vector<128x128xbf16>, vector<384x128xf32> -> vector<384x128xf32>
    %42 = arith.addf %36, %41 : vector<384x128xf32>
    %c26 = arith.constant 26 : index
    %c0_35 = arith.constant 0 : index
    %43 = vector.load %arg12[%c26, %c0_35] : memref<456x128xf32, #tpu.memory_space<vmem>>, vector<384x128xf32>
    %44 = arith.truncf %43 : vector<384x128xf32> to vector<384x128xbf16>
    %c5 = arith.constant 5 : index
    %c0_36 = arith.constant 0 : index
    %c0_37 = arith.constant 0 : index
    %45 = vector.load %arg5[%c5, %c0_36, %c0_37] : memref<9x128x128xbf16, #tpu.memory_space<vmem>>, vector<1x128x128xbf16>
    %46 = vector.shape_cast %45 : vector<1x128x128xbf16> to vector<128x128xbf16>
    %cst_38 = arith.constant dense<0.000000e+00> : vector<384x128xf32>
    %47 = tpu.matmul %44, %46, %cst_38 {dimension_numbers = #tpu.dot_dimension_numbers<[1], [0], [0], [1], [0, 0, 1, 1], [], []>} : vector<384x128xbf16>, vector<128x128xbf16>, vector<384x128xf32> -> vector<384x128xf32>
    %48 = arith.addf %42, %47 : vector<384x128xf32>
    %c48 = arith.constant 48 : index
    %c0_39 = arith.constant 0 : index
    %49 = vector.load %arg12[%c48, %c0_39] : memref<456x128xf32, #tpu.memory_space<vmem>>, vector<384x128xf32>
    %50 = arith.truncf %49 : vector<384x128xf32> to vector<384x128xbf16>
    %c6 = arith.constant 6 : index
    %c0_40 = arith.constant 0 : index
    %c0_41 = arith.constant 0 : index
    %51 = vector.load %arg5[%c6, %c0_40, %c0_41] : memref<9x128x128xbf16, #tpu.memory_space<vmem>>, vector<1x128x128xbf16>
    %52 = vector.shape_cast %51 : vector<1x128x128xbf16> to vector<128x128xbf16>
    %cst_42 = arith.constant dense<0.000000e+00> : vector<384x128xf32>
    %53 = tpu.matmul %50, %52, %cst_42 {dimension_numbers = #tpu.dot_dimension_numbers<[1], [0], [0], [1], [0, 0, 1, 1], [], []>} : vector<384x128xbf16>, vector<128x128xbf16>, vector<384x128xf32> -> vector<384x128xf32>
    %54 = arith.addf %48, %53 : vector<384x128xf32>
    %c49 = arith.constant 49 : index
    %c0_43 = arith.constant 0 : index
    %55 = vector.load %arg12[%c49, %c0_43] : memref<456x128xf32, #tpu.memory_space<vmem>>, vector<384x128xf32>
    %56 = arith.truncf %55 : vector<384x128xf32> to vector<384x128xbf16>
    %c7 = arith.constant 7 : index
    %c0_44 = arith.constant 0 : index
    %c0_45 = arith.constant 0 : index
    %57 = vector.load %arg5[%c7, %c0_44, %c0_45] : memref<9x128x128xbf16, #tpu.memory_space<vmem>>, vector<1x128x128xbf16>
    %58 = vector.shape_cast %57 : vector<1x128x128xbf16> to vector<128x128xbf16>
    %cst_46 = arith.constant dense<0.000000e+00> : vector<384x128xf32>
    %59 = tpu.matmul %56, %58, %cst_46 {dimension_numbers = #tpu.dot_dimension_numbers<[1], [0], [0], [1], [0, 0, 1, 1], [], []>} : vector<384x128xbf16>, vector<128x128xbf16>, vector<384x128xf32> -> vector<384x128xf32>
    %60 = arith.addf %54, %59 : vector<384x128xf32>
    %c50 = arith.constant 50 : index
    %c0_47 = arith.constant 0 : index
    %61 = vector.load %arg12[%c50, %c0_47] : memref<456x128xf32, #tpu.memory_space<vmem>>, vector<384x128xf32>
    %62 = arith.truncf %61 : vector<384x128xf32> to vector<384x128xbf16>
    %c8 = arith.constant 8 : index
    %c0_48 = arith.constant 0 : index
    %c0_49 = arith.constant 0 : index
    %63 = vector.load %arg5[%c8, %c0_48, %c0_49] : memref<9x128x128xbf16, #tpu.memory_space<vmem>>, vector<1x128x128xbf16>
    %64 = vector.shape_cast %63 : vector<1x128x128xbf16> to vector<128x128xbf16>
    %cst_50 = arith.constant dense<0.000000e+00> : vector<384x128xf32>
    %65 = tpu.matmul %62, %64, %cst_50 {dimension_numbers = #tpu.dot_dimension_numbers<[1], [0], [0], [1], [0, 0, 1, 1], [], []>} : vector<384x128xbf16>, vector<128x128xbf16>, vector<384x128xf32> -> vector<384x128xf32>
    %66 = arith.addf %60, %65 : vector<384x128xf32>
    %c0_51 = arith.constant 0 : index
    %c0_52 = arith.constant 0 : index
    %67 = vector.load %arg6[%c0_51, %c0_52] : memref<1x128xf32, #tpu.memory_space<vmem>>, vector<1x128xf32>
    %68 = vector.broadcast %67 : vector<1x128xf32> to vector<384x128xf32>
    %69 = arith.addf %66, %68 : vector<384x128xf32>
    %cst_53 = arith.constant 0.000000e+00 : f32
    %70 = vector.broadcast %cst_53 : f32 to vector<384x128xf32>
    %71 = arith.maximumf %69, %70 : vector<384x128xf32>
    %72 = arith.truncf %71 : vector<384x128xf32> to vector<384x128xbf16>
    %c0_54 = arith.constant 0 : index
    %c0_55 = arith.constant 0 : index
    %73 = vector.load %arg7[%c0_54, %c0_55] : memref<128x128xbf16, #tpu.memory_space<vmem>>, vector<128x128xbf16>
    %cst_56 = arith.constant dense<0.000000e+00> : vector<384x128xf32>
    %74 = tpu.matmul %72, %73, %cst_56 {dimension_numbers = #tpu.dot_dimension_numbers<[1], [0], [0], [1], [0, 0, 1, 1], [], []>} : vector<384x128xbf16>, vector<128x128xbf16>, vector<384x128xf32> -> vector<384x128xf32>
    %c0_57 = arith.constant 0 : index
    %c0_58 = arith.constant 0 : index
    %75 = vector.load %arg8[%c0_57, %c0_58] : memref<1x128xf32, #tpu.memory_space<vmem>>, vector<1x128xf32>
    %76 = vector.broadcast %75 : vector<1x128xf32> to vector<384x128xf32>
    %77 = arith.addf %74, %76 : vector<384x128xf32>
    %c0_59 = arith.constant 0 : index
    %c25_60 = arith.constant 25 : index
    %c0_61 = arith.constant 0 : index
    %78 = vector.load %arg1[%c0_59, %c25_60, %c0_61] : memref<1x456x128xf32, #tpu.memory_space<vmem>>, vector<1x384x128xf32>
    %79 = vector.shape_cast %78 : vector<1x384x128xf32> to vector<384x128xf32>
    %80 = arith.truncf %79 : vector<384x128xf32> to vector<384x128xbf16>
    %c0_62 = arith.constant 0 : index
    %c0_63 = arith.constant 0 : index
    %81 = vector.load %arg9[%c0_62, %c0_63] : memref<128x128xbf16, #tpu.memory_space<vmem>>, vector<128x128xbf16>
    %cst_64 = arith.constant dense<0.000000e+00> : vector<384x128xf32>
    %82 = tpu.matmul %80, %81, %cst_64 {dimension_numbers = #tpu.dot_dimension_numbers<[1], [0], [0], [1], [0, 0, 1, 1], [], []>} : vector<384x128xbf16>, vector<128x128xbf16>, vector<384x128xf32> -> vector<384x128xf32>
    %c0_65 = arith.constant 0 : index
    %c0_66 = arith.constant 0 : index
    %83 = vector.load %arg10[%c0_65, %c0_66] : memref<1x128xf32, #tpu.memory_space<vmem>>, vector<1x128xf32>
    %84 = vector.broadcast %83 : vector<1x128xf32> to vector<384x128xf32>
    %85 = arith.addf %82, %84 : vector<384x128xf32>
    %86 = arith.addf %77, %85 : vector<384x128xf32>
    %cst_67 = arith.constant 0.000000e+00 : f32
    %87 = vector.broadcast %cst_67 : f32 to vector<384x128xf32>
    %88 = arith.maximumf %86, %87 : vector<384x128xf32>
    %c0_68 = arith.constant 0 : index
    %c0_69 = arith.constant 0 : index
    %c0_70 = arith.constant 0 : index
    %89 = vector.load %arg11[%c0_68, %c0_69, %c0_70] : memref<1x384x128xf32, #tpu.memory_space<vmem>>, vector<1x384x128xf32>
    %90 = vector.shape_cast %89 : vector<1x384x128xf32> to vector<384x128xf32>
    %91 = vector.shape_cast %88 : vector<384x128xf32> to vector<1x384x128xf32>
    tpu.vector_store %arg11[%c0_68, %c0_69, %c0_70], %91 {strides = array<i32>} : memref<1x384x128xf32, #tpu.memory_space<vmem>>, vector<1x384x128xf32>,
    return
  }
  func.func @transform_0(%arg0: i32) -> (i32, i32, i32) {
    %c0_i32 = arith.constant 0 : i32
    %c0_i32_0 = arith.constant 0 : i32
    %c0_i32_1 = arith.constant 0 : i32
    return %arg0, %c0_i32, %c0_i32_0 : i32, i32, i32
  }
  func.func @transform_1(%arg0: i32) -> (i32, i32) {
    %c0_i32 = arith.constant 0 : i32
    %c0_i32_0 = arith.constant 0 : i32
    %c0_i32_1 = arith.constant 0 : i32
    return %c0_i32, %c0_i32_0 : i32, i32
  }
  func.func @transform_2(%arg0: i32) -> (i32, i32) {
    %c0_i32 = arith.constant 0 : i32
    %c0_i32_0 = arith.constant 0 : i32
    %c0_i32_1 = arith.constant 0 : i32
    return %c0_i32, %c0_i32_0 : i32, i32
  }
  func.func @transform_3(%arg0: i32) -> (i32, i32) {
    %c0_i32 = arith.constant 0 : i32
    %c0_i32_0 = arith.constant 0 : i32
    %c0_i32_1 = arith.constant 0 : i32
    return %c0_i32, %c0_i32_0 : i32, i32
  }
  func.func @transform_4(%arg0: i32) -> (i32, i32, i32) {
    %c0_i32 = arith.constant 0 : i32
    %c0_i32_0 = arith.constant 0 : i32
    %c0_i32_1 = arith.constant 0 : i32
    %c0_i32_2 = arith.constant 0 : i32
    return %c0_i32, %c0_i32_0, %c0_i32_1 : i32, i32, i32
  }
  func.func @transform_5(%arg0: i32) -> (i32, i32) {
    %c0_i32 = arith.constant 0 : i32
    %c0_i32_0 = arith.constant 0 : i32
    %c0_i32_1 = arith.constant 0 : i32
    return %c0_i32, %c0_i32_0 : i32, i32
  }
  func.func @transform_6(%arg0: i32) -> (i32, i32) {
    %c0_i32 = arith.constant 0 : i32
    %c0_i32_0 = arith.constant 0 : i32
    %c0_i32_1 = arith.constant 0 : i32
    return %c0_i32, %c0_i32_0 : i32, i32
  }
  func.func @transform_7(%arg0: i32) -> (i32, i32) {
    %c0_i32 = arith.constant 0 : i32
    %c0_i32_0 = arith.constant 0 : i32
    %c0_i32_1 = arith.constant 0 : i32
    return %c0_i32, %c0_i32_0 : i32, i32
  }
  func.func @transform_8(%arg0: i32) -> (i32, i32) {
    %c0_i32 = arith.constant 0 : i32
    %c0_i32_0 = arith.constant 0 : i32
    %c0_i32_1 = arith.constant 0 : i32
    return %c0_i32, %c0_i32_0 : i32, i32
  }
  func.func @transform_9(%arg0: i32) -> (i32, i32) {
    %c0_i32 = arith.constant 0 : i32
    %c0_i32_0 = arith.constant 0 : i32
    %c0_i32_1 = arith.constant 0 : i32
    return %c0_i32, %c0_i32_0 : i32, i32
  }
  func.func @transform_10(%arg0: i32) -> (i32, i32, i32) {
    %c0_i32 = arith.constant 0 : i32
    %c0_i32_0 = arith.constant 0 : i32
    %c0_i32_1 = arith.constant 0 : i32
    return %arg0, %c0_i32, %c0_i32_0 : i32, i32, i32
  }
}

</mosaic_0001>

<bundles_post_ra>
// kernel: bottleneck_forward.1
= control target key start
LH: loop header
LB: loop body
LE: loop exit
PB: predicated region body
PF: predicated region fallthrough
CT: control target
= control target key end

     0   :  { %s8094_s13 = smov 0   ;;  %s9810_s0 = inlined_call_operand.vmem [shape: f32[2,456,128], index: 0, kind: input, shape index: {}]   ;;  %s9811_s1 = inlined_call_operand.vmem [shape: f32[456,1], index: 1, kind: input, shape index: {}]   ;;  %s9812_s2 = inlined_call_operand.vmem [shape: bf16[128,128], index: 2, kind: input, shape index: {}]   ;;  %s9813_s3 = inlined_call_operand.vmem [shape: f32[1,128], index: 3, kind: input, shape index: {}]   ;;  %s9814_s4 = inlined_call_operand.vmem [shape: bf16[9,128,128], index: 4, kind: input, shape index: {}]   ;;  %s9815_s5 = inlined_call_operand.vmem [shape: f32[1,128], index: 5, kind: input, shape index: {}]   ;;  %s9816_s6 = inlined_call_operand.vmem [shape: bf16[128,128], index: 6, kind: input, shape index: {}]   ;;  %s9817_s7 = inlined_call_operand.vmem [shape: f32[1,128], index: 7, kind: input, shape index: {}]   ;;  %s9818_s8 = inlined_call_operand.vmem [shape: bf16[128,128], index: 8, kind: input, shape index: {}]   ;;  %s9819_s9 = inlined_call_operand.vmem [shape: f32[1,128], index: 9, kind: input, shape index: {}]   ;;  %s9820_s10 = inlined_call_operand.vmem [shape: f32[2,384,128], index: 10, kind: output, shape index: {}]  }
   0x1 LB: > { %s5878_s14 = sadd.s32 4294967295, %s8034_s13   ;;  %p5882_p0 = scmp.ge.s32.totalorder %s8034_s13, 1  ;;  %s8034_s13 = sphi %s8094_s13, %s20_s13  }
   0x2   : > { %p312_p1 = scmp.lt.s32.totalorder %s8034_s13, 3 }
   0x4   : > { %p313_p2 = pnand %p5882_p0, %p312_p1 }
   0x6   : > { %316 = sbr.rel (%p313_p2) target bundleno = 1583 (0x62f), region = 60 }
   0xd   : > { %v7883_v0 = vld [vmem:[%s9812_s2] sm:$0xff]   ;;  %v8036_v1 = vmov 0.0   ;;  %v7884_v2 = vld [vmem:[%s9812_s2 + $0x8] sm:$0xff]   ;;  %vm8037_vm0 = vmmov 0   ;;  %v8038_v3 = vmov 0   ;;  %v7885_v4 = vld [vmem:[%s9812_s2 + $0x10] sm:$0xff]  }
   0xe   : > { %6504 = vmatprep.subr.bf16.mxu0 %v8036_v1  ;;  %6520 = vmatprep.mubr.msk.bf16.mxu0 %vm8037_vm0, %v8036_v1  ;;  %v839_v5 = vld [vmem:[%s9811_s1] sm:$0xff]  ;;  %v841_v6 = vld [vmem:[%s9811_s1 + $0x10] sm:$0xff]  ;;  %v7886_v7 = vld [vmem:[%s9812_s2 + $0x18] sm:$0xff]   ;;  %p350_p3 = scmp.lt.s32.totalorder %s5878_s14, 1 }
   0xf   : > { %6505 = vmatpush3.bf16.msra.mxu0 %v7883_v0  ;;  %7881 = vset.pattern.permute.xlu0 %v8038_v3  ;;  %v840_v8 = vld [vmem:[%s9811_s1 + $0x8] sm:$0xff]  ;;  %v7887_v9 = vld [vmem:[%s9812_s2 + $0x20] sm:$0xff]   ;;  %v842_v11 = vld [vmem:[%s9811_s1 + $0x18] sm:$0xff] }
  0x10   : > { %6506 = vmatprep.subr.bf16.mxu0 %v8036_v1  ;;  %7882 = vset.pattern.permute.xlu1 %v8038_v3  ;;  %s10187_s14 = smov (!%p350_p3, %s5878_s14), 1  ;;  %v843_v10 = vld [vmem:[%s9811_s1 + $0x20] sm:$0xff]  ;;  %v7888_v12 = vld [vmem:[%s9812_s2 + $0x28] sm:$0xff]   ;;  %v845_v13 = vld [vmem:[%s9811_s1 + $0x30] sm:$0xff] }
  0x11   : > { %898 = vperm.xlu0 %7881, %v839_v5   ;;  %908 = vperm.xlu1 %7882, %v841_v6   ;;  %s7868_s19 = smul.u32 456, %s10187_s14  ;;  %v844_v14 = vld [vmem:[%s9811_s1 + $0x28] sm:$0xff]  ;;  %v7889_v15 = vld [vmem:[%s9812_s2 + $0x30] sm:$0xff]   ;;  %v847_v16 = vld [vmem:[%s9811_s1 + $0x40] sm:$0xff] }
  0x12   : > { %v846_v17 = vld [vmem:[%s9811_s1 + $0x38] sm:$0xff]  ;;  %v849_v21 = vld [vmem:[%s9811_s1 + $0x50] sm:$0xff]  ;;  %v848_v22 = vld [vmem:[%s9811_s1 + $0x48] sm:$0xff]  ;;  %s7869_s27 = smul.u32 384, %s10187_s14 }
  0x13   : > { %6507 = vmatpush3.bf16.msra.mxu0 %v7884_v2  ;;  %s8162_s28 = scalar_lea.vmem %s9810_s0, %s7868_s19  ;;  %v7890_v18 = vld [vmem:[%s9812_s2 + $0x38] sm:$0xff]   ;;  %v851_v23 = vld [vmem:[%s9811_s1 + $0x60] sm:$0xff]  ;;  %v853_v28 = vld [vmem:[%s9811_s1 + $0x70] sm:$0xff] }
  0x14   : > { %6508 = vmatprep.subr.bf16.mxu0 %v8036_v1  ;;  %v361_v19 = vld [vmem:[%s8162_s28] sm:$0xff]  ;;  %v362_v20 = vld [vmem:[%s8162_s28 + $0x8] sm:$0xff]  ;;  %v850_v25 = vld [vmem:[%s9811_s1 + $0x58] sm:$0xff]  ;;  %s9712_s30 = scalar_lea.vmem %s9820_s10, %s7869_s27 }
  0x15   : > { %903 = vperm.xlu0 %7881, %v840_v8   ;;  %913 = vperm.xlu1 %7882, %v842_v11   ;;  %v418_v24 = vpack.c.bf16 %v362_v20, %v361_v19  ;;  %v363_v26 = vld [vmem:[%s8162_s28 + $0x10] sm:$0xff]  ;;  %v364_v27 = vld [vmem:[%s8162_s28 + $0x18] sm:$0xff]  ;;  %v852_v29 = vld [vmem:[%s9811_s1 + $0x68] sm:$0xff] }
  0x16   : > { %v855_v30 = vld [vmem:[%s9811_s1 + $0x80] sm:$0xff]  ;;  %v419_v31 = vpack.c.bf16 %v364_v27, %v363_v26  ;;  %v854_v32 = vld [vmem:[%s9811_s1 + $0x78] sm:$0xff]  ;;  %v366_v34 = vld [vmem:[%s8162_s28 + $0x28] sm:$0xff] }
  0x17   : > { %6509 = vmatpush3.bf16.msra.mxu0 %v7885_v4  ;;  %v365_v33 = vld [vmem:[%s8162_s28 + $0x20] sm:$0xff]  ;;  %v857_v35 = vld [vmem:[%s9811_s1 + $0x90] sm:$0xff]  ;;  %v856_v36 = vld [vmem:[%s9811_s1 + $0x88] sm:$0xff] }
  0x18   : > { %6510 = vmatprep.subr.bf16.mxu0 %v8036_v1  ;;  %v859_v37 = vld [vmem:[%s9811_s1 + $0xa0] sm:$0xff]  ;;  %v420_v38 = vpack.c.bf16 %v366_v34, %v365_v33  ;;  %v858_v39 = vld [vmem:[%s9811_s1 + $0x98] sm:$0xff]  ;;  %v367_v40 = vld [vmem:[%s8162_s28 + $0x30] sm:$0xff] }
  0x19   : > { %918 = vperm.xlu0 %7881, %v843_v10   ;;  %923 = vperm.xlu1 %7882, %v844_v14   ;;  %v368_v41 = vld [vmem:[%s8162_s28 + $0x38] sm:$0xff]  ;;  %v861_v42 = vld [vmem:[%s9811_s1 + $0xb0] sm:$0xff]  ;;  %v860_v43 = vld [vmem:[%s9811_s1 + $0xa8] sm:$0xff] }
  0x1a   : > { %v863_v44 = vld [vmem:[%s9811_s1 + $0xc0] sm:$0xff]  ;;  %v421_v45 = vpack.c.bf16 %v368_v41, %v367_v40  ;;  %v862_v46 = vld [vmem:[%s9811_s1 + $0xb8] sm:$0xff]  ;;  %v370_v48 = vld [vmem:[%s8162_s28 + $0x48] sm:$0xff] }
  0x1b   : > { %6511 = vmatpush3.bf16.msra.mxu0 %v7886_v7  ;;  %v369_v47 = vld [vmem:[%s8162_s28 + $0x40] sm:$0xff]  ;;  %v865_v49 = vld [vmem:[%s9811_s1 + $0xd0] sm:$0xff]  ;;  %v864_v50 = vld [vmem:[%s9811_s1 + $0xc8] sm:$0xff] }
  0x1c   : > { %6512 = vmatprep.subr.bf16.mxu0 %v8036_v1  ;;  %v867_v51 = vld [vmem:[%s9811_s1 + $0xe0] sm:$0xff]  ;;  %v422_v52 = vpack.c.bf16 %v370_v48, %v369_v47  ;;  %v866_v53 = vld [vmem:[%s9811_s1 + $0xd8] sm:$0xff]  ;;  %v371_v54 = vld [vmem:[%s8162_s28 + $0x50] sm:$0xff] }
  0x1d   : > { %928 = vperm.xlu0 %7881, %v845_v13   ;;  %933 = vperm.xlu1 %7882, %v846_v17   ;;  %v372_v55 = vld [vmem:[%s8162_s28 + $0x58] sm:$0xff]  ;;  %v869_v56 = vld [vmem:[%s9811_s1 + $0xf0] sm:$0xff]  ;;  %v868_v57 = vld [vmem:[%s9811_s1 + $0xe8] sm:$0xff] }
  0x1e   : > { %v871_v58 = vld [vmem:[%s9811_s1 + $0x100] sm:$0xff]  ;;  %v423_v59 = vpack.c.bf16 %v372_v55, %v371_v54  ;;  %v870_v60 = vld [vmem:[%s9811_s1 + $0xf8] sm:$0xff]  ;;  %v374_v62 = vld [vmem:[%s8162_s28 + $0x68] sm:$0xff] }
  0x1f   : > { %6513 = vmatpush3.bf16.msra.mxu0 %v7887_v9  ;;  %v373_v61 = vld [vmem:[%s8162_s28 + $0x60] sm:$0xff]  ;;  %v873_v63 = vld [vmem:[%s9811_s1 + $0x110] sm:$0xff]  ;;  %v872_v0 = vld [vmem:[%s9811_s1 + $0x108] sm:$0xff] }
  0x20   : > { %6514 = vmatprep.subr.bf16.mxu0 %v8036_v1  ;;  %v875_v2 = vld [vmem:[%s9811_s1 + $0x120] sm:$0xff]  ;;  %v424_v3 = vpack.c.bf16 %v374_v62, %v373_v61  ;;  %v874_v4 = vld [vmem:[%s9811_s1 + $0x118] sm:$0xff]  ;;  %v375_v5 = vld [vmem:[%s8162_s28 + $0x70] sm:$0xff] }
  0x21   : > { %938 = vperm.xlu0 %7881, %v847_v16   ;;  %943 = vperm.xlu1 %7882, %v848_v22   ;;  %v376_v6 = vld [vmem:[%s8162_s28 + $0x78] sm:$0xff]  ;;  %v877_v7 = vld [vmem:[%s9811_s1 + $0x130] sm:$0xff]  ;;  %v876_v8 = vld [vmem:[%s9811_s1 + $0x128] sm:$0xff] }
  0x22   : > { %v879_v9 = vld [vmem:[%s9811_s1 + $0x140] sm:$0xff]  ;;  %v425_v10 = vpack.c.bf16 %v376_v6, %v375_v5  ;;  %v878_v11 = vld [vmem:[%s9811_s1 + $0x138] sm:$0xff]  ;;  %v378_v13 = vld [vmem:[%s8162_s28 + $0x88] sm:$0xff] }
  0x23   : > { %6515 = vmatpush3.bf16.msra.mxu0 %v7888_v12  ;;  %v377_v12 = vld [vmem:[%s8162_s28 + $0x80] sm:$0xff]  ;;  %v881_v14 = vld [vmem:[%s9811_s1 + $0x150] sm:$0xff]  ;;  %v380_v20 = vld [vmem:[%s8162_s28 + $0x98] sm:$0xff] }
  0x24   : > { %6516 = vmatprep.subr.bf16.mxu0 %v8036_v1  ;;  %v883_v16 = vld [vmem:[%s9811_s1 + $0x160] sm:$0xff]  ;;  %v426_v17 = vpack.c.bf16 %v378_v13, %v377_v12  ;;  %v379_v19 = vld [vmem:[%s8162_s28 + $0x90] sm:$0xff]  ;;  %v884_v22 = vld [vmem:[%s9811_s1 + $0x168] sm:$0xff] }
  0x25   : > { %948 = vperm.xlu0 %7881, %v849_v21   ;;  %953 = vperm.xlu1 %7882, %v850_v25   ;;  %v885_v21 = vld [vmem:[%s9811_s1 + $0x170] sm:$0xff]  ;;  %v886_v25 = vld [vmem:[%s9811_s1 + $0x178] sm:$0xff]  ;;  %v381_v26 = vld [vmem:[%s8162_s28 + $0xa0] sm:$0xff] }
  0x26   : > { %v382_v27 = vld [vmem:[%s8162_s28 + $0xa8] sm:$0xff]  ;;  %v383_v33 = vld [vmem:[%s8162_s28 + $0xb0] sm:$0xff]  ;;  %v384_v34 = vld [vmem:[%s8162_s28 + $0xb8] sm:$0xff] }
  0x27   : > { %6517 = vmatpush3.bf16.msra.mxu0 %v7889_v15  ;;  %v880_v15 = vld [vmem:[%s9811_s1 + $0x148] sm:$0xff]  ;;  %v895_v40 = vld [vmem:[%s9811_s1 + $0x1c0] sm:$0xff]  ;;  %v894_v41 = vld [vmem:[%s9811_s1 + $0x1b8] sm:$0xff] }
  0x28   : > { %6518 = vmatprep.subr.bf16.mxu0 %v8036_v1  ;;  %v7896_v47 = vld [vmem:[%s9814_s4 + $0x90] sm:$0xff]   ;;  %v7900_v54 = vld [vmem:[%s9814_s4 + $0xa0] sm:$0xff]   ;;  %v394_v6 = vld [vmem:[%s8162_s28 + $0x108] sm:$0xff] }
  0x29   : > { %958 = vperm.xlu0 %7881, %v851_v23   ;;  %963 = vperm.xlu1 %7882, %v852_v29   ;;  %v887_v23 = vld [vmem:[%s9811_s1 + $0x180] sm:$0xff]  ;;  %v888_v29 = vld [vmem:[%s9811_s1 + $0x188] sm:$0xff]  ;;  %v7904_v61 = vld [vmem:[%s9814_s4 + $0xb0] sm:$0xff]  }
  0x2a   : > { %v393_v5 = vld [vmem:[%s8162_s28 + $0x100] sm:$0xff]  ;;  %v398_v12 = vld [vmem:[%s8162_s28 + $0x128] sm:$0xff] }
  0x2b   : > { %6519 = vmatpush3.bf16.msra.mxu0 %v7890_v18  ;;  %v882_v18 = vld [vmem:[%s9811_s1 + $0x158] sm:$0xff] }
  0x2d   : > { %968 = vperm.xlu0 %7881, %v853_v28   ;;  %973 = vperm.xlu1 %7882, %v854_v32   ;;  %v889_v28 = vld [vmem:[%s9811_s1 + $0x190] sm:$0xff]  ;;  %v890_v32 = vld [vmem:[%s9811_s1 + $0x198] sm:$0xff] }
  0x2e   : > { %6521 = vmatmul.mubr.bf16.vlgmr.msra.gmra.mrb[0].mxu0 %v418_v24  ;;  %v427_v24 = vpack.c.bf16 %v380_v20, %v379_v19  ;;  %v403_v20 = vld [vmem:[%s8162_s28 + $0x150] sm:$0xff] }
  0x2f   : > { %6524 = vmatprep.mubr.msk.bf16.mxu0 %vm8037_vm0, %v8036_v1 }
  0x31   : > { %978 = vperm.xlu0 %7881, %v855_v30   ;;  %983 = vperm.xlu1 %7882, %v856_v36   ;;  %v428_v30 = vpack.c.bf16 %v382_v27, %v381_v26  ;;  %v892_v36 = vld [vmem:[%s9811_s1 + $0x1a8] sm:$0xff]  ;;  %v407_v26 = vld [vmem:[%s8162_s28 + $0x170] sm:$0xff]  ;;  %v408_v27 = vld [vmem:[%s8162_s28 + $0x178] sm:$0xff] }
  0x35   : > { %988 = vperm.xlu0 %7881, %v857_v35   ;;  %993 = vperm.xlu1 %7882, %v858_v39   ;;  %v893_v35 = vld [vmem:[%s9811_s1 + $0x1b0] sm:$0xff]  ;;  %v429_v39 = vpack.c.bf16 %v384_v34, %v383_v33  ;;  %v412_v33 = vld [vmem:[%s8162_s28 + $0x198] sm:$0xff] }
  0x36   : > { %6525 = vmatmul.mubr.bf16.gmra.mrb[4].mxu0 %v419_v31  ;;  %v891_v31 = vld [vmem:[%s9811_s1 + $0x1a0] sm:$0xff] }
  0x37   : > { %6528 = vmatprep.mubr.msk.bf16.mxu0 %vm8037_vm0, %v8036_v1 }
  0x39   : > { %998 = vperm.xlu0 %7881, %v859_v37   ;;  %1003 = vperm.xlu1 %7882, %v860_v43   ;;  %v7891_v37 = vld [vmem:[%s9814_s4 + $0x40] sm:$0xff]   ;;  %v7894_v43 = vld [vmem:[%s9814_s4 + $0x88] sm:$0xff]  }
  0x3a   : > { %6636 = vmatprep.subr.bf16.mxu0 %v7891_v37 }
  0x3b   : > { %6637 = vmatpush3.bf16.msra.mxu0 %v7891_v37 }
  0x3d   : > { %1008 = vperm.xlu0 %7881, %v861_v42   ;;  %1013 = vperm.xlu1 %7882, %v862_v46   ;;  %v7893_v42 = vld [vmem:[%s9814_s4 + $0x48] sm:$0xff]   ;;  %v7895_v46 = vld [vmem:[%s9814_s4 + $0x50] sm:$0xff]  }
  0x3e   : > { %6529 = vmatmul.mubr.bf16.gmra.mrb[8].mxu0 %v420_v38  ;;  %v7892_v38 = vld [vmem:[%s9814_s4 + $0x80] sm:$0xff]   ;;  %6638 = vmatprep.subr.bf16.mxu0 %v7893_v42 }
  0x3f   : > { %6532 = vmatprep.mubr.msk.bf16.mxu0 %vm8037_vm0, %v8036_v1  ;;  %6764 = vmatprep.subr.bf16.mxu1 %v7892_v38 }
  0x40   : > { %6765 = vmatpush3.bf16.msra.mxu1 %v7892_v38  ;;  %6639 = vmatpush3.bf16.msra.mxu0 %v7893_v42  ;;  %v8476_v38 = vld [vmem:[%s9813_s3] ss:$0 sm:$0xff] }
  0x41   : > { %1018 = vperm.xlu0 %7881, %v863_v44   ;;  %1023 = vperm.xlu1 %7882, %v864_v50   ;;  %v385_v44 = vld [vmem:[%s8162_s28 + $0xc0] sm:$0xff]  ;;  %v7898_v50 = vld [vmem:[%s9814_s4 + $0x98] sm:$0xff]  }
  0x42   : > { %6766 = vmatprep.subr.bf16.mxu1 %v7894_v43  ;;  %6640 = vmatprep.subr.bf16.mxu0 %v7895_v46 }
  0x44   : > { %6767 = vmatpush3.bf16.msra.mxu1 %v7894_v43  ;;  %6641 = vmatpush3.bf16.msra.mxu0 %v7895_v46 }
  0x45   : > { %1028 = vperm.xlu0 %7881, %v865_v49   ;;  %1033 = vperm.xlu1 %7882, %v866_v53   ;;  %v7897_v49 = vld [vmem:[%s9814_s4 + $0x58] sm:$0xff]   ;;  %v7899_v53 = vld [vmem:[%s9814_s4 + $0x60] sm:$0xff]  }
  0x46   : > { %6533 = vmatmul.mubr.bf16.gmra.mrb[12].mxu0 %v421_v45  ;;  %v386_v45 = vld [vmem:[%s8162_s28 + $0xc8] sm:$0xff]  ;;  %6768 = vmatprep.subr.bf16.mxu1 %v7896_v47 }
  0x47   : > { %6536 = vmatprep.mubr.msk.bf16.mxu0 %vm8037_vm0, %v8036_v1  ;;  %v430_v48 = vpack.c.bf16 %v386_v45, %v385_v44  ;;  %6642 = vmatprep.subr.bf16.mxu0 %v7897_v49 }
  0x48   : > { %6769 = vmatpush3.bf16.msra.mxu1 %v7896_v47  ;;  %6643 = vmatpush3.bf16.msra.mxu0 %v7897_v49 }
  0x49   : > { %1038 = vperm.xlu0 %7881, %v867_v51   ;;  %1043 = vperm.xlu1 %7882, %v868_v57   ;;  %v387_v51 = vld [vmem:[%s8162_s28 + $0xd0] sm:$0xff]  ;;  %v7902_v57 = vld [vmem:[%s9814_s4 + $0xa8] sm:$0xff]  }
  0x4a   : > { %6770 = vmatprep.subr.bf16.mxu1 %v7898_v50  ;;  %6644 = vmatprep.subr.bf16.mxu0 %v7899_v53 }
  0x4c   : > { %6771 = vmatpush3.bf16.msra.mxu1 %v7898_v50  ;;  %6645 = vmatpush3.bf16.msra.mxu0 %v7899_v53 }
  0x4d   : > { %1048 = vperm.xlu0 %7881, %v869_v56   ;;  %1053 = vperm.xlu1 %7882, %v870_v60   ;;  %v7901_v56 = vld [vmem:[%s9814_s4 + $0x68] sm:$0xff]   ;;  %v7903_v60 = vld [vmem:[%s9814_s4 + $0x70] sm:$0xff]  }
  0x4e   : > { %6537 = vmatmul.mubr.bf16.gmra.mrb[16].mxu0 %v422_v52  ;;  %v388_v52 = vld [vmem:[%s8162_s28 + $0xd8] sm:$0xff]  ;;  %6772 = vmatprep.subr.bf16.mxu1 %v7900_v54 }
  0x4f   : > { %6540 = vmatprep.mubr.msk.bf16.mxu0 %vm8037_vm0, %v8036_v1  ;;  %v431_v55 = vpack.c.bf16 %v388_v52, %v387_v51  ;;  %6646 = vmatprep.subr.bf16.mxu0 %v7901_v56 }
  0x50   : > { %6773 = vmatpush3.bf16.msra.mxu1 %v7900_v54  ;;  %6647 = vmatpush3.bf16.msra.mxu0 %v7901_v56  ;;  %v417_v54 = vld [vmem:[%s8162_s28 + $0x1c0] sm:$0xff] }
  0x51   : > { %1058 = vperm.xlu0 %7881, %v871_v58   ;;  %1063 = vperm.xlu1 %7882, %v872_v0   ;;  %v389_v58 = vld [vmem:[%s8162_s28 + $0xe0] sm:$0xff]  ;;  %v7906_v0 = vld [vmem:[%s9814_s4 + $0xb8] sm:$0xff]  }
  0x52   : > { %6774 = vmatprep.subr.bf16.mxu1 %v7902_v57  ;;  %6648 = vmatprep.subr.bf16.mxu0 %v7903_v60 }
  0x54   : > { %6775 = vmatpush3.bf16.msra.mxu1 %v7902_v57  ;;  %6649 = vmatpush3.bf16.msra.mxu0 %v7903_v60  ;;  %v446_v60 = vpack.c.bf16 %v417_v54, %v417_v54 }
  0x55   : > { %1068 = vperm.xlu0 %7881, %v873_v63   ;;  %1073 = vperm.xlu1 %7882, %v874_v4   ;;  %v7905_v63 = vld [vmem:[%s9814_s4 + $0x78] sm:$0xff]  }
  0x56   : > { %6541 = vmatmul.mubr.bf16.gmra.mrb[20].mxu0 %v423_v59  ;;  %v390_v59 = vld [vmem:[%s8162_s28 + $0xe8] sm:$0xff]  ;;  %6776 = vmatprep.subr.bf16.mxu1 %v7904_v61 }
  0x57   : > { %6544 = vmatprep.mubr.msk.bf16.mxu0 %vm8037_vm0, %v8036_v1  ;;  %v432_v62 = vpack.c.bf16 %v390_v59, %v389_v58  ;;  %6650 = vmatprep.subr.bf16.mxu0 %v7905_v63 }
  0x58   : > { %6777 = vmatpush3.bf16.msra.mxu1 %v7904_v61  ;;  %6651 = vmatpush3.bf16.msra.mxu0 %v7905_v63 }
  0x59   : > { %1078 = vperm.xlu0 %7881, %v875_v2   ;;  %1083 = vperm.xlu1 %7882, %v876_v8   ;;  %v391_v2 = vld [vmem:[%s8162_s28 + $0xf0] sm:$0xff] }
  0x5a   : > { %6778 = vmatprep.subr.bf16.mxu1 %v7906_v0  ;;  %v395_v8 = vld [vmem:[%s8162_s28 + $0x110] sm:$0xff] }
  0x5c   : > { %6779 = vmatpush3.bf16.msra.mxu1 %v7906_v0 }
  0x5d   : > { %1088 = vperm.xlu0 %7881, %v877_v7   ;;  %1093 = vperm.xlu1 %7882, %v878_v11   ;;  %v434_v7 = vpack.c.bf16 %v394_v6, %v393_v5  ;;  %v397_v11 = vld [vmem:[%s8162_s28 + $0x120] sm:$0xff] }
  0x5e   : > { %6545 = vmatmul.mubr.bf16.gmra.mrb[24].mxu0 %v424_v3  ;;  %v392_v3 = vld [vmem:[%s8162_s28 + $0xf8] sm:$0xff]  ;;  %v436_v13 = vpack.c.bf16 %v398_v12, %v397_v11 }
  0x5f   : > { %6548 = vmatprep.mubr.msk.bf16.mxu0 %vm8037_vm0, %v8036_v1  ;;  %v433_v4 = vpack.c.bf16 %v392_v3, %v391_v2 }
  0x61   : > { %1098 = vperm.xlu0 %7881, %v879_v9   ;;  %1103 = vperm.xlu1 %7882, %v880_v15   ;;  %v396_v9 = vld [vmem:[%s8162_s28 + $0x118] sm:$0xff] }
  0x62   : > { %v400_v15 = vld [vmem:[%s8162_s28 + $0x138] sm:$0xff] }
  0x65   : > { %1108 = vperm.xlu0 %7881, %v881_v14   ;;  %1113 = vperm.xlu1 %7882, %v882_v18   ;;  %v399_v14 = vld [vmem:[%s8162_s28 + $0x130] sm:$0xff]  ;;  %v402_v18 = vld [vmem:[%s8162_s28 + $0x148] sm:$0xff] }
  0x66   : > { %6549 = vmatmul.mubr.bf16.gmra.mrb[28].mxu0 %v425_v10  ;;  %v435_v10 = vpack.c.bf16 %v396_v9, %v395_v8 }
  0x67   : > { %6552 = vmatprep.mubr.msk.bf16.mxu0 %vm8037_vm0, %v8036_v1 }
  0x69   : > { %1118 = vperm.xlu0 %7881, %v883_v16   ;;  %1123 = vperm.xlu1 %7882, %v884_v22   ;;  %v437_v16 = vpack.c.bf16 %v400_v15, %v399_v14 }
  0x6d   : > { %1128 = vperm.xlu0 %7881, %v885_v21   ;;  %1133 = vperm.xlu1 %7882, %v886_v25   ;;  %v404_v21 = vld [vmem:[%s8162_s28 + $0x158] sm:$0xff] }
  0x6e   : > { %6553 = vmatmul.mubr.bf16.gmra.mrb[32].mxu0 %v426_v17  ;;  %v401_v17 = vld [vmem:[%s8162_s28 + $0x140] sm:$0xff]  ;;  %v439_v22 = vpack.c.bf16 %v404_v21, %v403_v20 }
  0x6f   : > { %6556 = vmatprep.mubr.msk.bf16.mxu0 %vm8037_vm0, %v8036_v1  ;;  %v438_v19 = vpack.c.bf16 %v402_v18, %v401_v17 }
  0x71   : > { %1138 = vperm.xlu0 %7881, %v887_v23   ;;  %1143 = vperm.xlu1 %7882, %v888_v29   ;;  %v405_v23 = vld [vmem:[%s8162_s28 + $0x160] sm:$0xff] }
  0x72   : > { %v409_v29 = vld [vmem:[%s8162_s28 + $0x180] sm:$0xff] }
  0x75   : > { %1148 = vperm.xlu0 %7881, %v889_v28   ;;  %1153 = vperm.xlu1 %7882, %v890_v32   ;;  %v441_v28 = vpack.c.bf16 %v408_v27, %v407_v26  ;;  %v411_v32 = vld [vmem:[%s8162_s28 + $0x190] sm:$0xff] }
  0x76   : > { %6557 = vmatmul.mubr.bf16.gmra.mrb[36].mxu0 %v427_v24  ;;  %v406_v24 = vld [vmem:[%s8162_s28 + $0x168] sm:$0xff]  ;;  %v443_v34 = vpack.c.bf16 %v412_v33, %v411_v32 }
  0x77   : > { %6560 = vmatprep.mubr.msk.bf16.mxu0 %vm8037_vm0, %v8036_v1  ;;  %v440_v25 = vpack.c.bf16 %v406_v24, %v405_v23 }
  0x79   : > { %1158 = vperm.xlu0 %7881, %v891_v31   ;;  %1163 = vperm.xlu1 %7882, %v892_v36   ;;  %v414_v36 = vld [vmem:[%s8162_s28 + $0x1a8] sm:$0xff] }
  0x7d   : > { %1168 = vperm.xlu0 %7881, %v893_v35   ;;  %1173 = vperm.xlu1 %7882, %v894_v41   ;;  %v413_v35 = vld [vmem:[%s8162_s28 + $0x1a0] sm:$0xff] }
  0x7e   : > { %6561 = vmatmul.mubr.bf16.gmra.mrb[40].mxu0 %v428_v30  ;;  %v410_v30 = vld [vmem:[%s8162_s28 + $0x188] sm:$0xff]  ;;  %v444_v37 = vpack.c.bf16 %v414_v36, %v413_v35  ;;  %v8485_v41 = vld [vmem:[%s9814_s4 + $0xc0] sm:$0xff]  }
  0x7f   : > { %6564 = vmatprep.mubr.msk.bf16.mxu0 %vm8037_vm0, %v8036_v1  ;;  %v442_v31 = vpack.c.bf16 %v410_v30, %v409_v29  ;;  %6828 = vmatprep.subr.bf16.mxu1 %v8485_v41 }
  0x81   : > { %1178 = vperm.xlu0 %7881, %v895_v40   ;;  %v416_v40 = vld [vmem:[%s8162_s28 + $0x1b8] sm:$0xff] }
  0x86   : > { %6565 = vmatmul.mubr.bf16.gmra.mrb[44].mxu0 %v429_v39  ;;  %v415_v39 = vld [vmem:[%s8162_s28 + $0x1b0] sm:$0xff] }
  0x87   : > { %6568 = vmatprep.mubr.msk.bf16.mxu0 %vm8037_vm0, %v8036_v1  ;;  %v445_v46 = vpack.c.bf16 %v416_v40, %v415_v39 }
  0x8e   : > { %6569 = vmatmul.mubr.bf16.gmra.mrb[48].mxu0 %v430_v48 }
  0x8f   : > { %6572 = vmatprep.mubr.msk.bf16.mxu0 %vm8037_vm0, %v8036_v1 }
  0x90   : > { %v899_v42 = vpop.permute.xlu0 %898  ;;  %v909_v56 = vpop.permute.xlu1 %908 }
  0x94   : > { %v904_v53 = vpop.permute.xlu0 %903 }
  0x96   : > { %6573 = vmatmul.mubr.bf16.gmra.mrb[52].mxu0 %v431_v55 }
  0x97   : > { %6576 = vmatprep.mubr.msk.bf16.mxu0 %vm8037_vm0, %v8036_v1 }
  0x98   : > { %v919_v12 = vpop.permute.xlu0 %918 }
  0x9c   : > { %v929_v30 = vpop.permute.xlu0 %928 }
  0x9e   : > { %6577 = vmatmul.mubr.bf16.gmra.mrb[56].mxu0 %v432_v62 }
  0x9f   : > { %6580 = vmatprep.mubr.msk.bf16.mxu0 %vm8037_vm0, %v8036_v1 }
  0xa6   : > { %6581 = vmatmul.mubr.bf16.gmra.mrb[60].mxu0 %v433_v4  ;;  %v914_v4 = vpop.permute.xlu1 %913 }
  0xa7   : > { %6584 = vmatprep.mubr.msk.bf16.mxu0 %vm8037_vm0, %v8036_v1 }
  0xae   : > { %6585 = vmatmul.mubr.bf16.gmra.mrb[64].mxu0 %v434_v7 }
  0xaf   : > { %6588 = vmatprep.mubr.msk.bf16.mxu0 %vm8037_vm0, %v8036_v1 }
  0xb6   : > { %6589 = vmatmul.mubr.bf16.gmra.mrb[68].mxu0 %v435_v10 }
  0xb7   : > { %6592 = vmatprep.mubr.msk.bf16.mxu0 %vm8037_vm0, %v8036_v1 }
  0xbe   : > { %6593 = vmatmul.mubr.bf16.gmra.mrb[72].mxu0 %v436_v13 }
  0xbf   : > { %6596 = vmatprep.mubr.msk.bf16.mxu0 %vm8037_vm0, %v8036_v1 }
  0xc6   : > { %6597 = vmatmul.mubr.bf16.gmra.mrb[76].mxu0 %v437_v16  ;;  %v924_v16 = vpop.permute.xlu1 %923 }
  0xc7   : > { %6600 = vmatprep.mubr.msk.bf16.mxu0 %vm8037_vm0, %v8036_v1 }
  0xce   : > { %6601 = vmatmul.mubr.bf16.gmra.mrb[80].mxu0 %v438_v19 }
  0xcf   : > { %6604 = vmatprep.mubr.msk.bf16.mxu0 %vm8037_vm0, %v8036_v1 }
  0xd6   : > { %6605 = vmatmul.mubr.bf16.gmra.mrb[84].mxu0 %v439_v22 }
  0xd7   : > { %6608 = vmatprep.mubr.msk.bf16.mxu0 %vm8037_vm0, %v8036_v1 }
  0xde   : > { %6609 = vmatmul.mubr.bf16.gmra.mrb[88].mxu0 %v440_v25 }
  0xdf   : > { %6612 = vmatprep.mubr.msk.bf16.mxu0 %vm8037_vm0, %v8036_v1 }
  0xe6   : > { %6613 = vmatmul.mubr.bf16.gmra.mrb[92].mxu0 %v441_v28 }
  0xe7   : > { %6616 = vmatprep.mubr.msk.bf16.mxu0 %vm8037_vm0, %v8036_v1 }
  0xee   : > { %6617 = vmatmul.mubr.bf16.gmra.mrb[96].mxu0 %v442_v31 }
  0xef   : > { %6620 = vmatprep.mubr.msk.bf16.mxu0 %vm8037_vm0, %v8036_v1 }
  0xf6   : > { %6621 = vmatmul.mubr.bf16.gmra.mrb[100].mxu0 %v443_v34  ;;  %v934_v34 = vpop.permute.xlu1 %933 }
  0xf7   : > { %6624 = vmatprep.mubr.msk.bf16.mxu0 %vm8037_vm0, %v8036_v1 }
  0xfe   : > { %6625 = vmatmul.mubr.bf16.gmra.mrb[104].mxu0 %v444_v37 }
  0xff   : > { %6628 = vmatprep.mubr.msk.bf16.mxu0 %vm8037_vm0, %v8036_v1 }
 0x101   : > { %v552_v43 = vpop.f32.mrb[0].mxu0 }
 0x102   : > { %v553_v44 = vadd.f32 %v8476_v38, %v552_v43  ;;  %v6522_v45 = vpop.f32.mrb[1].mxu0  ;;  %v7908_v43 = vld [vmem:[%s9814_s4 + $0xc8] sm:$0xff]  }
 0x103   : > { %v555_v47 = vpop.f32.mrb[2].mxu0 }
 0x104   : > { %v782_v48 = vmax.f32 %v553_v44, 0.0  ;;  %v556_v49 = vadd.f32 %v8476_v38, %v555_v47  ;;  %v6523_v50 = vpop.f32.mrb[3].mxu0 }
 0x106   : > { %v1181_v51 = vmul.f32 %v899_v42, %v782_v48  ;;  %v783_v52 = vmax.f32 %v556_v49, 0.0  ;;  %6629 = vmatmul.mubr.bf16.gmra.mrb[108].mxu0 %v445_v46 }
 0x107   : > { %6632 = vmatprep.mubr.msk.bf16.mxu0 %vm8037_vm0, %v8036_v1 }
 0x108   : > { %1238 = vst [vmem:[#allocation2] sm:$0xff] %v1181_v51  ;;  %v1182_v55 = vmul.f32 %v904_v53, %v783_v52  ;;  %v7909_v51 = vld [vmem:[%s9814_s4 + $0xd0] sm:$0xff]   ;;  %v939_v52 = vpop.permute.xlu0 %938 }
 0x109   : > { %v560_v57 = vpop.f32.mrb[4].mxu0 }
 0x10a   : > { %1239 = vst [vmem:[#allocation2 + $0x8] sm:$0xff] %v1182_v55  ;;  %v561_v58 = vadd.f32 %v8476_v38, %v560_v57  ;;  %v6526_v59 = vpop.f32.mrb[5].mxu0 }
 0x10b   : > { %v563_v61 = vpop.f32.mrb[6].mxu0 }
 0x10c   : > { %v784_v62 = vmax.f32 %v561_v58, 0.0  ;;  %v564_v63 = vadd.f32 %v8476_v38, %v563_v61  ;;  %v6527_v0 = vpop.f32.mrb[7].mxu0 }
 0x10e   : > { %v1183_v2 = vmul.f32 %v909_v56, %v784_v62  ;;  %v785_v3 = vmax.f32 %v564_v63, 0.0  ;;  %6633 = vmatmul.mubr.bf16.gmra.mrb[112].mxu0 %v446_v60  ;;  %v944_v56 = vpop.permute.xlu1 %943  ;;  %v7910_v62 = vld [vmem:[%s9814_s4 + $0xd8] sm:$0xff]  }
 0x110   : > { %1240 = vst [vmem:[#allocation2 + $0x10] sm:$0xff] %v1183_v2  ;;  %v1184_v1 = vmul.f32 %v914_v4, %v785_v3 }
 0x111   : > { %v568_v5 = vpop.f32.mrb[8].mxu0  ;;  %v1383_v15 = vld [vmem:[#allocation2 + $0x1] sm:$0xff] }
 0x112   : > { %1241 = vst [vmem:[#allocation2 + $0x18] sm:$0xff] %v1184_v1  ;;  %v569_v6 = vadd.f32 %v8476_v38, %v568_v5  ;;  %v6530_v7 = vpop.f32.mrb[9].mxu0  ;;  %v2018_v18 = vld [vmem:[#allocation2 + $0x2] sm:$0xff] }
 0x113   : > { %v571_v8 = vpop.f32.mrb[10].mxu0 }
 0x114   : > { %v786_v9 = vmax.f32 %v569_v6, 0.0  ;;  %v572_v10 = vadd.f32 %v8476_v38, %v571_v8  ;;  %v6531_v11 = vpop.f32.mrb[11].mxu0  ;;  %v949_v6 = vpop.permute.xlu0 %948 }
 0x116   : > { %v1185_v13 = vmul.f32 %v919_v12, %v786_v9  ;;  %v787_v14 = vmax.f32 %v572_v10, 0.0  ;;  %v954_v12 = vpop.permute.xlu1 %953 }
 0x117   : > { %v1384_v17 = vld [vmem:[#allocation2 + $0x9] sm:$0xff] }
 0x118   : > { %v2019_v19 = vld [vmem:[#allocation2 + $0xa] sm:$0xff]  ;;  %1242 = vst [vmem:[#allocation2 + $0x20] sm:$0xff] %v1185_v13  ;;  %v1186_v20 = vmul.f32 %v924_v16, %v787_v14  ;;  %v1431_v21 = vpack.c.bf16 %v1384_v17, %v1383_v15 }
 0x119   : > { %v2066_v22 = vpack.c.bf16 %v2019_v19, %v2018_v18  ;;  %v576_v23 = vpop.f32.mrb[12].mxu0  ;;  %v1385_v33 = vld [vmem:[#allocation2 + $0x11] sm:$0xff]  ;;  %v7911_v19 = vld [vmem:[%s9814_s4 + $0xe0] sm:$0xff]  }
 0x11a   : > { %1243 = vst [vmem:[#allocation2 + $0x28] sm:$0xff] %v1186_v20  ;;  %v577_v24 = vadd.f32 %v8476_v38, %v576_v23  ;;  %v6534_v25 = vpop.f32.mrb[13].mxu0  ;;  %6652 = vmatprep.mubr.bf16.mxu0 %v1431_v21  ;;  %v2020_v36 = vld [vmem:[#allocation2 + $0x12] sm:$0xff] }
 0x11b   : > { %6780 = vmatprep.mubr.bf16.mxu1 %v2066_v22  ;;  %v579_v26 = vpop.f32.mrb[14].mxu0 }
 0x11c   : > { %v788_v27 = vmax.f32 %v577_v24, 0.0  ;;  %v580_v28 = vadd.f32 %v8476_v38, %v579_v26  ;;  %v6535_v29 = vpop.f32.mrb[15].mxu0 }
 0x11e   : > { %v1187_v31 = vmul.f32 %v929_v30, %v788_v27  ;;  %v789_v32 = vmax.f32 %v580_v28, 0.0 }
 0x11f   : > { %v1386_v35 = vld [vmem:[#allocation2 + $0x19] sm:$0xff] }
 0x120   : > { %v2021_v37 = vld [vmem:[#allocation2 + $0x1a] sm:$0xff]  ;;  %1244 = vst [vmem:[#allocation2 + $0x30] sm:$0xff] %v1187_v31  ;;  %v1188_v39 = vmul.f32 %v934_v34, %v789_v32  ;;  %v1432_v40 = vpack.c.bf16 %v1386_v35, %v1385_v33  ;;  %v959_v31 = vpop.permute.xlu0 %958 }
 0x121   : > { %v2067_v42 = vpack.c.bf16 %v2021_v37, %v2020_v36  ;;  %v584_v44 = vpop.f32.mrb[16].mxu0  ;;  %v1387_v55 = vld [vmem:[#allocation2 + $0x21] sm:$0xff]  ;;  %v964_v37 = vpop.permute.xlu1 %963 }
 0x122   : > { %1245 = vst [vmem:[#allocation2 + $0x38] sm:$0xff] %v1188_v39  ;;  %v585_v45 = vadd.f32 %v8476_v38, %v584_v44  ;;  %v6538_v46 = vpop.f32.mrb[17].mxu0  ;;  %6653 = vmatmul.mubr.bf16.vlgmr.msra.gmra.mrb[116].mxu0 %v1432_v40  ;;  %v2022_v58 = vld [vmem:[#allocation2 + $0x22] sm:$0xff] }
 0x123   : > { %6781 = vmatmul.mubr.bf16.vlgmr.msra.gmra.mrb[0].mxu1 %v2067_v42  ;;  %v587_v47 = vpop.f32.mrb[18].mxu0  ;;  %v7913_v46 = vld [vmem:[%s9814_s4] sm:$0xff]  }
 0x124   : > { %6829 = vmatpush3.bf16.msra.mxu1 %v8485_v41  ;;  %v790_v48 = vmax.f32 %v585_v45, 0.0  ;;  %v588_v49 = vadd.f32 %v8476_v38, %v587_v47  ;;  %v6539_v50 = vpop.f32.mrb[19].mxu0  ;;  %6700 = vmatprep.subr.bf16.mxu0 %v7913_v46 }
 0x125   : > { %6830 = vmatprep.subr.bf16.mxu1 %v7908_v43  ;;  %6701 = vmatpush3.bf16.msra.mxu0 %v7913_v46 }
 0x126   : > { %v1189_v53 = vmul.f32 %v939_v52, %v790_v48  ;;  %v791_v54 = vmax.f32 %v588_v49, 0.0 }
 0x127   : > { %v1388_v57 = vld [vmem:[#allocation2 + $0x29] sm:$0xff] }
 0x128   : > { %v2023_v59 = vld [vmem:[#allocation2 + $0x2a] sm:$0xff]  ;;  %6831 = vmatpush3.bf16.msra.mxu1 %v7908_v43  ;;  %1246 = vst [vmem:[#allocation2 + $0x40] sm:$0xff] %v1189_v53  ;;  %v1190_v41 = vmul.f32 %v944_v56, %v791_v54  ;;  %v1433_v60 = vpack.c.bf16 %v1388_v57, %v1387_v55 }
 0x129   : > { %v2068_v61 = vpack.c.bf16 %v2023_v59, %v2022_v58  ;;  %6832 = vmatprep.subr.bf16.mxu1 %v7909_v51  ;;  %v592_v63 = vpop.f32.mrb[20].mxu0  ;;  %v1389_v9 = vld [vmem:[#allocation2 + $0x31] sm:$0xff]  ;;  %v7912_v54 = vld [vmem:[%s9814_s4 + $0xe8] sm:$0xff]  }
 0x12a   : > { %1247 = vst [vmem:[#allocation2 + $0x48] sm:$0xff] %v1190_v41  ;;  %v593_v0 = vadd.f32 %v8476_v38, %v592_v63  ;;  %v6542_v2 = vpop.f32.mrb[21].mxu0  ;;  %6656 = vmatprep.mubr.bf16.mxu0 %v1433_v60  ;;  %v2024_v10 = vld [vmem:[#allocation2 + $0x32] sm:$0xff]  ;;  %v7914_v59 = vld [vmem:[%s9814_s4 + $0x8] sm:$0xff]   ;;  %v969_v41 = vpop.permute.xlu0 %968 }
 0x12b   : > { %6784 = vmatprep.mubr.bf16.mxu1 %v2068_v61  ;;  %v595_v3 = vpop.f32.mrb[22].mxu0  ;;  %v8513_v11 = vld [vmem:[#allocation2 + $0x31] sm:$0xff]  ;;  %6702 = vmatprep.subr.bf16.mxu0 %v7914_v59  ;;  %v974_v2 = vpop.permute.xlu1 %973 }
 0x12c   : > { %6833 = vmatpush3.bf16.msra.mxu1 %v7909_v51  ;;  %v792_v4 = vmax.f32 %v593_v0, 0.0  ;;  %v596_v1 = vadd.f32 %v8476_v38, %v595_v3  ;;  %v6543_v5 = vpop.f32.mrb[23].mxu0  ;;  %9906 = vst [vmem:[#allocation3_spill] sm:$0xff] %v8513_v11  ;;  %v8515_v15 = vld [vmem:[#allocation2 + $0x32] sm:$0xff]  ;;  %6703 = vmatpush3.bf16.msra.mxu0 %v7914_v59 }
 0x12d   : > { %6834 = vmatprep.subr.bf16.mxu1 %v7910_v62  ;;  %9907 = vst [vmem:[#allocation4_spill] sm:$0xff] %v8515_v15 }
 0x12e   : > { %v1191_v7 = vmul.f32 %v949_v6, %v792_v4  ;;  %v793_v8 = vmax.f32 %v596_v1, 0.0 }
 0x12f   : > { %v1390_v13 = vld [vmem:[#allocation2 + $0x39] sm:$0xff] }
 0x130   : > { %v2025_v14 = vld [vmem:[#allocation2 + $0x3a] sm:$0xff]  ;;  %6835 = vmatpush3.bf16.msra.mxu1 %v7910_v62  ;;  %1248 = vst [vmem:[#allocation2 + $0x50] sm:$0xff] %v1191_v7  ;;  %v1192_v16 = vmul.f32 %v954_v12, %v793_v8  ;;  %v1434_v17 = vpack.c.bf16 %v1390_v13, %v1389_v9  ;;  %v7916_v8 = vld [vmem:[%s9814_s4 + $0x10] sm:$0xff]  }
 0x131   : > { %v2069_v18 = vpack.c.bf16 %v2025_v14, %v2024_v10  ;;  %v8520_v20 = vld [vmem:[#allocation2 + $0x39] sm:$0xff]  ;;  %v600_v22 = vpop.f32.mrb[24].mxu0  ;;  %6836 = vmatprep.subr.bf16.mxu1 %v7911_v19  ;;  %v1391_v34 = vld [vmem:[#allocation2 + $0x41] sm:$0xff]  ;;  %6704 = vmatprep.subr.bf16.mxu0 %v7916_v8 }
 0x132   : > { %9908 = vst [vmem:[#allocation5_spill] sm:$0xff] %v8520_v20  ;;  %v8522_v21 = vld [vmem:[#allocation2 + $0x3a] sm:$0xff]  ;;  %1249 = vst [vmem:[#allocation2 + $0x58] sm:$0xff] %v1192_v16  ;;  %v601_v25 = vadd.f32 %v8476_v38, %v600_v22  ;;  %v6546_v26 = vpop.f32.mrb[25].mxu0  ;;  %6657 = vmatmul.mubr.bf16.gmra.mrb[120].mxu0 %v1434_v17  ;;  %v2026_v35 = vld [vmem:[#allocation2 + $0x42] sm:$0xff] }
 0x133   : > { %9909 = vst [vmem:[#allocation6_spill] sm:$0xff] %v8522_v21  ;;  %6785 = vmatmul.mubr.bf16.gmra.mrb[4].mxu1 %v2069_v18  ;;  %v603_v27 = vpop.f32.mrb[26].mxu0  ;;  %v8530_v36 = vld [vmem:[#allocation2 + $0x41] sm:$0xff]  ;;  %6705 = vmatpush3.bf16.msra.mxu0 %v7916_v8  ;;  %v7917_v26 = vld [vmem:[%s9814_s4 + $0x18] sm:$0xff]  }
 0x134   : > { %v794_v28 = vmax.f32 %v601_v25, 0.0  ;;  %v604_v29 = vadd.f32 %v8476_v38, %v603_v27  ;;  %v6547_v30 = vpop.f32.mrb[27].mxu0  ;;  %6837 = vmatpush3.bf16.msra.mxu1 %v7911_v19  ;;  %9910 = vst [vmem:[#allocation7_spill] sm:$0xff] %v8530_v36  ;;  %v8532_v42 = vld [vmem:[#allocation2 + $0x42] sm:$0xff]  ;;  %v979_v27 = vpop.permute.xlu0 %978  ;;  %6706 = vmatprep.subr.bf16.mxu0 %v7917_v26 }
 0x135   : > { %9911 = vst [vmem:[#allocation8_spill] sm:$0xff] %v8532_v42  ;;  %6838 = vmatprep.subr.bf16.mxu1 %v7912_v54 }
 0x136   : > { %v1193_v32 = vmul.f32 %v959_v31, %v794_v28  ;;  %v795_v33 = vmax.f32 %v604_v29, 0.0 }
 0x137   : > { %v1392_v39 = vld [vmem:[#allocation2 + $0x49] sm:$0xff]  ;;  %6707 = vmatpush3.bf16.msra.mxu0 %v7917_v26 }
 0x138   : > { %v2027_v40 = vld [vmem:[#allocation2 + $0x4a] sm:$0xff]  ;;  %1250 = vst [vmem:[#allocation2 + $0x60] sm:$0xff] %v1193_v32  ;;  %v1194_v43 = vmul.f32 %v964_v37, %v795_v33  ;;  %v1435_v44 = vpack.c.bf16 %v1392_v39, %v1391_v34  ;;  %6839 = vmatpush3.bf16.msra.mxu1 %v7912_v54  ;;  %v984_v32 = vpop.permute.xlu1 %983 }
 0x139   : > { %v2070_v45 = vpack.c.bf16 %v2027_v40, %v2026_v35  ;;  %v8537_v47 = vld [vmem:[#allocation2 + $0x49] sm:$0xff]  ;;  %v608_v49 = vpop.f32.mrb[28].mxu0  ;;  %v1393_v62 = vld [vmem:[#allocation2 + $0x51] sm:$0xff] }
 0x13a   : > { %9912 = vst [vmem:[#allocation9_spill] sm:$0xff] %v8537_v47  ;;  %v8539_v48 = vld [vmem:[#allocation2 + $0x4a] sm:$0xff]  ;;  %1251 = vst [vmem:[#allocation2 + $0x68] sm:$0xff] %v1194_v43  ;;  %v609_v52 = vadd.f32 %v8476_v38, %v608_v49  ;;  %v6550_v53 = vpop.f32.mrb[29].mxu0  ;;  %6660 = vmatprep.mubr.bf16.mxu0 %v1435_v44  ;;  %v2028_v63 = vld [vmem:[#allocation2 + $0x52] sm:$0xff] }
 0x13b   : > { %9913 = vst [vmem:[#allocation10_spill] sm:$0xff] %v8539_v48  ;;  %6788 = vmatprep.mubr.bf16.mxu1 %v2070_v45  ;;  %v611_v55 = vpop.f32.mrb[30].mxu0  ;;  %v8553_v0 = vld [vmem:[#allocation2 + $0x51] sm:$0xff]  ;;  %v7918_v44 = vld [vmem:[%s9814_s4 + $0x20] sm:$0xff]  }
 0x13c   : > { %v796_v56 = vmax.f32 %v609_v52, 0.0  ;;  %v612_v57 = vadd.f32 %v8476_v38, %v611_v55  ;;  %v6551_v58 = vpop.f32.mrb[31].mxu0  ;;  %9914 = vst [vmem:[#allocation11_spill] sm:$0xff] %v8553_v0  ;;  %v8555_v1 = vld [vmem:[#allocation2 + $0x52] sm:$0xff]  ;;  %6708 = vmatprep.subr.bf16.mxu0 %v7918_v44 }
 0x13d   : > { %9915 = vst [vmem:[#allocation12_spill] sm:$0xff] %v8555_v1  ;;  %v7915_v43 = vld [vmem:[%s9814_s4 + $0xf0] sm:$0xff]   ;;  %6709 = vmatpush3.bf16.msra.mxu0 %v7918_v44 }
 0x13e   : > { %v1195_v60 = vmul.f32 %v969_v41, %v796_v56  ;;  %v797_v61 = vmax.f32 %v612_v57, 0.0  ;;  %6840 = vmatprep.subr.bf16.mxu1 %v7915_v43 }
 0x13f   : > { %v1394_v3 = vld [vmem:[#allocation2 + $0x59] sm:$0xff]  ;;  %6841 = vmatpush3.bf16.msra.mxu1 %v7915_v43 }
 0x140   : > { %v2029_v4 = vld [vmem:[#allocation2 + $0x5a] sm:$0xff]  ;;  %1252 = vst [vmem:[#allocation2 + $0x70] sm:$0xff] %v1195_v60  ;;  %v1196_v5 = vmul.f32 %v974_v2, %v797_v61  ;;  %v1436_v6 = vpack.c.bf16 %v1394_v3, %v1393_v62  ;;  %v7920_v60 = vld [vmem:[%s9814_s4 + $0x28] sm:$0xff]   ;;  %v989_v61 = vpop.permute.xlu0 %988 }
 0x141   : > { %v2071_v7 = vpack.c.bf16 %v2029_v4, %v2028_v63  ;;  %v8560_v9 = vld [vmem:[#allocation2 + $0x59] sm:$0xff]  ;;  %v616_v12 = vpop.f32.mrb[32].mxu0  ;;  %v1395_v30 = vld [vmem:[#allocation2 + $0x61] sm:$0xff]  ;;  %6710 = vmatprep.subr.bf16.mxu0 %v7920_v60 }
 0x142   : > { %9916 = vst [vmem:[#allocation13_spill] sm:$0xff] %v8560_v9  ;;  %v8562_v10 = vld [vmem:[#allocation2 + $0x5a] sm:$0xff]  ;;  %1253 = vst [vmem:[#allocation2 + $0x78] sm:$0xff] %v1196_v5  ;;  %v617_v16 = vadd.f32 %v8476_v38, %v616_v12  ;;  %v6554_v17 = vpop.f32.mrb[33].mxu0  ;;  %6661 = vmatmul.mubr.bf16.gmra.mrb[124].mxu0 %v1436_v6  ;;  %v2030_v31 = vld [vmem:[#allocation2 + $0x62] sm:$0xff]  ;;  %v994_v5 = vpop.permute.xlu1 %993 }
 0x143   : > { %9917 = vst [vmem:[#allocation14_spill] sm:$0xff] %v8562_v10  ;;  %6789 = vmatmul.mubr.bf16.gmra.mrb[8].mxu1 %v2071_v7  ;;  %v619_v18 = vpop.f32.mrb[34].mxu0  ;;  %v8573_v35 = vld [vmem:[#allocation2 + $0x61] sm:$0xff]  ;;  %6711 = vmatpush3.bf16.msra.mxu0 %v7920_v60 }
 0x144   : > { %v798_v19 = vmax.f32 %v617_v16, 0.0  ;;  %v620_v22 = vadd.f32 %v8476_v38, %v619_v18  ;;  %v6555_v25 = vpop.f32.mrb[35].mxu0  ;;  %9918 = vst [vmem:[#allocation15_spill] sm:$0xff] %v8573_v35  ;;  %v8586_v54 = vld [vmem:[#allocation2 + $0x62] sm:$0xff]  ;;  %v7921_v18 = vld [vmem:[%s9814_s4 + $0x30] sm:$0xff]  }
 0x145   : > { %9920 = vst [vmem:[#allocation17_spill] sm:$0xff] %v8586_v54  ;;  %6712 = vmatprep.subr.bf16.mxu0 %v7921_v18 }
 0x146   : > { %v1197_v28 = vmul.f32 %v979_v27, %v798_v19  ;;  %v799_v29 = vmax.f32 %v620_v22, 0.0 }
 0x147   : > { %v1396_v33 = vld [vmem:[#allocation2 + $0x69] sm:$0xff]  ;;  %6713 = vmatpush3.bf16.msra.mxu0 %v7921_v18 }
 0x148   : > { %v2031_v34 = vld [vmem:[#allocation2 + $0x6a] sm:$0xff]  ;;  %1254 = vst [vmem:[#allocation2 + $0x80] sm:$0xff] %v1197_v28  ;;  %v1198_v37 = vmul.f32 %v984_v32, %v799_v29  ;;  %v1437_v39 = vpack.c.bf16 %v1396_v33, %v1395_v30  ;;  %v7919_v30 = vld [vmem:[%s9814_s4 + $0xf8] sm:$0xff]  }
 0x149   : > { %v2072_v40 = vpack.c.bf16 %v2031_v34, %v2030_v31  ;;  %v8581_v45 = vld [vmem:[#allocation2 + $0x69] sm:$0xff]  ;;  %v624_v46 = vpop.f32.mrb[36].mxu0  ;;  %v1397_v2 = vld [vmem:[#allocation2 + $0x71] sm:$0xff]  ;;  %6842 = vmatprep.subr.bf16.mxu1 %v7919_v30 }
 0x14a   : > { %9919 = vst [vmem:[#allocation16_spill] sm:$0xff] %v8581_v45  ;;  %1255 = vst [vmem:[#allocation2 + $0x88] sm:$0xff] %v1198_v37  ;;  %v625_v52 = vadd.f32 %v8476_v38, %v624_v46  ;;  %v6558_v53 = vpop.f32.mrb[37].mxu0  ;;  %6664 = vmatprep.mubr.bf16.mxu0 %v1437_v39  ;;  %v8588_v55 = vld [vmem:[#allocation2 + $0x6a] sm:$0xff]  ;;  %v2032_v3 = vld [vmem:[#allocation2 + $0x72] sm:$0xff]  ;;  %v999_v39 = vpop.permute.xlu0 %998  ;;  %6843 = vmatpush3.bf16.msra.mxu1 %v7919_v30 }
 0x14b   : > { %6792 = vmatprep.mubr.bf16.mxu1 %v2072_v40  ;;  %9921 = vst [vmem:[#allocation18_spill] sm:$0xff] %v8588_v55  ;;  %v627_v56 = vpop.f32.mrb[38].mxu0  ;;  %v8596_v4 = vld [vmem:[#allocation2 + $0x71] sm:$0xff] }
 0x14c   : > { %v800_v58 = vmax.f32 %v625_v52, 0.0  ;;  %v628_v59 = vadd.f32 %v8476_v38, %v627_v56  ;;  %v6559_v41 = vpop.f32.mrb[39].mxu0  ;;  %9922 = vst [vmem:[#allocation19_spill] sm:$0xff] %v8596_v4  ;;  %v8598_v8 = vld [vmem:[#allocation2 + $0x72] sm:$0xff]  ;;  %v1004_v52 = vpop.permute.xlu1 %1003 }
 0x14d   : > { %9923 = vst [vmem:[#allocation20_spill] sm:$0xff] %v8598_v8  ;;  %v7922_v37 = vld [vmem:[%s9814_s4 + $0x38] sm:$0xff]  }
 0x14e   : > { %v1199_v62 = vmul.f32 %v989_v61, %v800_v58  ;;  %v801_v63 = vmax.f32 %v628_v59, 0.0  ;;  %6714 = vmatprep.subr.bf16.mxu0 %v7922_v37 }
 0x14f   : > { %v1398_v6 = vld [vmem:[#allocation2 + $0x79] sm:$0xff]  ;;  %6715 = vmatpush3.bf16.msra.mxu0 %v7922_v37 }
 0x150   : > { %v2033_v7 = vld [vmem:[#allocation2 + $0x7a] sm:$0xff]  ;;  %1256 = vst [vmem:[#allocation2 + $0x90] sm:$0xff] %v1199_v62  ;;  %v1200_v12 = vmul.f32 %v994_v5, %v801_v63  ;;  %v1438_v16 = vpack.c.bf16 %v1398_v6, %v1397_v2 }
 0x151   : > { %v2073_v17 = vpack.c.bf16 %v2033_v7, %v2032_v3  ;;  %v8603_v19 = vld [vmem:[#allocation2 + $0x79] sm:$0xff]  ;;  %v632_v25 = vpop.f32.mrb[40].mxu0  ;;  %v1399_v44 = vld [vmem:[#allocation2 + $0x81] sm:$0xff] }
 0x152   : > { %9924 = vst [vmem:[#allocation21_spill] sm:$0xff] %v8603_v19  ;;  %v8605_v22 = vld [vmem:[#allocation2 + $0x7a] sm:$0xff]  ;;  %1257 = vst [vmem:[#allocation2 + $0x98] sm:$0xff] %v1200_v12  ;;  %v633_v28 = vadd.f32 %v8476_v38, %v632_v25  ;;  %v6562_v29 = vpop.f32.mrb[41].mxu0  ;;  %6665 = vmatmul.mubr.bf16.gmra.mrb[128].mxu0 %v1438_v16  ;;  %v2034_v46 = vld [vmem:[#allocation2 + $0x82] sm:$0xff]  ;;  %v1009_v25 = vpop.permute.xlu0 %1008 }
 0x153   : > { %9925 = vst [vmem:[#allocation22_spill] sm:$0xff] %v8605_v22  ;;  %6793 = vmatmul.mubr.bf16.gmra.mrb[12].mxu1 %v2073_v17  ;;  %v635_v31 = vpop.f32.mrb[42].mxu0  ;;  %v8619_v58 = vld [vmem:[#allocation2 + $0x81] sm:$0xff] }
 0x154   : > { %v802_v32 = vmax.f32 %v633_v28, 0.0  ;;  %v636_v33 = vadd.f32 %v8476_v38, %v635_v31  ;;  %v6563_v34 = vpop.f32.mrb[43].mxu0  ;;  %9926 = vst [vmem:[#allocation23_spill] sm:$0xff] %v8619_v58  ;;  %v8623_v62 = vld [vmem:[#allocation2 + $0x82] sm:$0xff] }
 0x155   : > { %9928 = vst [vmem:[#allocation25_spill] sm:$0xff] %v8623_v62 }
 0x156   : > { %v1201_v40 = vmul.f32 %v999_v39, %v802_v32  ;;  %v803_v43 = vmax.f32 %v636_v33, 0.0  ;;  %v1014_v33 = vpop.permute.xlu1 %1013 }
 0x157   : > { %v1400_v53 = vld [vmem:[#allocation2 + $0x89] sm:$0xff] }
 0x158   : > { %v2035_v56 = vld [vmem:[#allocation2 + $0x8a] sm:$0xff]  ;;  %1258 = vst [vmem:[#allocation2 + $0xa0] sm:$0xff] %v1201_v40  ;;  %v1202_v59 = vmul.f32 %v1004_v52, %v803_v43  ;;  %v1439_v41 = vpack.c.bf16 %v1400_v53, %v1399_v44 }
 0x159   : > { %v2074_v60 = vpack.c.bf16 %v2035_v56, %v2034_v46  ;;  %v8621_v61 = vld [vmem:[#allocation2 + $0x89] sm:$0xff]  ;;  %v640_v2 = vpop.f32.mrb[44].mxu0  ;;  %v1401_v30 = vld [vmem:[#allocation2 + $0x91] sm:$0xff]  ;;  %v8642_v46 = vld [vmem:[%s9814_s4 + $0x100] sm:$0xff]  }
 0x15a   : > { %9927 = vst [vmem:[#allocation24_spill] sm:$0xff] %v8621_v61  ;;  %v8625_v63 = vld [vmem:[#allocation2 + $0x8a] sm:$0xff]  ;;  %1259 = vst [vmem:[#allocation2 + $0xa8] sm:$0xff] %v1202_v59  ;;  %v641_v6 = vadd.f32 %v8476_v38, %v640_v2  ;;  %v6566_v7 = vpop.f32.mrb[45].mxu0  ;;  %6668 = vmatprep.mubr.bf16.mxu0 %v1439_v41  ;;  %v2036_v31 = vld [vmem:[#allocation2 + $0x92] sm:$0xff]  ;;  %6892 = vmatprep.subr.bf16.mxu1 %v8642_v46 }
 0x15b   : > { %9929 = vst [vmem:[#allocation26_spill] sm:$0xff] %v8625_v63  ;;  %6796 = vmatprep.mubr.bf16.mxu1 %v2074_v60  ;;  %v643_v12 = vpop.f32.mrb[46].mxu0  ;;  %v8633_v32 = vld [vmem:[#allocation2 + $0x91] sm:$0xff] }
 0x15c   : > { %v804_v16 = vmax.f32 %v641_v6, 0.0  ;;  %v644_v17 = vadd.f32 %v8476_v38, %v643_v12  ;;  %v6567_v18 = vpop.f32.mrb[47].mxu0  ;;  %9930 = vst [vmem:[#allocation27_spill] sm:$0xff] %v8633_v32  ;;  %v8635_v39 = vld [vmem:[#allocation2 + $0x92] sm:$0xff] }
 0x15d   : > { %9931 = vst [vmem:[#allocation28_spill] sm:$0xff] %v8635_v39 }
 0x15e   : > { %v1203_v28 = vmul.f32 %v1009_v25, %v804_v16  ;;  %v805_v29 = vmax.f32 %v644_v17, 0.0  ;;  %v1019_v17 = vpop.permute.xlu0 %1018 }
 0x15f   : > { %v1402_v34 = vld [vmem:[#allocation2 + $0x99] sm:$0xff] }
 0x160   : > { %v2037_v37 = vld [vmem:[#allocation2 + $0x9a] sm:$0xff]  ;;  %1260 = vst [vmem:[#allocation2 + $0xb0] sm:$0xff] %v1203_v28  ;;  %v8637_v40 = vmul.f32 %v1014_v33, %v805_v29  ;;  %v1440_v43 = vpack.c.bf16 %v1402_v34, %v1401_v30  ;;  %v1024_v30 = vpop.permute.xlu1 %1023 }
 0x161   : > { %v2075_v44 = vpack.c.bf16 %v2037_v37, %v2036_v31  ;;  %v8644_v52 = vld [vmem:[#allocation2 + $0x99] sm:$0xff]  ;;  %v648_v56 = vpop.f32.mrb[48].mxu0  ;;  %v1403_v28 = vld [vmem:[#allocation2 + $0xa1] sm:$0xff] }
 0x162   : > { %9932 = vst [vmem:[#allocation29_spill] sm:$0xff] %v8644_v52  ;;  %v8646_v53 = vld [vmem:[#allocation2 + $0x9a] sm:$0xff]  ;;  %1261 = vst [vmem:[#allocation2 + $0xb8] sm:$0xff] %v8637_v40  ;;  %v649_v60 = vadd.f32 %v8476_v38, %v648_v56  ;;  %v6570_v2 = vpop.f32.mrb[49].mxu0  ;;  %6669 = vmatmul.mubr.bf16.gmra.mrb[132].mxu0 %v1440_v43  ;;  %v2038_v29 = vld [vmem:[#allocation2 + $0xa2] sm:$0xff]  ;;  %v1029_v41 = vpop.permute.xlu0 %1028 }
 0x163   : > { %9933 = vst [vmem:[#allocation30_spill] sm:$0xff] %v8646_v53  ;;  %6797 = vmatmul.mubr.bf16.gmra.mrb[16].mxu1 %v2075_v44  ;;  %v651_v6 = vpop.f32.mrb[50].mxu0  ;;  %v8658_v34 = vld [vmem:[#allocation2 + $0xa1] sm:$0xff] }
 0x164   : > { %v806_v7 = vmax.f32 %v649_v60, 0.0  ;;  %v652_v12 = vadd.f32 %v8476_v38, %v651_v6  ;;  %v6571_v16 = vpop.f32.mrb[51].mxu0  ;;  %9934 = vst [vmem:[#allocation31_spill] sm:$0xff] %v8658_v34  ;;  %v8667_v2 = vld [vmem:[#allocation2 + $0xa2] sm:$0xff]  ;;  %v1034_v14 = vpop.permute.xlu1 %1033 }
 0x165   : > { %9936 = vst [vmem:[#allocation33_spill] sm:$0xff] %v8667_v2 }
 0x166   : > { %v8656_v18 = vmul.f32 %v1019_v17, %v806_v7  ;;  %v807_v25 = vmax.f32 %v652_v12, 0.0  ;;  %v1039_v3 = vpop.permute.xlu0 %1038 }
 0x167   : > { %v1404_v31 = vld [vmem:[#allocation2 + $0xa9] sm:$0xff] }
 0x168   : > { %v2039_v33 = vld [vmem:[#allocation2 + $0xaa] sm:$0xff]  ;;  %1262 = vst [vmem:[#allocation2 + $0xc0] sm:$0xff] %v8656_v18  ;;  %v8661_v37 = vmul.f32 %v1024_v30, %v807_v25  ;;  %v1441_v43 = vpack.c.bf16 %v1404_v31, %v1403_v28  ;;  %v1044_v13 = vpop.permute.xlu1 %1043 }
 0x169   : > { %v2076_v44 = vpack.c.bf16 %v2039_v33, %v2038_v29  ;;  %v8665_v60 = vld [vmem:[#allocation2 + $0xa9] sm:$0xff]  ;;  %v656_v7 = vpop.f32.mrb[52].mxu0  ;;  %v1405_v16 = vld [vmem:[#allocation2 + $0xb1] sm:$0xff] }
 0x16a   : > { %9935 = vst [vmem:[#allocation32_spill] sm:$0xff] %v8665_v60  ;;  %v8669_v6 = vld [vmem:[#allocation2 + $0xaa] sm:$0xff]  ;;  %1263 = vst [vmem:[#allocation2 + $0xc8] sm:$0xff] %v8661_v37  ;;  %v657_v17 = vadd.f32 %v8476_v38, %v656_v7  ;;  %v6574_v25 = vpop.f32.mrb[53].mxu0  ;;  %6672 = vmatprep.mubr.bf16.mxu0 %v1441_v43  ;;  %v2040_v57 = vld [vmem:[#allocation2 + $0xb2] sm:$0xff]  ;;  %v1049_v28 = vpop.permute.xlu0 %1048 }
 0x16b   : > { %9937 = vst [vmem:[#allocation34_spill] sm:$0xff] %v8669_v6  ;;  %6800 = vmatprep.mubr.bf16.mxu1 %v2076_v44  ;;  %v659_v29 = vpop.f32.mrb[54].mxu0 }
 0x16c   : > { %v808_v30 = vmax.f32 %v657_v17, 0.0  ;;  %v660_v31 = vadd.f32 %v8476_v38, %v659_v29  ;;  %v6575_v33 = vpop.f32.mrb[55].mxu0 }
 0x16d   : > { %v8689_v33 = vld [vmem:[#allocation2 + $0xb1] sm:$0xff] }
 0x16e   : > { %v8680_v5 = vmul.f32 %v1029_v41, %v808_v30  ;;  %v809_v27 = vmax.f32 %v660_v31, 0.0  ;;  %9939 = vst [vmem:[#allocation36_spill] sm:$0xff] %v8689_v33  ;;  %v8691_v41 = vld [vmem:[#allocation2 + $0xb2] sm:$0xff] }
 0x16f   : > { %v1406_v51 = vld [vmem:[#allocation2 + $0xb9] sm:$0xff]  ;;  %9940 = vst [vmem:[#allocation37_spill] sm:$0xff] %v8691_v41 }
 0x170   : > { %v2041_v7 = vld [vmem:[#allocation2 + $0xba] sm:$0xff]  ;;  %1264 = vst [vmem:[#allocation2 + $0xd0] sm:$0xff] %v8680_v5  ;;  %v8685_v43 = vmul.f32 %v1034_v14, %v809_v27  ;;  %v1442_v44 = vpack.c.bf16 %v1406_v51, %v1405_v16 }
 0x171   : > { %v8682_v25 = vld [vmem:[#allocation2 + $0xb9] sm:$0xff]  ;;  %v2077_v17 = vpack.c.bf16 %v2041_v7, %v2040_v57  ;;  %v664_v31 = vpop.f32.mrb[56].mxu0  ;;  %v1407_v12 = vld [vmem:[#allocation2 + $0xc1] sm:$0xff] }
 0x172   : > { %9938 = vst [vmem:[#allocation35_spill] sm:$0xff] %v8682_v25  ;;  %v8693_v30 = vld [vmem:[#allocation2 + $0xba] sm:$0xff]  ;;  %1265 = vst [vmem:[#allocation2 + $0xd8] sm:$0xff] %v8685_v43  ;;  %v665_v51 = vadd.f32 %v8476_v38, %v664_v31  ;;  %v6578_v14 = vpop.f32.mrb[57].mxu0  ;;  %6673 = vmatmul.mubr.bf16.gmra.mrb[136].mxu0 %v1442_v44  ;;  %v2042_v49 = vld [vmem:[#allocation2 + $0xc2] sm:$0xff] }
 0x173   : > { %9941 = vst [vmem:[#allocation38_spill] sm:$0xff] %v8693_v30  ;;  %6801 = vmatmul.mubr.bf16.gmra.mrb[20].mxu1 %v2077_v17  ;;  %v667_v27 = vpop.f32.mrb[58].mxu0  ;;  %v1059_v30 = vpop.permute.xlu0 %1058 }
 0x174   : > { %v810_v16 = vmax.f32 %v665_v51, 0.0  ;;  %v668_v7 = vadd.f32 %v8476_v38, %v667_v27  ;;  %v6579_v59 = vpop.f32.mrb[59].mxu0  ;;  %v8713_v27 = vld [vmem:[#allocation2 + $0xc1] sm:$0xff] }
 0x175   : > { %9943 = vst [vmem:[#allocation40_spill] sm:$0xff] %v8713_v27 }
 0x176   : > { %v8704_v24 = vmul.f32 %v1039_v3, %v810_v16  ;;  %v811_v26 = vmax.f32 %v668_v7, 0.0  ;;  %v8715_v3 = vld [vmem:[#allocation2 + $0xc2] sm:$0xff] }
 0x177   : > { %v1408_v50 = vld [vmem:[#allocation2 + $0xc9] sm:$0xff]  ;;  %9944 = vst [vmem:[#allocation41_spill] sm:$0xff] %v8715_v3  ;;  %v1054_v3 = vpop.permute.xlu1 %1053  ;;  %v1069_v53 = vpop.permute.xlu0 %1068 }
 0x178   : > { %v2043_v31 = vld [vmem:[#allocation2 + $0xca] sm:$0xff]  ;;  %1266 = vst [vmem:[#allocation2 + $0xe0] sm:$0xff] %v8704_v24  ;;  %v8709_v44 = vmul.f32 %v1044_v13, %v811_v26  ;;  %v1443_v17 = vpack.c.bf16 %v1408_v50, %v1407_v12 }
 0x179   : > { %v8706_v14 = vld [vmem:[#allocation2 + $0xc9] sm:$0xff]  ;;  %v2078_v51 = vpack.c.bf16 %v2043_v31, %v2042_v49  ;;  %v672_v7 = vpop.f32.mrb[60].mxu0  ;;  %v1409_v57 = vld [vmem:[#allocation2 + $0xd1] sm:$0xff] }
 0x17a   : > { %9942 = vst [vmem:[#allocation39_spill] sm:$0xff] %v8706_v14  ;;  %v8717_v16 = vld [vmem:[#allocation2 + $0xca] sm:$0xff]  ;;  %1267 = vst [vmem:[#allocation2 + $0xe8] sm:$0xff] %v8709_v44  ;;  %v673_v50 = vadd.f32 %v8476_v38, %v672_v7  ;;  %v6582_v13 = vpop.f32.mrb[61].mxu0  ;;  %6676 = vmatprep.mubr.bf16.mxu0 %v1443_v17  ;;  %v2044_v56 = vld [vmem:[#allocation2 + $0xd2] sm:$0xff] }
 0x17b   : > { %9945 = vst [vmem:[#allocation42_spill] sm:$0xff] %v8717_v16  ;;  %6804 = vmatprep.mubr.bf16.mxu1 %v2078_v51  ;;  %v675_v26 = vpop.f32.mrb[62].mxu0 }
 0x17c   : > { %v812_v12 = vmax.f32 %v673_v50, 0.0  ;;  %v676_v31 = vadd.f32 %v8476_v38, %v675_v26  ;;  %v6583_v59 = vpop.f32.mrb[63].mxu0  ;;  %v8737_v26 = vld [vmem:[#allocation2 + $0xd1] sm:$0xff] }
 0x17e   : > { %v8728_v23 = vmul.f32 %v1049_v28, %v812_v12  ;;  %v813_v29 = vmax.f32 %v676_v31, 0.0  ;;  %v8739_v28 = vld [vmem:[#allocation2 + $0xd2] sm:$0xff] }
 0x17f   : > { %v1410_v16 = vld [vmem:[#allocation2 + $0xd9] sm:$0xff]  ;;  %9946 = vst [vmem:[#allocation43_spill] sm:$0xff] %v8739_v28 }
 0x180   : > { %v2045_v7 = vld [vmem:[#allocation2 + $0xda] sm:$0xff]  ;;  %1268 = vst [vmem:[#allocation2 + $0xf0] sm:$0xff] %v8728_v23  ;;  %v8733_v17 = vmul.f32 %v1054_v3, %v813_v29  ;;  %v1444_v51 = vpack.c.bf16 %v1410_v16, %v1409_v57 }
 0x181   : > { %v8730_v13 = vld [vmem:[#allocation2 + $0xd9] sm:$0xff]  ;;  %v2079_v50 = vpack.c.bf16 %v2045_v7, %v2044_v56  ;;  %v680_v31 = vpop.f32.mrb[64].mxu0  ;;  %v1411_v41 = vld [vmem:[#allocation2 + $0xe1] sm:$0xff] }
 0x182   : > { %v8741_v12 = vld [vmem:[#allocation2 + $0xda] sm:$0xff]  ;;  %1269 = vst [vmem:[#allocation2 + $0xf8] sm:$0xff] %v8733_v17  ;;  %v681_v56 = vadd.f32 %v8476_v38, %v680_v31  ;;  %v6586_v29 = vpop.f32.mrb[65].mxu0  ;;  %6677 = vmatmul.mubr.bf16.gmra.mrb[140].mxu0 %v1444_v51  ;;  %v2046_v28 = vld [vmem:[#allocation2 + $0xe2] sm:$0xff] }
 0x183   : > { %9947 = vst [vmem:[#allocation44_spill] sm:$0xff] %v8741_v12  ;;  %6805 = vmatmul.mubr.bf16.gmra.mrb[24].mxu1 %v2079_v50  ;;  %v683_v3 = vpop.f32.mrb[66].mxu0  ;;  %v1064_v12 = vpop.permute.xlu1 %1063 }
 0x184   : > { %v814_v16 = vmax.f32 %v681_v56, 0.0  ;;  %v684_v7 = vadd.f32 %v8476_v38, %v683_v3  ;;  %v6587_v59 = vpop.f32.mrb[67].mxu0  ;;  %v8761_v3 = vld [vmem:[#allocation2 + $0xe1] sm:$0xff] }
 0x186   : > { %v8752_v49 = vmul.f32 %v1059_v30, %v814_v16  ;;  %v815_v2 = vmax.f32 %v684_v7, 0.0  ;;  %v8763_v30 = vld [vmem:[#allocation2 + $0xe2] sm:$0xff] }
 0x187   : > { %v1412_v6 = vld [vmem:[#allocation2 + $0xe9] sm:$0xff]  ;;  %9948 = vst [vmem:[#allocation45_spill] sm:$0xff] %v8763_v30 }
 0x188   : > { %v2047_v31 = vld [vmem:[#allocation2 + $0xea] sm:$0xff]  ;;  %1270 = vst [vmem:[#allocation2 + $0x100] sm:$0xff] %v8752_v49  ;;  %v8757_v51 = vmul.f32 %v1064_v12, %v815_v2  ;;  %v1445_v50 = vpack.c.bf16 %v1412_v6, %v1411_v41 }
 0x189   : > { %v8754_v29 = vld [vmem:[#allocation2 + $0xe9] sm:$0xff]  ;;  %v2080_v56 = vpack.c.bf16 %v2047_v31, %v2046_v28  ;;  %v688_v7 = vpop.f32.mrb[68].mxu0  ;;  %v1413_v39 = vld [vmem:[#allocation2 + $0xf1] sm:$0xff] }
 0x18a   : > { %v8765_v16 = vld [vmem:[#allocation2 + $0xea] sm:$0xff]  ;;  %1271 = vst [vmem:[#allocation2 + $0x108] sm:$0xff] %v8757_v51  ;;  %v689_v2 = vadd.f32 %v8476_v38, %v688_v7  ;;  %v6590_v6 = vpop.f32.mrb[69].mxu0  ;;  %6680 = vmatprep.mubr.bf16.mxu0 %v1445_v50  ;;  %v2048_v30 = vld [vmem:[#allocation2 + $0xf2] sm:$0xff] }
 0x18b   : > { %9949 = vst [vmem:[#allocation46_spill] sm:$0xff] %v8765_v16  ;;  %6808 = vmatprep.mubr.bf16.mxu1 %v2080_v56  ;;  %v691_v28 = vpop.f32.mrb[70].mxu0  ;;  %v1074_v16 = vpop.permute.xlu1 %1073 }
 0x18c   : > { %v816_v12 = vmax.f32 %v689_v2, 0.0  ;;  %v692_v31 = vadd.f32 %v8476_v38, %v691_v28  ;;  %v6591_v59 = vpop.f32.mrb[71].mxu0  ;;  %v1079_v38 = vpop.permute.xlu0 %1078 }
 0x18d   : > { %v8785_v59 = vld [vmem:[#allocation2 + $0xf1] sm:$0xff] }
 0x18e   : > { %v8776_v57 = vmul.f32 %v1069_v53, %v816_v12  ;;  %v817_v62 = vmax.f32 %v692_v31, 0.0  ;;  %v8787_v53 = vld [vmem:[#allocation2 + $0xf2] sm:$0xff] }
 0x18f   : > { %v1414_v63 = vld [vmem:[#allocation2 + $0xf9] sm:$0xff]  ;;  %9950 = vst [vmem:[#allocation47_spill] sm:$0xff] %v8787_v53  ;;  %v1084_v54 = vpop.permute.xlu1 %1083 }
 0x190   : > { %v2049_v7 = vld [vmem:[#allocation2 + $0xfa] sm:$0xff]  ;;  %1272 = vst [vmem:[#allocation2 + $0x110] sm:$0xff] %v8776_v57  ;;  %v8781_v50 = vmul.f32 %v1074_v16, %v817_v62  ;;  %v1446_v56 = vpack.c.bf16 %v1414_v63, %v1413_v39  ;;  %v1089_v10 = vpop.permute.xlu0 %1088 }
 0x191   : > { %v8778_v6 = vld [vmem:[#allocation2 + $0xf9] sm:$0xff]  ;;  %v2081_v2 = vpack.c.bf16 %v2049_v7, %v2048_v30  ;;  %v696_v12 = vpop.f32.mrb[72].mxu0  ;;  %v1415_v8 = vld [vmem:[#allocation2 + $0x101] sm:$0xff] }
 0x192   : > { %v8789_v28 = vld [vmem:[#allocation2 + $0xfa] sm:$0xff]  ;;  %1273 = vst [vmem:[#allocation2 + $0x118] sm:$0xff] %v8781_v50  ;;  %v6594_v39 = vpop.f32.mrb[73].mxu0  ;;  %6681 = vmatmul.mubr.bf16.gmra.mrb[144].mxu0 %v1446_v56  ;;  %v2050_v22 = vld [vmem:[#allocation2 + $0x102] sm:$0xff] }
 0x193   : > { %9951 = vst [vmem:[#allocation48_spill] sm:$0xff] %v8789_v28  ;;  %v8799_v62 = vld [vmem:[%s9813_s3] ss:$0 sm:$0xff]  ;;  %6809 = vmatmul.mubr.bf16.gmra.mrb[28].mxu1 %v2081_v2  ;;  %v699_v16 = vpop.f32.mrb[74].mxu0  ;;  %v1094_v48 = vpop.permute.xlu1 %1093 }
 0x194   : > { %v697_v63 = vadd.f32 %v8799_v62, %v696_v12  ;;  %v700_v31 = vadd.f32 %v8799_v62, %v699_v16  ;;  %v6595_v41 = vpop.f32.mrb[75].mxu0  ;;  %v8814_v16 = vld [vmem:[#allocation2 + $0x101] sm:$0xff]  ;;  %v1099_v27 = vpop.permute.xlu0 %1098 }
 0x196   : > { %v818_v7 = vmax.f32 %v697_v63, 0.0  ;;  %v819_v28 = vmax.f32 %v700_v31, 0.0 }
 0x197   : > { %v1416_v55 = vld [vmem:[#allocation2 + $0x109] sm:$0xff]  ;;  %v1104_v33 = vpop.permute.xlu1 %1103 }
 0x198   : > { %v8805_v53 = vmul.f32 %v1079_v38, %v818_v7  ;;  %v2051_v12 = vld [vmem:[#allocation2 + $0x10a] sm:$0xff]  ;;  %v8810_v56 = vmul.f32 %v1084_v54, %v819_v28  ;;  %v1447_v2 = vpack.c.bf16 %v1416_v55, %v1415_v8  ;;  %v8816_v38 = vld [vmem:[#allocation2 + $0x102] sm:$0xff]  ;;  %v1109_v34 = vpop.permute.xlu0 %1108 }
 0x199   : > { %v8807_v39 = vld [vmem:[#allocation2 + $0x109] sm:$0xff]  ;;  %v2082_v63 = vpack.c.bf16 %v2051_v12, %v2050_v22  ;;  %9952 = vst [vmem:[#allocation49_spill] sm:$0xff] %v8816_v38  ;;  %v704_v7 = vpop.f32.mrb[76].mxu0  ;;  %v1417_v1 = vld [vmem:[#allocation2 + $0x111] sm:$0xff] }
 0x19a   : > { %1274 = vst [vmem:[#allocation2 + $0x120] sm:$0xff] %v8805_v53  ;;  %v8818_v31 = vld [vmem:[#allocation2 + $0x10a] sm:$0xff]  ;;  %1275 = vst [vmem:[#allocation2 + $0x128] sm:$0xff] %v8810_v56  ;;  %v705_v54 = vadd.f32 %v8799_v62, %v704_v7  ;;  %v6598_v55 = vpop.f32.mrb[77].mxu0  ;;  %6684 = vmatprep.mubr.bf16.mxu0 %v1447_v2 }
 0x19b   : > { %9953 = vst [vmem:[#allocation50_spill] sm:$0xff] %v8818_v31  ;;  %6812 = vmatprep.mubr.bf16.mxu1 %v2082_v63  ;;  %v707_v22 = vpop.f32.mrb[78].mxu0  ;;  %v2052_v31 = vld [vmem:[#allocation2 + $0x112] sm:$0xff]  ;;  %v1114_v58 = vpop.permute.xlu1 %1113 }
 0x19c   : > { %v820_v28 = vmax.f32 %v705_v54, 0.0  ;;  %v708_v12 = vadd.f32 %v8799_v62, %v707_v22  ;;  %v6599_v41 = vpop.f32.mrb[79].mxu0  ;;  %v8838_v22 = vld [vmem:[#allocation2 + $0x111] sm:$0xff]  ;;  %v1119_v35 = vpop.permute.xlu0 %1118 }
 0x19e   : > { %v8829_v30 = vmul.f32 %v1089_v10, %v820_v28  ;;  %v821_v42 = vmax.f32 %v708_v12, 0.0  ;;  %v8840_v10 = vld [vmem:[#allocation2 + $0x112] sm:$0xff] }
 0x19f   : > { %9954 = vst [vmem:[#allocation51_spill] sm:$0xff] %v8840_v10 }
 0x1a0   : > { %1276 = vst [vmem:[#allocation2 + $0x130] sm:$0xff] %v8829_v30  ;;  %v8834_v2 = vmul.f32 %v1094_v48, %v821_v42  ;;  %v1129_v11 = vpop.permute.xlu0 %1128 }
 0x1a1   : > { %v1418_v15 = vld [vmem:[#allocation2 + $0x119] sm:$0xff]  ;;  %v712_v12 = vpop.f32.mrb[80].mxu0  ;;  %v8855_v21 = vld [vmem:[#allocation2 + $0x121] sm:$0xff] }
 0x1a2   : > { %v2053_v7 = vld [vmem:[#allocation2 + $0x11a] sm:$0xff]  ;;  %v1448_v63 = vpack.c.bf16 %v1418_v15, %v1417_v1  ;;  %1277 = vst [vmem:[#allocation2 + $0x138] sm:$0xff] %v8834_v2  ;;  %v713_v15 = vadd.f32 %v8799_v62, %v712_v12  ;;  %v6602_v42 = vpop.f32.mrb[81].mxu0  ;;  %v2054_v12 = vld [vmem:[#allocation2 + $0x122] sm:$0xff] }
 0x1a3   : > { %v8831_v55 = vld [vmem:[#allocation2 + $0x119] sm:$0xff]  ;;  %v2083_v54 = vpack.c.bf16 %v2053_v7, %v2052_v31  ;;  %v715_v1 = vpop.f32.mrb[82].mxu0 }
 0x1a4   : > { %v8842_v28 = vld [vmem:[#allocation2 + $0x11a] sm:$0xff]  ;;  %6685 = vmatmul.mubr.bf16.gmra.mrb[148].mxu0 %v1448_v63  ;;  %v822_v31 = vmax.f32 %v713_v15, 0.0  ;;  %v716_v7 = vadd.f32 %v8799_v62, %v715_v1  ;;  %v6603_v41 = vpop.f32.mrb[83].mxu0  ;;  %v8863_v1 = vld [vmem:[#allocation2 + $0x122] sm:$0xff] }
 0x1a5   : > { %9955 = vst [vmem:[#allocation52_spill] sm:$0xff] %v8842_v28  ;;  %6813 = vmatmul.mubr.bf16.gmra.mrb[32].mxu1 %v2083_v54  ;;  %9956 = vst [vmem:[#allocation53_spill] sm:$0xff] %v8863_v1 }
 0x1a6   : > { %v8853_v8 = vmul.f32 %v1099_v27, %v822_v31  ;;  %v823_v14 = vmax.f32 %v716_v7, 0.0 }
 0x1a7   : > { %v1420_v25 = vld [vmem:[#allocation2 + $0x129] sm:$0xff] }
 0x1a8   : > { %v2055_v42 = vld [vmem:[#allocation2 + $0x12a] sm:$0xff]  ;;  %1278 = vst [vmem:[#allocation2 + $0x140] sm:$0xff] %v8853_v8  ;;  %v8858_v63 = vmul.f32 %v1104_v33, %v823_v14  ;;  %v1449_v54 = vpack.c.bf16 %v1420_v25, %v8855_v21 }
 0x1a9   : > { %v2084_v15 = vpack.c.bf16 %v2055_v42, %v2054_v12  ;;  %v8865_v27 = vld [vmem:[#allocation2 + $0x12a] sm:$0xff]  ;;  %v720_v31 = vpop.f32.mrb[84].mxu0  ;;  %v2056_v52 = vld [vmem:[#allocation2 + $0x132] sm:$0xff] }
 0x1aa   : > { %9957 = vst [vmem:[#allocation54_spill] sm:$0xff] %v8865_v27  ;;  %1279 = vst [vmem:[#allocation2 + $0x148] sm:$0xff] %v8858_v63  ;;  %v721_v48 = vadd.f32 %v8799_v62, %v720_v31  ;;  %v6606_v33 = vpop.f32.mrb[85].mxu0  ;;  %6688 = vmatprep.mubr.bf16.mxu0 %v1449_v54  ;;  %v8876_v7 = vld [vmem:[#allocation2 + $0x131] sm:$0xff]  ;;  %v1139_v27 = vpop.permute.xlu0 %1138 }
 0x1ab   : > { %6816 = vmatprep.mubr.bf16.mxu1 %v2084_v15  ;;  %v723_v14 = vpop.f32.mrb[86].mxu0  ;;  %9958 = vst [vmem:[#allocation55_spill] sm:$0xff] %v8876_v7 }
 0x1ac   : > { %v824_v12 = vmax.f32 %v721_v48, 0.0  ;;  %v724_v42 = vadd.f32 %v8799_v62, %v723_v14  ;;  %v6607_v41 = vpop.f32.mrb[87].mxu0  ;;  %v8889_v14 = vld [vmem:[#allocation2 + $0x132] sm:$0xff] }
 0x1ad   : > { %9961 = vst [vmem:[#allocation58_spill] sm:$0xff] %v8889_v14 }
 0x1ae   : > { %v8874_v60 = vmul.f32 %v1109_v34, %v824_v12  ;;  %v825_v32 = vmax.f32 %v724_v42, 0.0  ;;  %v1149_v10 = vpop.permute.xlu0 %1148 }
 0x1af   : > { %v8878_v31 = vld [vmem:[#allocation2 + $0x139] sm:$0xff] }
 0x1b0   : > { %9959 = vst [vmem:[#allocation56_spill] sm:$0xff] %v8878_v31  ;;  %v2057_v54 = vld [vmem:[#allocation2 + $0x13a] sm:$0xff]  ;;  %1280 = vst [vmem:[#allocation2 + $0x150] sm:$0xff] %v8874_v60  ;;  %v8883_v33 = vmul.f32 %v1114_v58, %v825_v32  ;;  %v1450_v48 = vpack.c.bf16 %v8878_v31, %v8876_v7  ;;  %v1297_v31 = vld [vmem:[#allocation2 + $0x10] sm:$0xff] }
 0x1b1   : > { %v8880_v15 = vld [vmem:[#allocation2 + $0x13a] sm:$0xff]  ;;  %v2085_v41 = vpack.c.bf16 %v2057_v54, %v2056_v52  ;;  %v728_v12 = vpop.f32.mrb[88].mxu0  ;;  %v2058_v0 = vld [vmem:[#allocation2 + $0x142] sm:$0xff] }
 0x1b2   : > { %9960 = vst [vmem:[#allocation57_spill] sm:$0xff] %v8880_v15  ;;  %v8891_v42 = vld [vmem:[#allocation2 + $0x141] sm:$0xff]  ;;  %1281 = vst [vmem:[#allocation2 + $0x158] sm:$0xff] %v8883_v33  ;;  %v729_v58 = vadd.f32 %v8799_v62, %v728_v12  ;;  %v6610_v32 = vpop.f32.mrb[89].mxu0  ;;  %6689 = vmatmul.mubr.bf16.gmra.mrb[152].mxu0 %v1450_v48  ;;  %v1124_v12 = vpop.permute.xlu1 %1123 }
 0x1b3   : > { %9962 = vst [vmem:[#allocation59_spill] sm:$0xff] %v8891_v42  ;;  %6817 = vmatmul.mubr.bf16.gmra.mrb[36].mxu1 %v2085_v41  ;;  %v731_v34 = vpop.f32.mrb[90].mxu0  ;;  %v2430_v7 = vld [vmem:[#allocation2 + $0x28] sm:$0xff] }
 0x1b4   : > { %v826_v61 = vmax.f32 %v729_v58, 0.0  ;;  %v732_v4 = vadd.f32 %v8799_v62, %v731_v34  ;;  %v6611_v19 = vpop.f32.mrb[91].mxu0 }
 0x1b5   : > { %v8915_v19 = vld [vmem:[#allocation2 + $0x142] sm:$0xff] }
 0x1b6   : > { %v8902_v25 = vmul.f32 %v1119_v35, %v826_v61  ;;  %v827_v45 = vmax.f32 %v732_v4, 0.0  ;;  %9965 = vst [vmem:[#allocation62_spill] sm:$0xff] %v8915_v19 }
 0x1b7   : > { %v8904_v32 = vld [vmem:[#allocation2 + $0x149] sm:$0xff] }
 0x1b8   : > { %9963 = vst [vmem:[#allocation60_spill] sm:$0xff] %v8904_v32  ;;  %v2059_v48 = vld [vmem:[#allocation2 + $0x14a] sm:$0xff]  ;;  %1282 = vst [vmem:[#allocation2 + $0x160] sm:$0xff] %v8902_v25  ;;  %v8909_v52 = vmul.f32 %v1124_v12, %v827_v45  ;;  %v1451_v58 = vpack.c.bf16 %v8904_v32, %v8891_v42 }
 0x1b9   : > { %v8906_v41 = vld [vmem:[#allocation2 + $0x14a] sm:$0xff]  ;;  %v2086_v34 = vpack.c.bf16 %v2059_v48, %v2058_v0  ;;  %v736_v4 = vpop.f32.mrb[92].mxu0 }
 0x1ba   : > { %9964 = vst [vmem:[#allocation61_spill] sm:$0xff] %v8906_v41  ;;  %v8917_v61 = vld [vmem:[#allocation2 + $0x151] sm:$0xff]  ;;  %1283 = vst [vmem:[#allocation2 + $0x168] sm:$0xff] %v8909_v52  ;;  %v737_v45 = vadd.f32 %v8799_v62, %v736_v4  ;;  %v6614_v12 = vpop.f32.mrb[93].mxu0  ;;  %6692 = vmatprep.mubr.bf16.mxu0 %v1451_v58  ;;  %v1134_v4 = vpop.permute.xlu1 %1133 }
 0x1bb   : > { %9966 = vst [vmem:[#allocation63_spill] sm:$0xff] %v8917_v61  ;;  %6820 = vmatprep.mubr.bf16.mxu1 %v2086_v34  ;;  %v739_v35 = vpop.f32.mrb[94].mxu0  ;;  %v2060_v41 = vld [vmem:[#allocation2 + $0x152] sm:$0xff] }
 0x1bc   : > { %v828_v9 = vmax.f32 %v737_v45, 0.0  ;;  %v740_v36 = vadd.f32 %v8799_v62, %v739_v35  ;;  %v6615_v47 = vpop.f32.mrb[95].mxu0 }
 0x1bd   : > { %v8941_v47 = vld [vmem:[#allocation2 + $0x152] sm:$0xff] }
 0x1be   : > { %v8928_v54 = vmul.f32 %v1129_v11, %v828_v9  ;;  %v829_v20 = vmax.f32 %v740_v36, 0.0  ;;  %9969 = vst [vmem:[#allocation66_spill] sm:$0xff] %v8941_v47 }
 0x1bf   : > { %v8930_v12 = vld [vmem:[#allocation2 + $0x159] sm:$0xff] }
 0x1c0   : > { %9967 = vst [vmem:[#allocation64_spill] sm:$0xff] %v8930_v12  ;;  %v2061_v58 = vld [vmem:[#allocation2 + $0x15a] sm:$0xff]  ;;  %1284 = vst [vmem:[#allocation2 + $0x170] sm:$0xff] %v8928_v54  ;;  %v8935_v0 = vmul.f32 %v1134_v4, %v829_v20  ;;  %v1452_v45 = vpack.c.bf16 %v8930_v12, %v8917_v61 }
 0x1c1   : > { %v8932_v34 = vld [vmem:[#allocation2 + $0x15a] sm:$0xff]  ;;  %v2087_v35 = vpack.c.bf16 %v2061_v58, %v2060_v41  ;;  %v744_v36 = vpop.f32.mrb[96].mxu0  ;;  %v2062_v47 = vld [vmem:[#allocation2 + $0x162] sm:$0xff] }
 0x1c2   : > { %9968 = vst [vmem:[#allocation65_spill] sm:$0xff] %v8932_v34  ;;  %v8943_v9 = vld [vmem:[#allocation2 + $0x161] sm:$0xff]  ;;  %1285 = vst [vmem:[#allocation2 + $0x178] sm:$0xff] %v8935_v0  ;;  %v745_v20 = vadd.f32 %v8799_v62, %v744_v36  ;;  %v6618_v4 = vpop.f32.mrb[97].mxu0  ;;  %6693 = vmatmul.mubr.bf16.gmra.mrb[156].mxu0 %v1452_v45  ;;  %v1144_v36 = vpop.permute.xlu1 %1143 }
 0x1c3   : > { %9970 = vst [vmem:[#allocation67_spill] sm:$0xff] %v8943_v9  ;;  %6821 = vmatmul.mubr.bf16.gmra.mrb[40].mxu1 %v2087_v35  ;;  %v747_v11 = vpop.f32.mrb[98].mxu0  ;;  %v2433_v61 = vld [vmem:[#allocation2 + $0x40] sm:$0xff] }
 0x1c4   : > { %v830_v19 = vmax.f32 %v745_v20, 0.0  ;;  %v748_v15 = vadd.f32 %v8799_v62, %v747_v11  ;;  %v6619_v14 = vpop.f32.mrb[99].mxu0 }
 0x1c5   : > { %v8967_v14 = vld [vmem:[#allocation2 + $0x162] sm:$0xff] }
 0x1c6   : > { %v8954_v48 = vmul.f32 %v1139_v27, %v830_v19  ;;  %v831_v34 = vmax.f32 %v748_v15, 0.0  ;;  %9973 = vst [vmem:[#allocation70_spill] sm:$0xff] %v8967_v14  ;;  %v2429_v14 = vld [vmem:[#allocation2 + $0x20] sm:$0xff] }
 0x1c7   : > { %v8956_v4 = vld [vmem:[#allocation2 + $0x169] sm:$0xff] }
 0x1c8   : > { %9971 = vst [vmem:[#allocation68_spill] sm:$0xff] %v8956_v4  ;;  %v2063_v45 = vld [vmem:[#allocation2 + $0x16a] sm:$0xff]  ;;  %1286 = vst [vmem:[#allocation2 + $0x180] sm:$0xff] %v8954_v48  ;;  %v8961_v41 = vmul.f32 %v1144_v36, %v831_v34  ;;  %v1453_v20 = vpack.c.bf16 %v8956_v4, %v8943_v9  ;;  %v1154_v9 = vpop.permute.xlu1 %1153 }
 0x1c9   : > { %v8958_v35 = vld [vmem:[#allocation2 + $0x16a] sm:$0xff]  ;;  %v2088_v11 = vpack.c.bf16 %v2063_v45, %v2062_v47  ;;  %v752_v15 = vpop.f32.mrb[100].mxu0  ;;  %v2064_v58 = vld [vmem:[#allocation2 + $0x172] sm:$0xff] }
 0x1ca   : > { %9972 = vst [vmem:[#allocation69_spill] sm:$0xff] %v8958_v35  ;;  %v8969_v19 = vld [vmem:[#allocation2 + $0x171] sm:$0xff]  ;;  %1287 = vst [vmem:[#allocation2 + $0x188] sm:$0xff] %v8961_v41  ;;  %v753_v34 = vadd.f32 %v8799_v62, %v752_v15  ;;  %v6622_v36 = vpop.f32.mrb[101].mxu0  ;;  %6696 = vmatprep.mubr.bf16.mxu0 %v1453_v20  ;;  %v1296_v35 = vld [vmem:[#allocation2 + $0x8] sm:$0xff] }
 0x1cb   : > { %9974 = vst [vmem:[#allocation71_spill] sm:$0xff] %v8969_v19  ;;  %6824 = vmatprep.mubr.bf16.mxu1 %v2088_v11  ;;  %v755_v45 = vpop.f32.mrb[102].mxu0 }
 0x1cc   : > { %v832_v27 = vmax.f32 %v753_v34, 0.0  ;;  %v756_v1 = vadd.f32 %v8799_v62, %v755_v45  ;;  %v6623_v28 = vpop.f32.mrb[103].mxu0  ;;  %v1295_v45 = vld [vmem:[#allocation2] sm:$0xff] }
 0x1cd   : > { %v1343_v4 = vpack.c.bf16 %v1296_v35, %v1295_v45  ;;  %v2431_v35 = vld [vmem:[#allocation2 + $0x30] sm:$0xff] }
 0x1ce   : > { %v8978_v38 = vmul.f32 %v1149_v10, %v832_v27  ;;  %v833_v12 = vmax.f32 %v756_v1, 0.0  ;;  %v2428_v10 = vld [vmem:[#allocation2 + $0x18] sm:$0xff] }
 0x1cf   : > { %v8980_v15 = vld [vmem:[#allocation2 + $0x179] sm:$0xff]  ;;  %v2476_v32 = vpack.c.bf16 %v2429_v14, %v2428_v10 }
 0x1d0   : > { %9975 = vst [vmem:[#allocation72_spill] sm:$0xff] %v8980_v15  ;;  %v2065_v20 = vld [vmem:[#allocation2 + $0x17a] sm:$0xff]  ;;  %1288 = vst [vmem:[#allocation2 + $0x190] sm:$0xff] %v8978_v38  ;;  %v1232_v36 = vmul.f32 %v1154_v9, %v833_v12  ;;  %v1454_v34 = vpack.c.bf16 %v8980_v15, %v8969_v19  ;;  %v8989_v27 = vld [vmem:[#allocation2 + $0x172] sm:$0xff]  ;;  %v1159_v15 = vpop.permute.xlu0 %1158 }
 0x1d1   : > { %v8982_v11 = vld [vmem:[#allocation2 + $0x17a] sm:$0xff]  ;;  %v2089_v28 = vpack.c.bf16 %v2065_v20, %v2064_v58  ;;  %v760_v47 = vpop.f32.mrb[104].mxu0 }
 0x1d2   : > { %9976 = vst [vmem:[#allocation73_spill] sm:$0xff] %v8982_v11  ;;  %1289 = vst [vmem:[#allocation2 + $0x198] sm:$0xff] %v1232_v36  ;;  %v761_v12 = vadd.f32 %v8799_v62, %v760_v47  ;;  %v6626_v9 = vpop.f32.mrb[105].mxu0  ;;  %6697 = vmatmul.mubr.bf16.gmra.mrb[160].mxu0 %v1454_v34  ;;  %v8995_v36 = vld [vmem:[#allocation2 + $0x181] sm:$0xff]  ;;  %v1164_v47 = vpop.permute.xlu1 %1163 }
 0x1d3   : > { %6825 = vmatmul.mubr.bf16.gmra.mrb[44].mxu1 %v2089_v28  ;;  %v763_v58 = vpop.f32.mrb[106].mxu0  ;;  %6716 = vmatprep.mubr.bf16.mxu0 %v1343_v4  ;;  %v1344_v9 = vpack.c.bf16 %v2428_v10, %v1297_v31  ;;  %v8999_v28 = vld [vmem:[#allocation2 + $0x182] sm:$0xff]  ;;  %v1345_v10 = vpack.c.bf16 %v2430_v7, %v2429_v14 }
 0x1d4   : > { %6844 = vmatprep.mubr.bf16.mxu1 %v2476_v32  ;;  %v834_v20 = vmax.f32 %v761_v12, 0.0  ;;  %v764_v1 = vadd.f32 %v8799_v62, %v763_v58  ;;  %v6627_v19 = vpop.f32.mrb[107].mxu0  ;;  %v2432_v58 = vld [vmem:[#allocation2 + $0x38] sm:$0xff]  ;;  %v1169_v14 = vpop.permute.xlu0 %1168 }
 0x1d5   : > { %v2477_v19 = vpack.c.bf16 %v2431_v35, %v2430_v7  ;;  %v7925_v7 = vld [vmem:[%s9814_s4 + $0x110] sm:$0xff]  }
 0x1d6   : > { %v1233_v45 = vmul.f32 %v1159_v15, %v834_v20  ;;  %v835_v42 = vmax.f32 %v764_v1, 0.0  ;;  %v7924_v15 = vld [vmem:[%s9814_s4 + $0x108] sm:$0xff]  }
 0x1d7   : > { %v8997_v34 = vld [vmem:[#allocation2 + $0x189] sm:$0xff] }
 0x1d8   : > { %v9001_v32 = vld [vmem:[#allocation2 + $0x18a] sm:$0xff]  ;;  %1290 = vst [vmem:[#allocation2 + $0x1a0] sm:$0xff] %v1233_v45  ;;  %v1234_v4 = vmul.f32 %v1164_v47, %v835_v42  ;;  %v2478_v42 = vpack.c.bf16 %v2433_v61, %v2432_v58 }
 0x1d9   : > { %v768_v31 = vpop.f32.mrb[108].mxu0 }
 0x1da   : > { %1291 = vst [vmem:[#allocation2 + $0x1a8] sm:$0xff] %v1234_v4  ;;  %v769_v20 = vadd.f32 %v8799_v62, %v768_v31  ;;  %v6630_v11 = vpop.f32.mrb[109].mxu0  ;;  %6717 = vmatmul.mubr.bf16.vlgmr.msra.gmra.mrb[116].mxu0 %v1344_v9  ;;  %v2435_v4 = vld [vmem:[#allocation2 + $0x50] sm:$0xff]  ;;  %v2434_v62 = vld [vmem:[#allocation2 + $0x48] sm:$0xff]  ;;  %v1174_v9 = vpop.permute.xlu1 %1173  ;;  %v2436_v31 = vld [vmem:[#allocation2 + $0x58] sm:$0xff] }
 0x1db   : > { %6845 = vmatmul.mubr.bf16.vlgmr.msra.gmra.mrb[0].mxu1 %v2477_v19  ;;  %v771_v45 = vpop.f32.mrb[110].mxu0  ;;  %6720 = vmatprep.mubr.bf16.mxu0 %v1345_v10  ;;  %v2437_v11 = vld [vmem:[#allocation2 + $0x60] sm:$0xff]  ;;  %v1346_v19 = vpack.c.bf16 %v2432_v58, %v2431_v35  ;;  %v2439_v35 = vld [vmem:[#allocation2 + $0x70] sm:$0xff]  ;;  %v2438_v58 = vld [vmem:[#allocation2 + $0x68] sm:$0xff] }
 0x1dc   : > { %6893 = vmatpush3.bf16.msra.mxu1 %v8642_v46  ;;  %v836_v47 = vmax.f32 %v769_v20, 0.0  ;;  %6848 = vmatprep.mubr.bf16.mxu1 %v2478_v42  ;;  %v6631_v1 = vpop.f32.mrb[111].mxu0  ;;  %v2479_v46 = vpack.c.bf16 %v2435_v4, %v2434_v62  ;;  %v1347_v20 = vpack.c.bf16 %v2434_v62, %v2433_v61  ;;  %v7926_v42 = vld [vmem:[%s9814_s4 + $0x118] sm:$0xff]   ;;  %v7927_v61 = vld [vmem:[%s9814_s4 + $0x120] sm:$0xff]   ;;  %v1348_v62 = vpack.c.bf16 %v2436_v31, %v2435_v4  ;;  %v7929_v4 = vld [vmem:[%s9814_s4 + $0x130] sm:$0xff]  }
 0x1dd   : > { %6894 = vmatprep.subr.bf16.mxu1 %v7924_v15  ;;  %v2480_v1 = vpack.c.bf16 %v2437_v11, %v2436_v31  ;;  %v2481_v9 = vpack.c.bf16 %v2439_v35, %v2438_v58  ;;  %v9030_v31 = vld [vmem:[#allocation2 + $0x88] sm:$0xff] }
 0x1de   : > { %v1235_v12 = vmul.f32 %v1169_v14, %v836_v47  ;;  %v2441_v14 = vld [vmem:[#allocation2 + $0x80] sm:$0xff] }
 0x1e0   : > { %6895 = vmatpush3.bf16.msra.mxu1 %v7924_v15  ;;  %1292 = vst [vmem:[#allocation2 + $0x1b0] sm:$0xff] %v1235_v12  ;;  %v1179_v12 = vpop.permute.xlu0 %1178 }
 0x1e1   : > { %6896 = vmatprep.subr.bf16.mxu1 %v7925_v7  ;;  %v776_v10 = vpop.f32.mrb[112].mxu0  ;;  %v7930_v12 = vld [vmem:[%s9814_s4 + $0x138] sm:$0xff]  }
 0x1e2   : > { %6721 = vmatmul.mubr.bf16.gmra.mrb[120].mxu0 %v1346_v19  ;;  %v6634_v45 = vpop.f32.mrb[113].mxu0  ;;  %v9021_v10 = vld [vmem:[#allocation2 + $0x78] sm:$0xff]  ;;  %v1349_v19 = vpack.c.bf16 %v2438_v58, %v2437_v11  ;;  %v2445_v11 = vld [vmem:[#allocation2 + $0xa0] sm:$0xff] }
 0x1e3   : > { %6849 = vmatmul.mubr.bf16.gmra.mrb[4].mxu1 %v2479_v46  ;;  %6724 = vmatprep.mubr.bf16.mxu0 %v1347_v20  ;;  %v779_v47 = vpop.f32.mrb[114].mxu0  ;;  %v2482_v46 = vpack.c.bf16 %v2441_v14, %v9021_v10  ;;  %v2443_v20 = vld [vmem:[#allocation2 + $0x90] sm:$0xff]  ;;  %v9034_v45 = vld [vmem:[#allocation2 + $0x98] sm:$0xff] }
 0x1e4   : > { %6852 = vmatprep.mubr.bf16.mxu1 %v2480_v1  ;;  %6897 = vmatpush3.bf16.msra.mxu1 %v7925_v7  ;;  %v6635_v15 = vpop.f32.mrb[115].mxu0  ;;  %v7928_v7 = vld [vmem:[%s9814_s4 + $0x128] sm:$0xff]   ;;  %v1350_v1 = vpack.c.bf16 %v9021_v10, %v2439_v35  ;;  %v1351_v47 = vpack.c.bf16 %v9030_v31, %v2441_v14  ;;  %v1352_v58 = vpack.c.bf16 %v9034_v45, %v2443_v20  ;;  %v7980_v14 = vld [vmem:[#allocation2 + $0xb0] sm:$0xff] }
 0x1e5   : > { %6898 = vmatprep.subr.bf16.mxu1 %v7926_v42  ;;  %v2484_v15 = vpack.c.bf16 %v2445_v11, %v9034_v45  ;;  %v9041_v35 = vld [vmem:[#allocation2 + $0xa8] sm:$0xff] }
 0x1e8   : > { %6899 = vmatpush3.bf16.msra.mxu1 %v7926_v42  ;;  %v2483_v42 = vpack.c.bf16 %v2443_v20, %v9030_v31  ;;  %v9978_v20 = vpack.c.bf16 %v8680_v5, %v8661_v37 }
 0x1e9   : > { %6900 = vmatprep.subr.bf16.mxu1 %v7927_v61 }
 0x1ea   : > { %6725 = vmatmul.mubr.bf16.gmra.mrb[124].mxu0 %v1348_v62  ;;  %v2485_v62 = vpack.c.bf16 %v7980_v14, %v9041_v35  ;;  %v7981_v14 = vld [vmem:[#allocation2 + $0x31] sm:$0xff] }
 0x1eb   : > { %6853 = vmatmul.mubr.bf16.gmra.mrb[8].mxu1 %v2481_v9  ;;  %6728 = vmatprep.mubr.bf16.mxu0 %v1349_v19  ;;  %v1353_v9 = vpack.c.bf16 %v9041_v35, %v2445_v11  ;;  %v9977_v19 = vpack.c.bf16 %v8656_v18, %v8637_v40  ;;  %v9979_v11 = vpack.c.bf16 %v8661_v37, %v8656_v18 }
 0x1ec   : > { %6856 = vmatprep.mubr.bf16.mxu1 %v2482_v46  ;;  %6901 = vmatpush3.bf16.msra.mxu1 %v7927_v61  ;;  %v7931_v61 = vld [vmem:[%s9814_s4 + $0x140] sm:$0xff]   ;;  %v1318_v46 = vld [vmem:[#allocation2 + $0xb8] sm:$0xff]  ;;  %v9981_v40 = vpack.c.bf16 %v8685_v43, %v8680_v5  ;;  %v9984_v18 = vpack.c.bf16 %v8752_v49, %v8733_v17  ;;  %v9985_v37 = vpack.c.bf16 %v8733_v17, %v8728_v23 }
 0x1ed   : > { %6902 = vmatprep.subr.bf16.mxu1 %v7928_v7  ;;  %v9986_v5 = vpack.c.bf16 %v8776_v57, %v8757_v51  ;;  %v9991_v17 = vpack.c.bf16 %v8810_v56, %v8805_v53 }
 0x1f0   : > { %6903 = vmatpush3.bf16.msra.mxu1 %v7928_v7  ;;  %v1317_v7 = vld [vmem:[#allocation2 + $0xb0] sm:$0xff] }
 0x1f1   : > { %6904 = vmatprep.subr.bf16.mxu1 %v7929_v4 }
 0x1f2   : > { %6729 = vmatmul.mubr.bf16.gmra.mrb[128].mxu0 %v1350_v1  ;;  %v9980_v1 = vpack.c.bf16 %v8704_v24, %v8685_v43  ;;  %v9987_v43 = vpack.c.bf16 %v8757_v51, %v8752_v49  ;;  %v9992_v49 = vpack.c.bf16 %v8853_v8, %v8834_v2  ;;  %v9993_v51 = vpack.c.bf16 %v8834_v2, %v8829_v30 }
 0x1f3   : > { %6857 = vmatmul.mubr.bf16.gmra.mrb[12].mxu1 %v2483_v42  ;;  %6732 = vmatprep.mubr.bf16.mxu0 %v1351_v47  ;;  %v9982_v42 = vpack.c.bf16 %v8728_v23, %v8709_v44  ;;  %v9983_v47 = vpack.c.bf16 %v8709_v44, %v8704_v24  ;;  %v9988_v24 = vpack.c.bf16 %v8805_v53, %v8781_v50 }
 0x1f4   : > { %6860 = vmatprep.mubr.bf16.mxu1 %v2484_v15  ;;  %6905 = vmatpush3.bf16.msra.mxu1 %v7929_v4  ;;  %v9052_v4 = vpack.c.bf16 %v1318_v46, %v1317_v7  ;;  %v9989_v44 = vpack.c.bf16 %v8781_v50, %v8776_v57  ;;  %v9990_v23 = vpack.c.bf16 %v8829_v30, %v8810_v56  ;;  %v2838_v15 = vld [vmem:[#allocation2 + $0x19] sm:$0xff]  ;;  %v7987_v7 = vld [vmem:[#allocation2 + $0x61] sm:$0xff] }
 0x1f5   : > { %6906 = vmatprep.subr.bf16.mxu1 %v7930_v12  ;;  %v9994_v57 = vpack.c.bf16 %v8874_v60, %v8858_v63  ;;  %v9995_v50 = vpack.c.bf16 %v8858_v63, %v8853_v8  ;;  %v9996_v53 = vpack.c.bf16 %v8902_v25, %v8883_v33  ;;  %v9997_v56 = vpack.c.bf16 %v8883_v33, %v8874_v60  ;;  %v2839_v63 = vld [vmem:[#allocation2 + $0x21] sm:$0xff]  ;;  %v2840_v33 = vld [vmem:[#allocation2 + $0x29] sm:$0xff]  ;;  %v7986_v46 = vld [vmem:[#allocation2 + $0x59] sm:$0xff] }
 0x1f6   : > { %v9998_v30 = vpack.c.bf16 %v8928_v54, %v8909_v52  ;;  %v9999_v2 = vpack.c.bf16 %v8909_v52, %v8902_v25  ;;  %v10000_v8 = vpack.c.bf16 %v8954_v48, %v8935_v0  ;;  %v10002_v60 = vpack.c.bf16 %v8978_v38, %v8961_v41  ;;  %v7932_v52 = vld [vmem:[%s9814_s4 + $0x148] sm:$0xff]   ;;  %v7982_v48 = vld [vmem:[#allocation2 + $0x39] sm:$0xff]  ;;  %v7933_v38 = vld [vmem:[%s9814_s4 + $0x150] sm:$0xff]  }
 0x1f7   : > { %v2887_v25 = vpack.c.bf16 %v7981_v14, %v2840_v33  ;;  %v2901_v33 = vpack.c.bf16 %v8838_v22, %v8807_v39  ;;  %v2902_v14 = vpack.c.bf16 %v8855_v21, %v8831_v55  ;;  %v10013_v21 = vld [vmem:[#allocation72_spill] sm:$0xff] }
 0x1f8   : > { %6907 = vmatpush3.bf16.msra.mxu1 %v7930_v12  ;;  %v2886_v12 = vpack.c.bf16 %v2839_v63, %v2838_v15  ;;  %v8000_v63 = vld [vmem:[#allocation2 + $0xc9] sm:$0xff] }
 0x1f9   : > { %6956 = vmatprep.subr.bf16.mxu1 %v7931_v61  ;;  %v2897_v15 = vpack.c.bf16 %v8737_v26, %v8000_v63 }
 0x1fa   : > { %6733 = vmatmul.mubr.bf16.gmra.mrb[132].mxu0 %v1352_v58  ;;  %v10001_v58 = vpack.c.bf16 %v8935_v0, %v8928_v54  ;;  %v7984_v54 = vld [vmem:[#allocation2 + $0x49] sm:$0xff]  ;;  %v7985_v0 = vld [vmem:[#allocation2 + $0x51] sm:$0xff] }
 0x1fb   : > { %6861 = vmatmul.mubr.bf16.gmra.mrb[16].mxu1 %v2485_v62  ;;  %6736 = vmatprep.mubr.bf16.mxu0 %v1353_v9  ;;  %v7983_v62 = vld [vmem:[#allocation2 + $0x41] sm:$0xff]  ;;  %v2889_v41 = vpack.c.bf16 %v7985_v0, %v7984_v54  ;;  %v10008_v0 = vld [vmem:[#allocation60_spill] sm:$0xff] }
 0x1fc   : > { %6864 = vmatprep.mubr.bf16.mxu1 %v9977_v19  ;;  %v2888_v9 = vpack.c.bf16 %v7983_v62, %v7982_v48  ;;  %v7934_v19 = vld [vmem:[%s9814_s4 + $0x158] sm:$0xff]   ;;  %v10004_v62 = vld [vmem:[#allocation59_spill] sm:$0xff] }
 0x1fd   : > { %v10007_v54 = vld [vmem:[#allocation63_spill] sm:$0xff] }
 0x202   : > { %6737 = vmatmul.mubr.bf16.gmra.mrb[136].mxu0 %v9052_v4 }
 0x203   : > { %6865 = vmatmul.mubr.bf16.gmra.mrb[20].mxu1 %v9978_v20  ;;  %6740 = vmatprep.mubr.bf16.mxu0 %v9979_v11  ;;  %v2890_v20 = vpack.c.bf16 %v7987_v7, %v7986_v46  ;;  %v7988_v11 = vld [vmem:[#allocation2 + $0x69] sm:$0xff] }
 0x204   : > { %6868 = vmatprep.mubr.bf16.mxu1 %v9980_v1  ;;  %v7989_v1 = vld [vmem:[#allocation2 + $0x71] sm:$0xff] }
 0x205   : > { %v10011_v46 = vld [vmem:[#allocation64_spill] sm:$0xff] }
 0x20a   : > { %6741 = vmatmul.mubr.bf16.gmra.mrb[140].mxu0 %v9981_v40  ;;  %v2891_v40 = vpack.c.bf16 %v7989_v1, %v7988_v11  ;;  %v10015_v11 = vld [vmem:[#allocation68_spill] sm:$0xff] }
 0x20b   : > { %6869 = vmatmul.mubr.bf16.gmra.mrb[24].mxu1 %v9982_v42  ;;  %6744 = vmatprep.mubr.bf16.mxu0 %v9983_v47  ;;  %v7936_v42 = vld [vmem:[%s9814_s4 + $0x168] sm:$0xff]   ;;  %v7990_v47 = vld [vmem:[#allocation2 + $0x79] sm:$0xff] }
 0x20c   : > { %6872 = vmatprep.mubr.bf16.mxu1 %v9984_v18  ;;  %v7991_v18 = vld [vmem:[#allocation2 + $0x81] sm:$0xff] }
 0x212   : > { %6745 = vmatmul.mubr.bf16.gmra.mrb[144].mxu0 %v9985_v37  ;;  %v2892_v37 = vpack.c.bf16 %v7991_v18, %v7990_v47  ;;  %v3248_v18 = vld [vmem:[#allocation2 + $0x1a] sm:$0xff] }
 0x213   : > { %6873 = vmatmul.mubr.bf16.gmra.mrb[28].mxu1 %v9986_v5  ;;  %6748 = vmatprep.mubr.bf16.mxu0 %v9987_v43  ;;  %v7937_v5 = vld [vmem:[%s9814_s4 + $0x170] sm:$0xff]  }
 0x214   : > { %6876 = vmatprep.mubr.bf16.mxu1 %v9988_v24  ;;  %v7992_v43 = vld [vmem:[#allocation2 + $0x89] sm:$0xff]  ;;  %v7993_v24 = vld [vmem:[#allocation2 + $0x91] sm:$0xff] }
 0x21a   : > { %6749 = vmatmul.mubr.bf16.gmra.mrb[148].mxu0 %v9989_v44  ;;  %v2893_v44 = vpack.c.bf16 %v7993_v24, %v7992_v43  ;;  %v8001_v43 = vld [vmem:[#allocation2 + $0x32] sm:$0xff] }
 0x21b   : > { %6877 = vmatmul.mubr.bf16.gmra.mrb[32].mxu1 %v9990_v23  ;;  %6752 = vmatprep.mubr.bf16.mxu0 %v9991_v17  ;;  %v7938_v23 = vld [vmem:[%s9814_s4 + $0x178] sm:$0xff]  }
 0x21c   : > { %6880 = vmatprep.mubr.bf16.mxu1 %v9992_v49  ;;  %v7994_v17 = vld [vmem:[#allocation2 + $0x99] sm:$0xff]  ;;  %v7995_v49 = vld [vmem:[#allocation2 + $0xa1] sm:$0xff] }
 0x222   : > { %6753 = vmatmul.mubr.bf16.gmra.mrb[152].mxu0 %v9993_v51  ;;  %v2894_v51 = vpack.c.bf16 %v7995_v49, %v7994_v17  ;;  %v8003_v17 = vld [vmem:[#allocation2 + $0x42] sm:$0xff] }
 0x223   : > { %6881 = vmatmul.mubr.bf16.gmra.mrb[36].mxu1 %v9994_v57  ;;  %6756 = vmatprep.mubr.bf16.mxu0 %v9995_v50  ;;  %v7939_v57 = vld [vmem:[%s9814_s4 + $0x180] sm:$0xff]   ;;  %v7996_v50 = vld [vmem:[#allocation2 + $0xa9] sm:$0xff] }
 0x224   : > { %6884 = vmatprep.mubr.bf16.mxu1 %v9996_v53  ;;  %v7997_v53 = vld [vmem:[#allocation2 + $0xb1] sm:$0xff] }
 0x22a   : > { %6757 = vmatmul.mubr.bf16.gmra.mrb[156].mxu0 %v9997_v56  ;;  %v2895_v56 = vpack.c.bf16 %v7997_v53, %v7996_v50  ;;  %v8004_v50 = vld [vmem:[#allocation2 + $0x4a] sm:$0xff]  ;;  %v8005_v53 = vld [vmem:[#allocation2 + $0x52] sm:$0xff] }
 0x22b   : > { %6885 = vmatmul.mubr.bf16.gmra.mrb[40].mxu1 %v9998_v30  ;;  %6760 = vmatprep.mubr.bf16.mxu0 %v9999_v2  ;;  %v7998_v30 = vld [vmem:[#allocation2 + $0xb9] sm:$0xff]  ;;  %v7999_v2 = vld [vmem:[#allocation2 + $0xc1] sm:$0xff] }
 0x22c   : > { %6888 = vmatprep.mubr.bf16.mxu1 %v10000_v8  ;;  %v2896_v8 = vpack.c.bf16 %v7999_v2, %v7998_v30  ;;  %v7942_v30 = vld [vmem:[%s9814_s4 + $0x198] sm:$0xff]  }
 0x22d   : > { %v8006_v2 = vld [vmem:[#allocation2 + $0x5a] sm:$0xff] }
 0x232   : > { %6761 = vmatmul.mubr.bf16.gmra.mrb[160].mxu0 %v10001_v58  ;;  %v2899_v58 = vpack.c.bf16 %v8785_v59, %v8754_v29 }
 0x233   : > { %6889 = vmatmul.mubr.bf16.gmra.mrb[44].mxu1 %v10002_v60  ;;  %v2900_v60 = vpack.c.bf16 %v8814_v16, %v8778_v6 }
 0x234   : > { %6908 = vmatprep.mubr.bf16.mxu1 %v2886_v12  ;;  %v2898_v12 = vpack.c.bf16 %v8761_v3, %v8730_v13 }
 0x23b   : > { %6909 = vmatmul.mubr.bf16.vlgmr.msra.gmra.mrb[0].mxu1 %v2887_v25  ;;  %v9165_v25 = vld [vmem:[#allocation2 + $0x129] sm:$0xff] }
 0x23c   : > { %6957 = vmatpush3.bf16.msra.mxu1 %v7931_v61  ;;  %6912 = vmatprep.mubr.bf16.mxu1 %v2888_v9  ;;  %v7935_v61 = vld [vmem:[%s9814_s4 + $0x160] sm:$0xff]   ;;  %v10005_v9 = vld [vmem:[#allocation56_spill] sm:$0xff] }
 0x23d   : > { %6958 = vmatprep.subr.bf16.mxu1 %v7932_v52 }
 0x240   : > { %6959 = vmatpush3.bf16.msra.mxu1 %v7932_v52  ;;  %v10003_v52 = vld [vmem:[#allocation55_spill] sm:$0xff] }
 0x241   : > { %6960 = vmatprep.subr.bf16.mxu1 %v7933_v38  ;;  %v2903_v48 = vpack.c.bf16 %v10003_v52, %v9165_v25 }
 0x243   : > { %6913 = vmatmul.mubr.bf16.gmra.mrb[4].mxu1 %v2889_v41  ;;  %v10009_v41 = vpack.c.bf16 %v10007_v54, %v10008_v0  ;;  %v8012_v0 = vld [vmem:[#allocation2 + $0x8a] sm:$0xff] }
 0x244   : > { %6916 = vmatprep.mubr.bf16.mxu1 %v2890_v20  ;;  %6961 = vmatpush3.bf16.msra.mxu1 %v7933_v38  ;;  %v10006_v38 = vpack.c.bf16 %v10004_v62, %v10005_v9  ;;  %v2908_v20 = vpack.c.bf16 %v8995_v36, %v10013_v21  ;;  %v8015_v21 = vld [vmem:[#allocation2 + $0xa2] sm:$0xff] }
 0x245   : > { %6962 = vmatprep.subr.bf16.mxu1 %v7934_v19 }
 0x248   : > { %6963 = vmatpush3.bf16.msra.mxu1 %v7934_v19  ;;  %v10010_v19 = vld [vmem:[#allocation67_spill] sm:$0xff] }
 0x249   : > { %6964 = vmatprep.subr.bf16.mxu1 %v7935_v61  ;;  %v10012_v7 = vpack.c.bf16 %v10010_v19, %v10011_v46  ;;  %v7946_v46 = vld [vmem:[%s9814_s4 + $0x1b8] sm:$0xff]  }
 0x24b   : > { %6917 = vmatmul.mubr.bf16.gmra.mrb[8].mxu1 %v2891_v40  ;;  %v9183_v40 = vld [vmem:[#allocation2 + $0x191] sm:$0xff] }
 0x24c   : > { %6920 = vmatprep.mubr.bf16.mxu1 %v2892_v37  ;;  %6965 = vmatpush3.bf16.msra.mxu1 %v7935_v61  ;;  %v10014_v61 = vld [vmem:[#allocation71_spill] sm:$0xff]  ;;  %v2909_v47 = vpack.c.bf16 %v9183_v40, %v8997_v34 }
 0x24d   : > { %6966 = vmatprep.subr.bf16.mxu1 %v7936_v42  ;;  %v10016_v1 = vpack.c.bf16 %v10014_v61, %v10015_v11  ;;  %v9219_v61 = vld [vmem:[%s9814_s4 + $0x1c0] sm:$0xff]  }
 0x250   : > { %6967 = vmatpush3.bf16.msra.mxu1 %v7936_v42  ;;  %v3249_v42 = vld [vmem:[#allocation2 + $0x22] sm:$0xff] }
 0x251   : > { %6968 = vmatprep.subr.bf16.mxu1 %v7937_v5  ;;  %v3296_v37 = vpack.c.bf16 %v3249_v42, %v3248_v18  ;;  %v8016_v18 = vld [vmem:[#allocation2 + $0xaa] sm:$0xff] }
 0x253   : > { %6921 = vmatmul.mubr.bf16.gmra.mrb[12].mxu1 %v2893_v44  ;;  %v7940_v44 = vld [vmem:[%s9814_s4 + $0x188] sm:$0xff]  }
 0x254   : > { %6924 = vmatprep.mubr.bf16.mxu1 %v2894_v51  ;;  %6969 = vmatpush3.bf16.msra.mxu1 %v7937_v5  ;;  %v3250_v5 = vld [vmem:[#allocation2 + $0x2a] sm:$0xff] }
 0x255   : > { %6970 = vmatprep.subr.bf16.mxu1 %v7938_v23  ;;  %v3297_v24 = vpack.c.bf16 %v8001_v43, %v3250_v5  ;;  %v7941_v51 = vld [vmem:[%s9814_s4 + $0x190] sm:$0xff]   ;;  %v8018_v43 = vld [vmem:[#allocation2 + $0xba] sm:$0xff] }
 0x258   : > { %6971 = vmatpush3.bf16.msra.mxu1 %v7938_v23  ;;  %v8002_v23 = vld [vmem:[#allocation2 + $0x3a] sm:$0xff] }
 0x259   : > { %7020 = vmatprep.subr.bf16.mxu1 %v7939_v57  ;;  %v3298_v49 = vpack.c.bf16 %v8003_v17, %v8002_v23 }
 0x25b   : > { %6925 = vmatmul.mubr.bf16.gmra.mrb[16].mxu1 %v2895_v56  ;;  %v3299_v56 = vpack.c.bf16 %v8005_v53, %v8004_v50  ;;  %v8020_v50 = vld [vmem:[#allocation2 + $0xca] sm:$0xff]  ;;  %v8021_v53 = vld [vmem:[#allocation2 + $0xd2] sm:$0xff] }
 0x25c   : > { %6928 = vmatprep.mubr.bf16.mxu1 %v2896_v8  ;;  %v8007_v8 = vld [vmem:[#allocation2 + $0x62] sm:$0xff] }
 0x25d   : > { %v3300_v63 = vpack.c.bf16 %v8007_v8, %v8006_v2  ;;  %v8023_v2 = vld [vmem:[#allocation2 + $0xe2] sm:$0xff] }
 0x263   : > { %6929 = vmatmul.mubr.bf16.gmra.mrb[20].mxu1 %v2897_v15  ;;  %v8008_v15 = vld [vmem:[#allocation2 + $0x6a] sm:$0xff] }
 0x264   : > { %6932 = vmatprep.mubr.bf16.mxu1 %v2898_v12  ;;  %v8009_v12 = vld [vmem:[#allocation2 + $0x72] sm:$0xff] }
 0x26b   : > { %6933 = vmatmul.mubr.bf16.gmra.mrb[24].mxu1 %v2899_v58  ;;  %v3301_v58 = vpack.c.bf16 %v8009_v12, %v8008_v15 }
 0x26c   : > { %6936 = vmatprep.mubr.bf16.mxu1 %v2900_v60  ;;  %v7944_v60 = vld [vmem:[%s9814_s4 + $0x1a8] sm:$0xff]  }
 0x273   : > { %6937 = vmatmul.mubr.bf16.gmra.mrb[28].mxu1 %v2901_v33  ;;  %v8010_v33 = vld [vmem:[#allocation2 + $0x7a] sm:$0xff] }
 0x274   : > { %6940 = vmatprep.mubr.bf16.mxu1 %v2902_v14  ;;  %v8011_v14 = vld [vmem:[#allocation2 + $0x82] sm:$0xff] }
 0x275   : > { %v3302_v52 = vpack.c.bf16 %v8011_v14, %v8010_v33  ;;  %v8026_v14 = vld [vmem:[#allocation2 + $0xfa] sm:$0xff] }
 0x27b   : > { %6941 = vmatmul.mubr.bf16.gmra.mrb[32].mxu1 %v2903_v48  ;;  %v7945_v48 = vld [vmem:[%s9814_s4 + $0x1b0] sm:$0xff]  }
 0x27c   : > { %6944 = vmatprep.mubr.bf16.mxu1 %v10006_v38 }
 0x283   : > { %6945 = vmatmul.mubr.bf16.gmra.mrb[36].mxu1 %v10009_v41  ;;  %v8013_v41 = vld [vmem:[#allocation2 + $0x92] sm:$0xff] }
 0x284   : > { %6948 = vmatprep.mubr.bf16.mxu1 %v10012_v7  ;;  %v3303_v19 = vpack.c.bf16 %v8013_v41, %v8012_v0  ;;  %v8014_v7 = vld [vmem:[#allocation2 + $0x9a] sm:$0xff] }
 0x28b   : > { %6949 = vmatmul.mubr.bf16.gmra.mrb[40].mxu1 %v10016_v1 }
 0x28c   : > { %6952 = vmatprep.mubr.bf16.mxu1 %v2908_v20  ;;  %v3304_v20 = vpack.c.bf16 %v8015_v21, %v8014_v7  ;;  %v8027_v7 = vld [vmem:[#allocation2 + $0x10a] sm:$0xff] }
 0x28d   : > { %v10026_v21 = vld [vmem:[#allocation51_spill] sm:$0xff] }
 0x293   : > { %6953 = vmatmul.mubr.bf16.gmra.mrb[44].mxu1 %v2909_v47 }
 0x294   : > { %6972 = vmatprep.mubr.bf16.mxu1 %v3296_v37  ;;  %v8017_v37 = vld [vmem:[#allocation2 + $0xb2] sm:$0xff] }
 0x295   : > { %v3305_v5 = vpack.c.bf16 %v8017_v37, %v8016_v18  ;;  %v10027_v18 = vld [vmem:[#allocation52_spill] sm:$0xff]  ;;  %v10028_v37 = vld [vmem:[#allocation53_spill] sm:$0xff] }
 0x29b   : > { %6973 = vmatmul.mubr.bf16.vlgmr.msra.gmra.mrb[0].mxu1 %v3297_v24  ;;  %v8019_v24 = vld [vmem:[#allocation2 + $0xc2] sm:$0xff] }
 0x29c   : > { %7021 = vmatpush3.bf16.msra.mxu1 %v7939_v57  ;;  %6976 = vmatprep.mubr.bf16.mxu1 %v3298_v49  ;;  %v7943_v57 = vld [vmem:[%s9814_s4 + $0x1a0] sm:$0xff]  }
 0x29d   : > { %7022 = vmatprep.subr.bf16.mxu1 %v7940_v44 }
 0x2a0   : > { %7023 = vmatpush3.bf16.msra.mxu1 %v7940_v44  ;;  %v3306_v44 = vpack.c.bf16 %v8019_v24, %v8018_v43 }
 0x2a1   : > { %7024 = vmatprep.subr.bf16.mxu1 %v7941_v51 }
 0x2a3   : > { %6977 = vmatmul.mubr.bf16.gmra.mrb[4].mxu1 %v3299_v56  ;;  %v3307_v56 = vpack.c.bf16 %v8021_v53, %v8020_v50  ;;  %v10033_v53 = vld [vmem:[#allocation54_spill] sm:$0xff] }
 0x2a4   : > { %6980 = vmatprep.mubr.bf16.mxu1 %v3300_v63  ;;  %7025 = vmatpush3.bf16.msra.mxu1 %v7941_v51 }
 0x2a5   : > { %7026 = vmatprep.subr.bf16.mxu1 %v7942_v30 }
 0x2a8   : > { %7027 = vmatpush3.bf16.msra.mxu1 %v7942_v30  ;;  %v8022_v30 = vld [vmem:[#allocation2 + $0xda] sm:$0xff] }
 0x2a9   : > { %7028 = vmatprep.subr.bf16.mxu1 %v7943_v57  ;;  %v3308_v8 = vpack.c.bf16 %v8023_v2, %v8022_v30  ;;  %v10035_v2 = vld [vmem:[#allocation57_spill] sm:$0xff] }
 0x2ab   : > { %6981 = vmatmul.mubr.bf16.gmra.mrb[8].mxu1 %v3301_v58  ;;  %v8024_v58 = vld [vmem:[#allocation2 + $0xea] sm:$0xff] }
 0x2ac   : > { %6984 = vmatprep.mubr.bf16.mxu1 %v3302_v52  ;;  %7029 = vmatpush3.bf16.msra.mxu1 %v7943_v57  ;;  %v10021_v52 = vld [vmem:[#allocation49_spill] sm:$0xff] }
 0x2ad   : > { %7030 = vmatprep.subr.bf16.mxu1 %v7944_v60  ;;  %v9205_v62 = vpop.f32.mrb[116].mxu0 }
 0x2ae   : > { %v9207_v9 = vpop.f32.mrb[117].mxu0 }
 0x2af   : > { %v9209_v38 = vpop.f32.mrb[118].mxu0 }
 0x2b0   : > { %7031 = vmatpush3.bf16.msra.mxu1 %v7944_v60  ;;  %v9211_v54 = vpop.f32.mrb[119].mxu0  ;;  %v8025_v60 = vld [vmem:[#allocation2 + $0xf2] sm:$0xff] }
 0x2b1   : > { %7032 = vmatprep.subr.bf16.mxu1 %v7945_v48  ;;  %v3309_v33 = vpack.c.bf16 %v8025_v60, %v8024_v58 }
 0x2b3   : > { %6985 = vmatmul.mubr.bf16.gmra.mrb[12].mxu1 %v3303_v19 }
 0x2b4   : > { %6988 = vmatprep.mubr.bf16.mxu1 %v3304_v20  ;;  %7033 = vmatpush3.bf16.msra.mxu1 %v7945_v48  ;;  %v3310_v48 = vpack.c.bf16 %v10021_v52, %v8026_v14  ;;  %v3311_v20 = vpack.c.bf16 %v10026_v21, %v8027_v7  ;;  %v10041_v7 = vld [vmem:[#allocation61_spill] sm:$0xff] }
 0x2b5   : > { %7034 = vmatprep.subr.bf16.mxu1 %v7946_v46  ;;  %v9221_v11 = vpop.f32.mrb[120].mxu0 }
 0x2b6   : > { %v9223_v1 = vpop.f32.mrb[121].mxu0 }
 0x2b7   : > { %v9225_v42 = vpop.f32.mrb[122].mxu0 }
 0x2b8   : > { %7035 = vmatpush3.bf16.msra.mxu1 %v7946_v46  ;;  %v9227_v47 = vpop.f32.mrb[123].mxu0 }
 0x2b9   : > { %7084 = vmatprep.subr.bf16.mxu1 %v9219_v61 }
 0x2bb   : > { %6989 = vmatmul.mubr.bf16.gmra.mrb[16].mxu1 %v3305_v5  ;;  %v3312_v5 = vpack.c.bf16 %v10028_v37, %v10027_v18 }
 0x2bc   : > { %6992 = vmatprep.mubr.bf16.mxu1 %v3306_v44 }
 0x2bd   : > { %v9230_v23 = vpop.f32.mrb[124].mxu0 }
 0x2be   : > { %v9232_v17 = vpop.f32.mrb[125].mxu0 }
 0x2bf   : > { %v9234_v49 = vpop.f32.mrb[126].mxu0 }
 0x2c0   : > { %v9236_v51 = vpop.f32.mrb[127].mxu0 }
 0x2c3   : > { %6993 = vmatmul.mubr.bf16.gmra.mrb[20].mxu1 %v3307_v56  ;;  %v10034_v56 = vld [vmem:[#allocation58_spill] sm:$0xff] }
 0x2c4   : > { %6996 = vmatprep.mubr.bf16.mxu1 %v3308_v8  ;;  %v3313_v30 = vpack.c.bf16 %v10034_v56, %v10033_v53  ;;  %v10036_v8 = vld [vmem:[#allocation62_spill] sm:$0xff] }
 0x2c5   : > { %v9238_v63 = vpop.f32.mrb[128].mxu0  ;;  %v3314_v58 = vpack.c.bf16 %v10036_v8, %v10035_v2 }
 0x2c6   : > { %10017 = vst [vmem:[#allocation55_spill] sm:$0xff] %v9238_v63  ;;  %v9240_v57 = vpop.f32.mrb[129].mxu0  ;;  %v7948_v63 = vld [vmem:[%s9814_s4 + $0x1c8] sm:$0xff]  }
 0x2c7   : > { %10018 = vst [vmem:[#allocation59_spill] sm:$0xff] %v9240_v57  ;;  %v9242_v15 = vpop.f32.mrb[130].mxu0 }
 0x2c8   : > { %10019 = vst [vmem:[#allocation56_spill] sm:$0xff] %v9242_v15  ;;  %v9244_v12 = vpop.f32.mrb[131].mxu0 }
 0x2c9   : > { %10020 = vst [vmem:[#allocation63_spill] sm:$0xff] %v9244_v12  ;;  %v3663_v12 = vld [vmem:[#allocation2 + $0x58] sm:$0xff] }
 0x2cb   : > { %6997 = vmatmul.mubr.bf16.gmra.mrb[24].mxu1 %v3309_v33 }
 0x2cc   : > { %7000 = vmatprep.mubr.bf16.mxu1 %v3310_v48 }
 0x2cd   : > { %v9247_v0 = vpop.f32.mrb[132].mxu0 }
 0x2ce   : > { %10022 = vst [vmem:[#allocation60_spill] sm:$0xff] %v9247_v0  ;;  %v9249_v41 = vpop.f32.mrb[133].mxu0 }
 0x2cf   : > { %10023 = vst [vmem:[#allocation67_spill] sm:$0xff] %v9249_v41  ;;  %v9251_v19 = vpop.f32.mrb[134].mxu0  ;;  %v3658_v41 = vld [vmem:[#allocation2 + $0x30] sm:$0xff] }
 0x2d0   : > { %10024 = vst [vmem:[#allocation64_spill] sm:$0xff] %v9251_v19  ;;  %v9253_v46 = vpop.f32.mrb[135].mxu0 }
 0x2d1   : > { %10025 = vst [vmem:[#allocation72_spill] sm:$0xff] %v9253_v46 }
 0x2d3   : > { %7001 = vmatmul.mubr.bf16.gmra.mrb[28].mxu1 %v3311_v20  ;;  %v10042_v20 = vld [vmem:[#allocation66_spill] sm:$0xff] }
 0x2d4   : > { %7004 = vmatprep.mubr.bf16.mxu1 %v3312_v5  ;;  %v3315_v5 = vpack.c.bf16 %v10042_v20, %v10041_v7 }
 0x2d5   : > { %v9258_v43 = vpop.f32.mrb[136].mxu0 }
 0x2d6   : > { %10029 = vst [vmem:[#allocation71_spill] sm:$0xff] %v9258_v43  ;;  %v9260_v24 = vpop.f32.mrb[137].mxu0 }
 0x2d7   : > { %10030 = vst [vmem:[#allocation68_spill] sm:$0xff] %v9260_v24  ;;  %v9262_v44 = vpop.f32.mrb[138].mxu0 }
 0x2d8   : > { %10031 = vst [vmem:[#allocation49_spill] sm:$0xff] %v9262_v44  ;;  %v9264_v50 = vpop.f32.mrb[139].mxu0  ;;  %v10044_v44 = vld [vmem:[#allocation70_spill] sm:$0xff] }
 0x2d9   : > { %10032 = vst [vmem:[#allocation51_spill] sm:$0xff] %v9264_v50  ;;  %v10043_v50 = vld [vmem:[#allocation65_spill] sm:$0xff] }
 0x2da   : > { %v3316_v24 = vpack.c.bf16 %v10044_v44, %v10043_v50 }
 0x2db   : > { %7005 = vmatmul.mubr.bf16.gmra.mrb[32].mxu1 %v3313_v30 }
 0x2dc   : > { %7008 = vmatprep.mubr.bf16.mxu1 %v3314_v58 }
 0x2dd   : > { %v9270_v60 = vpop.f32.mrb[140].mxu0 }
 0x2de   : > { %10037 = vst [vmem:[#allocation52_spill] sm:$0xff] %v9270_v60  ;;  %v9272_v33 = vpop.f32.mrb[141].mxu0 }
 0x2df   : > { %10038 = vst [vmem:[#allocation53_spill] sm:$0xff] %v9272_v33  ;;  %v9274_v14 = vpop.f32.mrb[142].mxu0  ;;  %v10049_v33 = vld [vmem:[#allocation69_spill] sm:$0xff] }
 0x2e0   : > { %10039 = vst [vmem:[#allocation54_spill] sm:$0xff] %v9274_v14  ;;  %v9276_v48 = vpop.f32.mrb[143].mxu0  ;;  %v3317_v14 = vpack.c.bf16 %v8989_v27, %v10049_v33 }
 0x2e1   : > { %10040 = vst [vmem:[#allocation58_spill] sm:$0xff] %v9276_v48  ;;  %v10050_v48 = vld [vmem:[#allocation73_spill] sm:$0xff] }
 0x2e2   : > { %v3318_v46 = vpack.c.bf16 %v8999_v28, %v10050_v48 }
 0x2e3   : > { %7009 = vmatmul.mubr.bf16.gmra.mrb[36].mxu1 %v3315_v5  ;;  %v9296_v5 = vld [vmem:[#allocation2 + $0x192] sm:$0xff] }
 0x2e4   : > { %7012 = vmatprep.mubr.bf16.mxu1 %v3316_v24 }
 0x2e5   : > { %v9282_v43 = vpop.f32.mrb[144].mxu0 }
 0x2e6   : > { %10045 = vst [vmem:[#allocation57_spill] sm:$0xff] %v9282_v43  ;;  %v9284_v30 = vpop.f32.mrb[145].mxu0  ;;  %v3659_v43 = vld [vmem:[#allocation2 + $0x38] sm:$0xff] }
 0x2e7   : > { %10046 = vst [vmem:[#allocation62_spill] sm:$0xff] %v9284_v30  ;;  %v9286_v58 = vpop.f32.mrb[146].mxu0  ;;  %v3706_v0 = vpack.c.bf16 %v3659_v43, %v3658_v41 }
 0x2e8   : > { %10047 = vst [vmem:[#allocation61_spill] sm:$0xff] %v9286_v58  ;;  %v9288_v60 = vpop.f32.mrb[147].mxu0 }
 0x2e9   : > { %10048 = vst [vmem:[#allocation66_spill] sm:$0xff] %v9288_v60  ;;  %v3319_v60 = vpack.c.bf16 %v9296_v5, %v9001_v32 }
 0x2eb   : > { %7013 = vmatmul.mubr.bf16.gmra.mrb[40].mxu1 %v3317_v14 }
 0x2ec   : > { %7016 = vmatprep.mubr.bf16.mxu1 %v3318_v46  ;;  %v3661_v46 = vld [vmem:[#allocation2 + $0x48] sm:$0xff] }
 0x2ed   : > { %v9294_v19 = vpop.f32.mrb[148].mxu0 }
 0x2ee   : > { %10051 = vst [vmem:[#allocation65_spill] sm:$0xff] %v9294_v19  ;;  %v9298_v24 = vpop.f32.mrb[149].mxu0 }
 0x2ef   : > { %10052 = vst [vmem:[#allocation70_spill] sm:$0xff] %v9298_v24  ;;  %v9300_v30 = vpop.f32.mrb[150].mxu0  ;;  %v3660_v24 = vld [vmem:[#allocation2 + $0x40] sm:$0xff] }
 0x2f0   : > { %10053 = vst [vmem:[#allocation69_spill] sm:$0xff] %v9300_v30  ;;  %v9302_v58 = vpop.f32.mrb[151].mxu0  ;;  %v3707_v30 = vpack.c.bf16 %v3661_v46, %v3660_v24  ;;  %v3664_v46 = vld [vmem:[#allocation2 + $0x60] sm:$0xff] }
 0x2f1   : > { %10054 = vst [vmem:[#allocation73_spill] sm:$0xff] %v9302_v58  ;;  %v3662_v58 = vld [vmem:[#allocation2 + $0x50] sm:$0xff] }
 0x2f2   : > { %v3708_v41 = vpack.c.bf16 %v3663_v12, %v3662_v58 }
 0x2f3   : > { %7017 = vmatmul.mubr.bf16.gmra.mrb[44].mxu1 %v3319_v60  ;;  %v3665_v60 = vld [vmem:[#allocation2 + $0x68] sm:$0xff] }
 0x2f4   : > { %7036 = vmatprep.mubr.bf16.mxu1 %v3706_v0  ;;  %v7949_v0 = vld [vmem:[%s9814_s4 + $0x1d0] sm:$0xff]   ;;  %v3709_v12 = vpack.c.bf16 %v3665_v60, %v3664_v46  ;;  %v3668_v46 = vld [vmem:[#allocation2 + $0x80] sm:$0xff] }
 0x2f5   : > { %v9306_v14 = vpop.f32.mrb[152].mxu0 }
 0x2f6   : > { %v9308_v19 = vpop.f32.mrb[153].mxu0 }
 0x2f7   : > { %10055 = vst [vmem:[#allocation74_spill] sm:$0xff] %v9308_v19  ;;  %v9310_v15 = vpop.f32.mrb[154].mxu0 }
 0x2f8   : > { %10056 = vst [vmem:[#allocation75_spill] sm:$0xff] %v9310_v15  ;;  %v9312_v57 = vpop.f32.mrb[155].mxu0 }
 0x2f9   : > { %10057 = vst [vmem:[#allocation76_spill] sm:$0xff] %v9312_v57 }
 0x2fb   : > { %7037 = vmatmul.mubr.bf16.vlgmr.msra.gmra.mrb[0].mxu1 %v3707_v30  ;;  %v3666_v30 = vld [vmem:[#allocation2 + $0x70] sm:$0xff] }
 0x2fc   : > { %7085 = vmatpush3.bf16.msra.mxu1 %v9219_v61  ;;  %7040 = vmatprep.mubr.bf16.mxu1 %v3708_v41  ;;  %v7950_v61 = vld [vmem:[%s9814_s4 + $0x1d8] sm:$0xff]   ;;  %v3710_v58 = vpack.c.bf16 %v9021_v10, %v3666_v30  ;;  %v7951_v41 = vld [vmem:[%s9814_s4 + $0x1e0] sm:$0xff]   ;;  %v3711_v10 = vpack.c.bf16 %v9030_v31, %v3668_v46 }
 0x2fd   : > { %7086 = vmatprep.subr.bf16.mxu1 %v7948_v63  ;;  %v9321_v43 = vpop.f32.mrb[156].mxu0  ;;  %v7954_v46 = vld [vmem:[%s9814_s4 + $0x1f8] sm:$0xff]  }
 0x2fe   : > { %10058 = vst [vmem:[#allocation77_spill] sm:$0xff] %v9321_v43  ;;  %v9323_v57 = vpop.f32.mrb[157].mxu0 }
 0x2ff   : > { %10059 = vst [vmem:[#allocation78_spill] sm:$0xff] %v9323_v57  ;;  %v9325_v24 = vpop.f32.mrb[158].mxu0  ;;  %v3684_v57 = vld [vmem:[#allocation2 + $0x100] sm:$0xff] }
 0x300   : > { %10060 = vst [vmem:[#allocation79_spill] sm:$0xff] %v9325_v24  ;;  %7087 = vmatpush3.bf16.msra.mxu1 %v7948_v63  ;;  %v9327_v15 = vpop.f32.mrb[159].mxu0 }
 0x301   : > { %10061 = vst [vmem:[#allocation80_spill] sm:$0xff] %v9327_v15  ;;  %7088 = vmatprep.subr.bf16.mxu1 %v7949_v0 }
 0x303   : > { %7041 = vmatmul.mubr.bf16.gmra.mrb[4].mxu1 %v3709_v12  ;;  %v3670_v12 = vld [vmem:[#allocation2 + $0x90] sm:$0xff] }
 0x304   : > { %7044 = vmatprep.mubr.bf16.mxu1 %v3710_v58  ;;  %7089 = vmatpush3.bf16.msra.mxu1 %v7949_v0  ;;  %v7952_v0 = vld [vmem:[%s9814_s4 + $0x1e8] sm:$0xff]   ;;  %v3712_v30 = vpack.c.bf16 %v9034_v45, %v3670_v12  ;;  %v3672_v58 = vld [vmem:[#allocation2 + $0xa0] sm:$0xff] }
 0x305   : > { %7090 = vmatprep.subr.bf16.mxu1 %v7950_v61  ;;  %v9336_v63 = vpop.f32.mrb[160].mxu0  ;;  %v3713_v31 = vpack.c.bf16 %v9041_v35, %v3672_v58  ;;  %v9360_v45 = vld [vmem:[%s9814_s4 + $0x200] sm:$0xff]   ;;  %v3681_v58 = vld [vmem:[#allocation2 + $0xe8] sm:$0xff] }
 0x306   : > { %10062 = vst [vmem:[#allocation81_spill] sm:$0xff] %v9336_v63  ;;  %v9338_v15 = vpop.f32.mrb[161].mxu0  ;;  %v3676_v12 = vld [vmem:[#allocation2 + $0xc0] sm:$0xff]  ;;  %v3687_v63 = vld [vmem:[#allocation2 + $0x118] sm:$0xff] }
 0x307   : > { %10063 = vst [vmem:[#allocation82_spill] sm:$0xff] %v9338_v15  ;;  %v9340_v60 = vpop.f32.mrb[162].mxu0  ;;  %v3685_v15 = vld [vmem:[#allocation2 + $0x108] sm:$0xff] }
 0x308   : > { %10064 = vst [vmem:[#allocation83_spill] sm:$0xff] %v9340_v60  ;;  %7091 = vmatpush3.bf16.msra.mxu1 %v7950_v61  ;;  %v9342_v24 = vpop.f32.mrb[163].mxu0  ;;  %v7953_v61 = vld [vmem:[%s9814_s4 + $0x1f0] sm:$0xff]   ;;  %v3719_v43 = vpack.c.bf16 %v3685_v15, %v3684_v57  ;;  %v3697_v57 = vld [vmem:[#allocation2 + $0x168] sm:$0xff]  ;;  %v3699_v15 = vld [vmem:[#allocation2 + $0x178] sm:$0xff] }
 0x309   : > { %10065 = vst [vmem:[#allocation84_spill] sm:$0xff] %v9342_v24  ;;  %7092 = vmatprep.subr.bf16.mxu1 %v7951_v41  ;;  %v3682_v24 = vld [vmem:[#allocation2 + $0xf0] sm:$0xff] }
 0x30b   : > { %7045 = vmatmul.mubr.bf16.gmra.mrb[8].mxu1 %v3711_v10  ;;  %v3679_v10 = vld [vmem:[#allocation2 + $0xd8] sm:$0xff] }
 0x30c   : > { %7048 = vmatprep.mubr.bf16.mxu1 %v3712_v30  ;;  %7093 = vmatpush3.bf16.msra.mxu1 %v7951_v41  ;;  %v3677_v41 = vld [vmem:[#allocation2 + $0xc8] sm:$0xff] }
 0x30d   : > { %7094 = vmatprep.subr.bf16.mxu1 %v7952_v0  ;;  %v3715_v35 = vpack.c.bf16 %v3677_v41, %v3676_v12  ;;  %v3689_v12 = vld [vmem:[#allocation2 + $0x128] sm:$0xff] }
 0x310   : > { %7095 = vmatpush3.bf16.msra.mxu1 %v7952_v0  ;;  %v3678_v0 = vld [vmem:[#allocation2 + $0xd0] sm:$0xff] }
 0x311   : > { %7096 = vmatprep.subr.bf16.mxu1 %v7953_v61  ;;  %v3716_v30 = vpack.c.bf16 %v3679_v10, %v3678_v0  ;;  %v3691_v10 = vld [vmem:[#allocation2 + $0x138] sm:$0xff] }
 0x313   : > { %7049 = vmatmul.mubr.bf16.gmra.mrb[12].mxu1 %v3713_v31 }
 0x314   : > { %7052 = vmatprep.mubr.bf16.mxu1 %v9052_v4  ;;  %7097 = vmatpush3.bf16.msra.mxu1 %v7953_v61  ;;  %v3683_v4 = vld [vmem:[#allocation2 + $0xf8] sm:$0xff]  ;;  %v3680_v61 = vld [vmem:[#allocation2 + $0xe0] sm:$0xff] }
 0x315   : > { %7098 = vmatprep.subr.bf16.mxu1 %v7954_v46  ;;  %v3717_v31 = vpack.c.bf16 %v3681_v58, %v3680_v61  ;;  %v3718_v60 = vpack.c.bf16 %v3683_v4, %v3682_v24  ;;  %v3693_v58 = vld [vmem:[#allocation2 + $0x148] sm:$0xff]  ;;  %v3695_v24 = vld [vmem:[#allocation2 + $0x158] sm:$0xff]  ;;  %v3692_v4 = vld [vmem:[#allocation2 + $0x140] sm:$0xff] }
 0x316   : > { %v3694_v61 = vld [vmem:[#allocation2 + $0x150] sm:$0xff] }
 0x318   : > { %7099 = vmatpush3.bf16.msra.mxu1 %v7954_v46  ;;  %v3686_v46 = vld [vmem:[#allocation2 + $0x110] sm:$0xff] }
 0x319   : > { %7148 = vmatprep.subr.bf16.mxu1 %v9360_v45  ;;  %v3720_v41 = vpack.c.bf16 %v3687_v63, %v3686_v46  ;;  %v3698_v46 = vld [vmem:[#allocation2 + $0x170] sm:$0xff] }
 0x31b   : > { %7053 = vmatmul.mubr.bf16.gmra.mrb[16].mxu1 %v3715_v35  ;;  %v3688_v35 = vld [vmem:[#allocation2 + $0x120] sm:$0xff] }
 0x31c   : > { %7056 = vmatprep.mubr.bf16.mxu1 %v3716_v30  ;;  %v3721_v0 = vpack.c.bf16 %v3689_v12, %v3688_v35  ;;  %v3690_v30 = vld [vmem:[#allocation2 + $0x130] sm:$0xff]  ;;  %v3701_v12 = vld [vmem:[#allocation2 + $0x188] sm:$0xff]  ;;  %v3700_v35 = vld [vmem:[#allocation2 + $0x180] sm:$0xff] }
 0x31d   : > { %v3722_v19 = vpack.c.bf16 %v3691_v10, %v3690_v30  ;;  %v3703_v10 = vld [vmem:[#allocation2 + $0x198] sm:$0xff] }
 0x323   : > { %7057 = vmatmul.mubr.bf16.gmra.mrb[20].mxu1 %v3717_v31  ;;  %v3724_v31 = vpack.c.bf16 %v3695_v24, %v3694_v61  ;;  %v3704_v24 = vld [vmem:[#allocation2 + $0x1a0] sm:$0xff]  ;;  %v10067_v61 = vld [vmem:[#allocation3_spill] sm:$0xff] }
 0x324   : > { %7060 = vmatprep.mubr.bf16.mxu1 %v3718_v60  ;;  %v3723_v60 = vpack.c.bf16 %v3693_v58, %v3692_v4  ;;  %v3705_v58 = vld [vmem:[#allocation2 + $0x1a8] sm:$0xff] }
 0x325   : > { %v3729_v4 = vpack.c.bf16 %v3705_v58, %v3704_v24  ;;  %v10079_v58 = vld [vmem:[#allocation19_spill] sm:$0xff] }
 0x32b   : > { %7061 = vmatmul.mubr.bf16.gmra.mrb[24].mxu1 %v3719_v43  ;;  %v3696_v43 = vld [vmem:[#allocation2 + $0x160] sm:$0xff] }
 0x32c   : > { %7064 = vmatprep.mubr.bf16.mxu1 %v3720_v41  ;;  %v3725_v63 = vpack.c.bf16 %v3697_v57, %v3696_v43  ;;  %v3726_v41 = vpack.c.bf16 %v3699_v15, %v3698_v46  ;;  %v7956_v57 = vld [vmem:[%s9814_s4 + $0x208] sm:$0xff]   ;;  %v10069_v15 = vld [vmem:[#allocation9_spill] sm:$0xff] }
 0x32d   : > { %v10070_v43 = vld [vmem:[#allocation7_spill] sm:$0xff]  ;;  %v10072_v46 = vld [vmem:[#allocation13_spill] sm:$0xff] }
 0x333   : > { %7065 = vmatmul.mubr.bf16.gmra.mrb[28].mxu1 %v3721_v0  ;;  %v3702_v0 = vld [vmem:[#allocation2 + $0x190] sm:$0xff] }
 0x334   : > { %7068 = vmatprep.mubr.bf16.mxu1 %v3722_v19  ;;  %v3727_v19 = vpack.c.bf16 %v3701_v12, %v3700_v35  ;;  %v3728_v30 = vpack.c.bf16 %v3703_v10, %v3702_v0  ;;  %v7957_v10 = vld [vmem:[%s9814_s4 + $0x210] sm:$0xff]   ;;  %v7958_v35 = vld [vmem:[%s9814_s4 + $0x218] sm:$0xff]   ;;  %v10076_v0 = vld [vmem:[#allocation15_spill] sm:$0xff] }
 0x33b   : > { %7069 = vmatmul.mubr.bf16.gmra.mrb[32].mxu1 %v3723_v60  ;;  %v10066_v60 = vld [vmem:[#allocation5_spill] sm:$0xff] }
 0x33c   : > { %7072 = vmatprep.mubr.bf16.mxu1 %v3724_v31  ;;  %v10068_v31 = vpack.c.bf16 %v10066_v60, %v10067_v61  ;;  %v7960_v60 = vld [vmem:[%s9814_s4 + $0x228] sm:$0xff]   ;;  %v10081_v61 = vld [vmem:[#allocation24_spill] sm:$0xff] }
 0x343   : > { %7073 = vmatmul.mubr.bf16.gmra.mrb[36].mxu1 %v3725_v63  ;;  %v10071_v63 = vpack.c.bf16 %v10069_v15, %v10070_v43  ;;  %v10084_v15 = vld [vmem:[#allocation29_spill] sm:$0xff]  ;;  %v10085_v43 = vld [vmem:[#allocation27_spill] sm:$0xff] }
 0x344   : > { %7076 = vmatprep.mubr.bf16.mxu1 %v3726_v41  ;;  %v10073_v41 = vld [vmem:[#allocation11_spill] sm:$0xff] }
 0x345   : > { %v10074_v12 = vpack.c.bf16 %v10072_v46, %v10073_v41  ;;  %v7961_v46 = vld [vmem:[%s9814_s4 + $0x230] sm:$0xff]   ;;  %v7962_v41 = vld [vmem:[%s9814_s4 + $0x238] sm:$0xff]  }
 0x34b   : > { %7077 = vmatmul.mubr.bf16.gmra.mrb[40].mxu1 %v3727_v19  ;;  %v10075_v19 = vld [vmem:[#allocation16_spill] sm:$0xff] }
 0x34c   : > { %7080 = vmatprep.mubr.bf16.mxu1 %v3728_v30  ;;  %v10077_v30 = vpack.c.bf16 %v10075_v19, %v10076_v0  ;;  %v10090_v19 = vld [vmem:[#allocation35_spill] sm:$0xff]  ;;  %v10091_v0 = vld [vmem:[#allocation36_spill] sm:$0xff] }
 0x353   : > { %7081 = vmatmul.mubr.bf16.gmra.mrb[44].mxu1 %v3729_v4  ;;  %v7959_v4 = vld [vmem:[%s9814_s4 + $0x220] sm:$0xff]  }
 0x354   : > { %7100 = vmatprep.mubr.bf16.mxu1 %v10068_v31  ;;  %v10082_v31 = vld [vmem:[#allocation23_spill] sm:$0xff] }
 0x35b   : > { %7101 = vmatmul.mubr.bf16.vlgmr.msra.gmra.mrb[0].mxu1 %v10071_v63  ;;  %v10086_v63 = vpack.c.bf16 %v10084_v15, %v10085_v43  ;;  %v4101_v15 = vld [vmem:[#allocation2 + $0x139] sm:$0xff]  ;;  %v4098_v43 = vld [vmem:[#allocation2 + $0x121] sm:$0xff] }
 0x35c   : > { %7149 = vmatpush3.bf16.msra.mxu1 %v9360_v45  ;;  %7104 = vmatprep.mubr.bf16.mxu1 %v10074_v12  ;;  %v10078_v45 = vld [vmem:[#allocation21_spill] sm:$0xff]  ;;  %v10087_v12 = vld [vmem:[#allocation32_spill] sm:$0xff] }
 0x35d   : > { %7150 = vmatprep.subr.bf16.mxu1 %v7956_v57  ;;  %v10080_v24 = vpack.c.bf16 %v10078_v45, %v10079_v58  ;;  %v10093_v45 = vld [vmem:[#allocation39_spill] sm:$0xff]  ;;  %v10094_v58 = vld [vmem:[#allocation40_spill] sm:$0xff] }
 0x360   : > { %7151 = vmatpush3.bf16.msra.mxu1 %v7956_v57  ;;  %v10083_v57 = vpack.c.bf16 %v10081_v61, %v10082_v31  ;;  %v10098_v61 = vpack.c.bf16 %v8778_v6, %v8785_v59  ;;  %v10099_v31 = vpack.c.bf16 %v8807_v39, %v8814_v16  ;;  %v4103_v6 = vld [vmem:[#allocation2 + $0x149] sm:$0xff]  ;;  %v4105_v59 = vld [vmem:[#allocation2 + $0x159] sm:$0xff]  ;;  %v4102_v16 = vld [vmem:[#allocation2 + $0x141] sm:$0xff] }
 0x361   : > { %7152 = vmatprep.subr.bf16.mxu1 %v7957_v10  ;;  %v7965_v39 = vld [vmem:[%s9816_s6 + $0x10] sm:$0xff]  }
 0x363   : > { %7105 = vmatmul.mubr.bf16.gmra.mrb[4].mxu1 %v10077_v30  ;;  %v10092_v30 = vpack.c.bf16 %v10090_v19, %v10091_v0  ;;  %v4108_v0 = vld [vmem:[#allocation2 + $0x171] sm:$0xff] }
 0x364   : > { %7108 = vmatprep.mubr.bf16.mxu1 %v10080_v24  ;;  %7153 = vmatpush3.bf16.msra.mxu1 %v7957_v10  ;;  %v10088_v10 = vld [vmem:[#allocation31_spill] sm:$0xff]  ;;  %v10095_v24 = vpack.c.bf16 %v10093_v45, %v10094_v58  ;;  %v4113_v58 = vld [vmem:[#allocation2 + $0x199] sm:$0xff] }
 0x365   : > { %7154 = vmatprep.subr.bf16.mxu1 %v7958_v35  ;;  %v7968_v45 = vld [vmem:[%s9816_s6 + $0x28] sm:$0xff]  }
 0x368   : > { %7155 = vmatpush3.bf16.msra.mxu1 %v7958_v35  ;;  %v10089_v35 = vpack.c.bf16 %v10087_v12, %v10088_v10  ;;  %v4109_v12 = vld [vmem:[#allocation2 + $0x179] sm:$0xff] }
 0x369   : > { %7156 = vmatprep.subr.bf16.mxu1 %v7959_v4  ;;  %v7967_v10 = vld [vmem:[%s9816_s6 + $0x20] sm:$0xff]  }
 0x36b   : > { %7109 = vmatmul.mubr.bf16.gmra.mrb[8].mxu1 %v10083_v57  ;;  %v10100_v57 = vpack.c.bf16 %v8831_v55, %v8838_v22  ;;  %v4133_v55 = vpack.c.bf16 %v4103_v6, %v4102_v16  ;;  %v4104_v22 = vld [vmem:[#allocation2 + $0x151] sm:$0xff] }
 0x36c   : > { %7112 = vmatprep.mubr.bf16.mxu1 %v10086_v63  ;;  %7157 = vmatpush3.bf16.msra.mxu1 %v7959_v4  ;;  %v10096_v4 = vpack.c.bf16 %v8730_v13, %v8737_v26  ;;  %v4131_v13 = vpack.c.bf16 %v9165_v25, %v4098_v43  ;;  %v4100_v26 = vld [vmem:[#allocation2 + $0x131] sm:$0xff]  ;;  %v4134_v25 = vpack.c.bf16 %v4105_v59, %v4104_v22  ;;  %v10117_v22 = vld [vmem:[#allocation26_spill] sm:$0xff] }
 0x36d   : > { %7158 = vmatprep.subr.bf16.mxu1 %v7960_v60  ;;  %v4132_v63 = vpack.c.bf16 %v4101_v15, %v4100_v26  ;;  %v10102_v15 = vld [vmem:[#allocation6_spill] sm:$0xff]  ;;  %v10103_v43 = vld [vmem:[#allocation4_spill] sm:$0xff] }
 0x36e   : > { %v10105_v26 = vld [vmem:[#allocation10_spill] sm:$0xff]  ;;  %v10115_v16 = vld [vmem:[#allocation20_spill] sm:$0xff] }
 0x370   : > { %7159 = vmatpush3.bf16.msra.mxu1 %v7960_v60  ;;  %v10097_v60 = vpack.c.bf16 %v8754_v29, %v8761_v3  ;;  %v7963_v29 = vld [vmem:[%s9816_s6] sm:$0xff]   ;;  %v7964_v3 = vld [vmem:[%s9816_s6 + $0x8] sm:$0xff]  }
 0x371   : > { %7160 = vmatprep.subr.bf16.mxu1 %v7961_v46  ;;  %7212 = vmatprep.subr.bf16.mxu0 %v7963_v29 }
 0x372   : > { %7213 = vmatpush3.bf16.msra.mxu0 %v7963_v29 }
 0x373   : > { %7113 = vmatmul.mubr.bf16.gmra.mrb[12].mxu1 %v10089_v35  ;;  %7214 = vmatprep.subr.bf16.mxu0 %v7964_v3  ;;  %v4106_v35 = vld [vmem:[#allocation2 + $0x161] sm:$0xff] }
 0x374   : > { %7116 = vmatprep.mubr.bf16.mxu1 %v10092_v30  ;;  %7161 = vmatpush3.bf16.msra.mxu1 %v7961_v46  ;;  %v7966_v46 = vld [vmem:[%s9816_s6 + $0x18] sm:$0xff]   ;;  %v4136_v30 = vpack.c.bf16 %v4109_v12, %v4108_v0  ;;  %v10121_v12 = vld [vmem:[#allocation28_spill] sm:$0xff] }
 0x375   : > { %7162 = vmatprep.subr.bf16.mxu1 %v7962_v41 }
 0x376   : > { %7215 = vmatpush3.bf16.msra.mxu0 %v7964_v3  ;;  %v10109_v3 = vld [vmem:[#allocation12_spill] sm:$0xff] }
 0x377   : > { %7216 = vmatprep.subr.bf16.mxu0 %v7965_v39 }
 0x378   : > { %7163 = vmatpush3.bf16.msra.mxu1 %v7962_v41  ;;  %v4107_v41 = vld [vmem:[#allocation2 + $0x169] sm:$0xff] }
 0x379   : > { %v4135_v19 = vpack.c.bf16 %v4107_v41, %v4106_v35  ;;  %v10120_v41 = vld [vmem:[#allocation30_spill] sm:$0xff] }
 0x37a   : > { %7217 = vmatpush3.bf16.msra.mxu0 %v7965_v39  ;;  %v10114_v39 = vld [vmem:[#allocation22_spill] sm:$0xff] }
 0x37b   : > { %7117 = vmatmul.mubr.bf16.gmra.mrb[16].mxu1 %v10095_v24  ;;  %7218 = vmatprep.subr.bf16.mxu0 %v7966_v46  ;;  %v7969_v24 = vld [vmem:[%s9816_s6 + $0x30] sm:$0xff]   ;;  %v10123_v35 = vld [vmem:[#allocation34_spill] sm:$0xff] }
 0x37c   : > { %7120 = vmatprep.mubr.bf16.mxu1 %v10096_v4  ;;  %v4138_v4 = vpack.c.bf16 %v4113_v58, %v9183_v40  ;;  %v10108_v40 = vld [vmem:[#allocation14_spill] sm:$0xff] }
 0x37d   : > { %v10110_v6 = vpack.c.bf16 %v10108_v40, %v10109_v3  ;;  %v10141_v40 = vld [vmem:[#allocation50_spill] sm:$0xff] }
 0x37e   : > { %7219 = vmatpush3.bf16.msra.mxu0 %v7966_v46  ;;  %v10142_v3 = vpack.c.bf16 %v10141_v40, %v10021_v52  ;;  %v10147_v52 = vpack.c.bf16 %v10043_v50, %v10042_v20 }
 0x37f   : > { %7220 = vmatprep.subr.bf16.mxu0 %v7967_v10 }
 0x382   : > { %7221 = vmatpush3.bf16.msra.mxu0 %v7967_v10  ;;  %v10122_v10 = vpack.c.bf16 %v10120_v41, %v10121_v12 }
 0x383   : > { %7121 = vmatmul.mubr.bf16.gmra.mrb[20].mxu1 %v10097_v60  ;;  %7222 = vmatprep.subr.bf16.mxu0 %v7968_v45  ;;  %v10101_v60 = vpack.c.bf16 %v8997_v34, %v8995_v36  ;;  %v10111_v36 = vld [vmem:[#allocation18_spill] sm:$0xff]  ;;  %v10112_v34 = vld [vmem:[#allocation17_spill] sm:$0xff] }
 0x384   : > { %7124 = vmatprep.mubr.bf16.mxu1 %v10098_v61  ;;  %v4115_v61 = vld [vmem:[#allocation2 + $0x1a9] sm:$0xff]  ;;  %v10113_v59 = vpack.c.bf16 %v10111_v36, %v10112_v34  ;;  %v10144_v36 = vpack.c.bf16 %v10033_v53, %v10028_v37  ;;  %v10145_v34 = vpack.c.bf16 %v10035_v2, %v10034_v56  ;;  %v4523_v37 = vld [vmem:[#allocation2 + $0x19a] sm:$0xff]  ;;  %v10150_v56 = vpack.c.bf16 %v9001_v32, %v8999_v28 }
 0x385   : > { %v4548_v53 = vpack.c.bf16 %v4523_v37, %v9296_v5  ;;  %v4525_v2 = vld [vmem:[#allocation2 + $0x1aa] sm:$0xff]  ;;  %v9532_v28 = vld [vmem:[%s9815_s5] ss:$0 sm:$0xff] }
 0x386   : > { %7223 = vmatpush3.bf16.msra.mxu0 %v7968_v45  ;;  %v10127_v45 = vld [vmem:[#allocation37_spill] sm:$0xff] }
 0x387   : > { %7224 = vmatprep.subr.bf16.mxu0 %v7969_v24 }
 0x38a   : > { %7225 = vmatpush3.bf16.msra.mxu0 %v7969_v24  ;;  %v10129_v24 = vld [vmem:[#allocation42_spill] sm:$0xff] }
 0x38b   : > { %7125 = vmatmul.mubr.bf16.gmra.mrb[24].mxu1 %v10099_v31  ;;  %v4114_v31 = vld [vmem:[#allocation2 + $0x1a1] sm:$0xff] }
 0x38c   : > { %7128 = vmatprep.mubr.bf16.mxu1 %v10100_v57  ;;  %v4139_v57 = vpack.c.bf16 %v4115_v61, %v4114_v31  ;;  %v10132_v61 = vld [vmem:[#allocation44_spill] sm:$0xff]  ;;  %v10133_v31 = vld [vmem:[#allocation43_spill] sm:$0xff] }
 0x393   : > { %7129 = vmatmul.mubr.bf16.gmra.mrb[28].mxu1 %v4131_v13  ;;  %v10104_v13 = vpack.c.bf16 %v10102_v15, %v10103_v43  ;;  %v10135_v15 = vld [vmem:[#allocation46_spill] sm:$0xff]  ;;  %v10136_v43 = vld [vmem:[#allocation45_spill] sm:$0xff] }
 0x394   : > { %7132 = vmatprep.mubr.bf16.mxu1 %v4132_v63  ;;  %v10106_v63 = vld [vmem:[#allocation8_spill] sm:$0xff] }
 0x395   : > { %v10107_v29 = vpack.c.bf16 %v10105_v26, %v10106_v63  ;;  %v10138_v26 = vld [vmem:[#allocation48_spill] sm:$0xff]  ;;  %v10139_v63 = vld [vmem:[#allocation47_spill] sm:$0xff] }
 0x39b   : > { %7133 = vmatmul.mubr.bf16.gmra.mrb[32].mxu1 %v4133_v55  ;;  %v10116_v55 = vpack.c.bf16 %v10114_v39, %v10115_v16 }
 0x39c   : > { %7136 = vmatprep.mubr.bf16.mxu1 %v4134_v25  ;;  %v10118_v25 = vld [vmem:[#allocation25_spill] sm:$0xff] }
 0x39d   : > { %v10119_v46 = vpack.c.bf16 %v10117_v22, %v10118_v25 }
 0x3a3   : > { %7137 = vmatmul.mubr.bf16.gmra.mrb[36].mxu1 %v4135_v19  ;;  %v10124_v19 = vld [vmem:[#allocation33_spill] sm:$0xff] }
 0x3a4   : > { %7140 = vmatprep.mubr.bf16.mxu1 %v4136_v30  ;;  %v10125_v0 = vpack.c.bf16 %v10123_v35, %v10124_v19  ;;  %v10126_v30 = vld [vmem:[#allocation38_spill] sm:$0xff] }
 0x3a5   : > { %v10128_v58 = vpack.c.bf16 %v10126_v30, %v10127_v45 }
 0x3ab   : > { %7141 = vmatmul.mubr.bf16.gmra.mrb[40].mxu1 %v10101_v60 }
 0x3ac   : > { %7144 = vmatprep.mubr.bf16.mxu1 %v4138_v4  ;;  %v10130_v4 = vld [vmem:[#allocation41_spill] sm:$0xff] }
 0x3ad   : > { %v10131_v60 = vpack.c.bf16 %v10129_v24, %v10130_v4  ;;  %v7972_v4 = vld [vmem:[%s9818_s8 + $0x8] sm:$0xff]  }
 0x3b3   : > { %7145 = vmatmul.mubr.bf16.gmra.mrb[44].mxu1 %v4139_v57  ;;  %v10134_v57 = vpack.c.bf16 %v10132_v61, %v10133_v31 }
 0x3b4   : > { %7164 = vmatprep.mubr.bf16.mxu1 %v10104_v13  ;;  %v10137_v13 = vpack.c.bf16 %v10135_v15, %v10136_v43 }
 0x3bb   : > { %7165 = vmatmul.mubr.bf16.vlgmr.msra.gmra.mrb[0].mxu1 %v10107_v29  ;;  %v10140_v29 = vpack.c.bf16 %v10138_v26, %v10139_v63 }
 0x3bc   : > { %7168 = vmatprep.mubr.bf16.mxu1 %v10110_v6  ;;  %v10143_v6 = vpack.c.bf16 %v10027_v18, %v10026_v21  ;;  %v10148_v21 = vpack.c.bf16 %v10049_v33, %v10044_v44  ;;  %v10149_v18 = vpack.c.bf16 %v10050_v48, %v8989_v27  ;;  %v7970_v44 = vld [vmem:[%s9816_s6 + $0x38] sm:$0xff]   ;;  %v7971_v27 = vld [vmem:[%s9818_s8] sm:$0xff]  }
 0x3bd   : > { %7226 = vmatprep.subr.bf16.mxu0 %v7970_v44 }
 0x3be   : > { %7227 = vmatpush3.bf16.msra.mxu0 %v7970_v44 }
 0x3bf   : > { %7276 = vmatprep.subr.bf16.mxu0 %v7971_v27 }
 0x3c3   : > { %7169 = vmatmul.mubr.bf16.gmra.mrb[4].mxu1 %v10113_v59  ;;  %v10146_v59 = vpack.c.bf16 %v10041_v7, %v10036_v8  ;;  %v4524_v8 = vld [vmem:[#allocation2 + $0x1a2] sm:$0xff] }
 0x3c4   : > { %7172 = vmatprep.mubr.bf16.mxu1 %v10116_v55  ;;  %v4549_v50 = vpack.c.bf16 %v4525_v2, %v4524_v8  ;;  %v10151_v8 = vld [vmem:[#allocation55_spill] sm:$0xff] }
 0x3cb   : > { %7173 = vmatmul.mubr.bf16.gmra.mrb[8].mxu1 %v10119_v46 }
 0x3cc   : > { %7176 = vmatprep.mubr.bf16.mxu1 %v10122_v10 }
 0x3d3   : > { %7177 = vmatmul.mubr.bf16.gmra.mrb[12].mxu1 %v10125_v0 }
 0x3d4   : > { %7180 = vmatprep.mubr.bf16.mxu1 %v10128_v58 }
 0x3db   : > { %7181 = vmatmul.mubr.bf16.gmra.mrb[16].mxu1 %v10131_v60 }
 0x3dc   : > { %7184 = vmatprep.mubr.bf16.mxu1 %v10134_v57 }
 0x3e3   : > { %7185 = vmatmul.mubr.bf16.gmra.mrb[20].mxu1 %v10137_v13 }
 0x3e4   : > { %7188 = vmatprep.mubr.bf16.mxu1 %v10140_v29 }
 0x3eb   : > { %7189 = vmatmul.mubr.bf16.gmra.mrb[24].mxu1 %v10142_v3 }
 0x3ec   : > { %7192 = vmatprep.mubr.bf16.mxu1 %v10143_v6 }
 0x3f3   : > { %7193 = vmatmul.mubr.bf16.gmra.mrb[28].mxu1 %v10144_v36 }
 0x3f4   : > { %7196 = vmatprep.mubr.bf16.mxu1 %v10145_v34 }
 0x3fb   : > { %7197 = vmatmul.mubr.bf16.gmra.mrb[32].mxu1 %v10146_v59  ;;  %v7974_v59 = vld [vmem:[%s9818_s8 + $0x18] sm:$0xff]  }
 0x3fc   : > { %7200 = vmatprep.mubr.bf16.mxu1 %v10147_v52 }
 0x403   : > { %7201 = vmatmul.mubr.bf16.gmra.mrb[36].mxu1 %v10148_v21 }
 0x404   : > { %7204 = vmatprep.mubr.bf16.mxu1 %v10149_v18 }
 0x40b   : > { %7205 = vmatmul.mubr.bf16.gmra.mrb[40].mxu1 %v10150_v56 }
 0x40c   : > { %7208 = vmatprep.mubr.bf16.mxu1 %v4548_v53 }
 0x413   : > { %7209 = vmatmul.mubr.bf16.gmra.mrb[44].mxu1 %v4549_v50 }
 0x48e   : > { %v7166_v33 = vpop.f32.mrb[0].mxu1 }
 0x48f   : > { %v7340_v32 = vadd.f32 %v7166_v33, %v9205_v62  ;;  %v4649_v48 = vpop.f32.mrb[1].mxu1 }
 0x490   : > { %v7341_v7 = vadd.f32 %v4649_v48, %v9207_v9  ;;  %v7167_v20 = vpop.f32.mrb[2].mxu1 }
 0x491   : > { %v4897_v5 = vadd.f32 %v7340_v32, %v9532_v28  ;;  %v7342_v39 = vadd.f32 %v7167_v20, %v9209_v38  ;;  %v4652_v16 = vpop.f32.mrb[3].mxu1  ;;  %v10153_v20 = vld [vmem:[#allocation56_spill] sm:$0xff] }
 0x492   : > { %v4895_v55 = vadd.f32 %v7341_v7, %v9532_v28  ;;  %v7343_v22 = vadd.f32 %v4652_v16, %v9211_v54  ;;  %v7976_v16 = vld [vmem:[%s9818_s8 + $0x28] sm:$0xff]  }
 0x493   : > { %v4898_v25 = vadd.f32 %v7342_v39, %v9532_v28  ;;  %v4945_v41 = vmax.f32 %v4897_v5, 0.0 }
 0x494   : > { %v4896_v46 = vadd.f32 %v7343_v22, %v9532_v28  ;;  %v4943_v62 = vmax.f32 %v4895_v55, 0.0  ;;  %v10154_v22 = vld [vmem:[#allocation63_spill] sm:$0xff] }
 0x495   : > { %v4946_v12 = vmax.f32 %v4898_v25, 0.0 }
 0x496   : > { %v4944_v10 = vmax.f32 %v4896_v46, 0.0  ;;  %v7170_v35 = vpop.f32.mrb[4].mxu1 }
 0x497   : > { %v4992_v9 = vpack.c.bf16 %v4946_v12, %v4945_v41  ;;  %v7344_v19 = vadd.f32 %v7170_v35, %v9221_v11  ;;  %v4665_v0 = vpop.f32.mrb[5].mxu1 }
 0x498   : > { %v7345_v38 = vadd.f32 %v4665_v0, %v9223_v1  ;;  %v7171_v30 = vpop.f32.mrb[6].mxu1  ;;  %v4991_v45 = vpack.c.bf16 %v4944_v10, %v4943_v62  ;;  %v7977_v10 = vld [vmem:[%s9818_s8 + $0x30] sm:$0xff]  }
 0x499   : > { %v4901_v58 = vadd.f32 %v7344_v19, %v9532_v28  ;;  %v7346_v54 = vadd.f32 %v7171_v30, %v9225_v42  ;;  %v4668_v24 = vpop.f32.mrb[7].mxu1  ;;  %v7973_v42 = vld [vmem:[%s9818_s8 + $0x10] sm:$0xff]  }
 0x49a   : > { %v4899_v60 = vadd.f32 %v7345_v38, %v9532_v28  ;;  %v7347_v61 = vadd.f32 %v4668_v24, %v9227_v47  ;;  %7228 = vmatprep.mubr.bf16.mxu0 %v4991_v45  ;;  %v10155_v0 = vld [vmem:[#allocation60_spill] sm:$0xff] }
 0x49b   : > { %v4902_v11 = vadd.f32 %v7346_v54, %v9532_v28  ;;  %7229 = vmatmul.mubr.bf16.vlgmr.msra.gmra.mrb[164].mxu0 %v4992_v9  ;;  %v4949_v31 = vmax.f32 %v4901_v58, 0.0  ;;  %v10156_v58 = vld [vmem:[#allocation67_spill] sm:$0xff] }
 0x49c   : > { %v4900_v1 = vadd.f32 %v7347_v61, %v9532_v28  ;;  %7277 = vmatpush3.bf16.msra.mxu0 %v7971_v27  ;;  %v4947_v15 = vmax.f32 %v4899_v60, 0.0  ;;  %v10152_v27 = vld [vmem:[#allocation59_spill] sm:$0xff]  ;;  %v10157_v61 = vld [vmem:[#allocation64_spill] sm:$0xff] }
 0x49d   : > { %v4950_v57 = vmax.f32 %v4902_v11, 0.0  ;;  %7278 = vmatprep.subr.bf16.mxu0 %v7972_v4 }
 0x49e   : > { %v4948_v43 = vmax.f32 %v4900_v1, 0.0  ;;  %v7174_v13 = vpop.f32.mrb[8].mxu1 }
 0x49f   : > { %v7348_v26 = vadd.f32 %v7174_v13, %v9230_v23  ;;  %v4681_v47 = vpop.f32.mrb[9].mxu1  ;;  %v4994_v63 = vpack.c.bf16 %v4950_v57, %v4949_v31  ;;  %v7978_v31 = vld [vmem:[%s9818_s8 + $0x38] sm:$0xff]  }
 0x4a0   : > { %v7349_v29 = vadd.f32 %v4681_v47, %v9232_v17  ;;  %v7175_v40 = vpop.f32.mrb[10].mxu1  ;;  %v4993_v3 = vpack.c.bf16 %v4948_v43, %v4947_v15  ;;  %7279 = vmatpush3.bf16.msra.mxu0 %v7972_v4 }
 0x4a1   : > { %v4905_v6 = vadd.f32 %v7348_v26, %v9532_v28  ;;  %v7350_v36 = vadd.f32 %v7175_v40, %v9234_v49  ;;  %v4684_v34 = vpop.f32.mrb[11].mxu1  ;;  %7280 = vmatprep.subr.bf16.mxu0 %v7973_v42  ;;  %v7975_v49 = vld [vmem:[%s9818_s8 + $0x20] sm:$0xff]  }
 0x4a2   : > { %v4903_v52 = vadd.f32 %v7349_v29, %v9532_v28  ;;  %v7351_v23 = vadd.f32 %v4684_v34, %v9236_v51  ;;  %7232 = vmatprep.mubr.bf16.mxu0 %v4993_v3  ;;  %v10159_v3 = vld [vmem:[#allocation71_spill] sm:$0xff] }
 0x4a3   : > { %v4906_v17 = vadd.f32 %v7350_v36, %v9532_v28  ;;  %7233 = vmatmul.mubr.bf16.gmra.mrb[168].mxu0 %v4994_v63  ;;  %v4953_v18 = vmax.f32 %v4905_v6, 0.0 }
 0x4a4   : > { %v4904_v21 = vadd.f32 %v7351_v23, %v9532_v28  ;;  %7281 = vmatpush3.bf16.msra.mxu0 %v7973_v42  ;;  %v4951_v53 = vmax.f32 %v4903_v52, 0.0  ;;  %v10158_v42 = vld [vmem:[#allocation72_spill] sm:$0xff] }
 0x4a5   : > { %v4954_v37 = vmax.f32 %v4906_v17, 0.0  ;;  %7282 = vmatprep.subr.bf16.mxu0 %v7974_v59 }
 0x4a6   : > { %v4952_v56 = vmax.f32 %v4904_v21, 0.0  ;;  %v7178_v2 = vpop.f32.mrb[12].mxu1 }
 0x4a7   : > { %v7352_v50 = vadd.f32 %v7178_v2, %v10151_v8  ;;  %v4697_v51 = vpop.f32.mrb[13].mxu1  ;;  %v4996_v44 = vpack.c.bf16 %v4954_v37, %v4953_v18  ;;  %v10161_v18 = vld [vmem:[#allocation49_spill] sm:$0xff] }
 0x4a8   : > { %v7353_v33 = vadd.f32 %v4697_v51, %v10152_v27  ;;  %v7179_v32 = vpop.f32.mrb[14].mxu1  ;;  %v4995_v48 = vpack.c.bf16 %v4952_v56, %v4951_v53  ;;  %7283 = vmatpush3.bf16.msra.mxu0 %v7974_v59  ;;  %v10160_v59 = vld [vmem:[#allocation68_spill] sm:$0xff]  ;;  %v10162_v56 = vld [vmem:[#allocation51_spill] sm:$0xff] }
 0x4a9   : > { %v4909_v7 = vadd.f32 %v7352_v50, %v9532_v28  ;;  %v7354_v5 = vadd.f32 %v7179_v32, %v10153_v20  ;;  %v4700_v39 = vpop.f32.mrb[15].mxu1  ;;  %7284 = vmatprep.subr.bf16.mxu0 %v7975_v49 }
 0x4aa   : > { %v4907_v55 = vadd.f32 %v7353_v33, %v9532_v28  ;;  %v7355_v25 = vadd.f32 %v4700_v39, %v10154_v22  ;;  %7236 = vmatprep.mubr.bf16.mxu0 %v4995_v48  ;;  %v10163_v48 = vld [vmem:[#allocation52_spill] sm:$0xff]  ;;  %v10164_v39 = vld [vmem:[#allocation53_spill] sm:$0xff] }
 0x4ab   : > { %v4910_v46 = vadd.f32 %v7354_v5, %v9532_v28  ;;  %7237 = vmatmul.mubr.bf16.gmra.mrb[172].mxu0 %v4996_v44  ;;  %v4957_v12 = vmax.f32 %v4909_v7, 0.0 }
 0x4ac   : > { %v4908_v41 = vadd.f32 %v7355_v25, %v9532_v28  ;;  %7285 = vmatpush3.bf16.msra.mxu0 %v7975_v49  ;;  %v4955_v35 = vmax.f32 %v4907_v55, 0.0 }
 0x4ad   : > { %v4958_v62 = vmax.f32 %v4910_v46, 0.0  ;;  %7286 = vmatprep.subr.bf16.mxu0 %v7976_v16  ;;  %v10165_v46 = vld [vmem:[#allocation54_spill] sm:$0xff] }
 0x4ae   : > { %v4956_v9 = vmax.f32 %v4908_v41, 0.0  ;;  %v7182_v19 = vpop.f32.mrb[16].mxu1 }
 0x4af   : > { %v7356_v38 = vadd.f32 %v7182_v19, %v10155_v0  ;;  %v4713_v30 = vpop.f32.mrb[17].mxu1  ;;  %v4998_v45 = vpack.c.bf16 %v4958_v62, %v4957_v12 }
 0x4b0   : > { %v7357_v54 = vadd.f32 %v4713_v30, %v10156_v58  ;;  %v7183_v24 = vpop.f32.mrb[18].mxu1  ;;  %v4997_v4 = vpack.c.bf16 %v4956_v9, %v4955_v35  ;;  %7287 = vmatpush3.bf16.msra.mxu0 %v7976_v16 }
 0x4b1   : > { %v4913_v60 = vadd.f32 %v7356_v38, %v9532_v28  ;;  %v7358_v11 = vadd.f32 %v7183_v24, %v10157_v61  ;;  %v4716_v1 = vpop.f32.mrb[19].mxu1  ;;  %7288 = vmatprep.subr.bf16.mxu0 %v7977_v10  ;;  %v10168_v61 = vld [vmem:[#allocation62_spill] sm:$0xff] }
 0x4b2   : > { %v4911_v57 = vadd.f32 %v7357_v54, %v9532_v28  ;;  %v7359_v15 = vadd.f32 %v4716_v1, %v10158_v42  ;;  %7240 = vmatprep.mubr.bf16.mxu0 %v4997_v4  ;;  %v10167_v54 = vld [vmem:[#allocation57_spill] sm:$0xff] }
 0x4b3   : > { %v4914_v43 = vadd.f32 %v7358_v11, %v9532_v28  ;;  %7241 = vmatmul.mubr.bf16.gmra.mrb[176].mxu0 %v4998_v45  ;;  %v4961_v26 = vmax.f32 %v4913_v60, 0.0  ;;  %v10169_v42 = vld [vmem:[#allocation61_spill] sm:$0xff] }
 0x4b4   : > { %v4912_v13 = vadd.f32 %v7359_v15, %v9532_v28  ;;  %7289 = vmatpush3.bf16.msra.mxu0 %v7977_v10  ;;  %v4959_v63 = vmax.f32 %v4911_v57, 0.0  ;;  %v10166_v10 = vld [vmem:[#allocation58_spill] sm:$0xff] }
 0x4b5   : > { %v4962_v47 = vmax.f32 %v4914_v43, 0.0  ;;  %7290 = vmatprep.subr.bf16.mxu0 %v7978_v31 }
 0x4b6   : > { %v4960_v29 = vmax.f32 %v4912_v13, 0.0  ;;  %v7186_v40 = vpop.f32.mrb[20].mxu1 }
 0x4b7   : > { %v7360_v6 = vadd.f32 %v7186_v40, %v10159_v3  ;;  %v4729_v36 = vpop.f32.mrb[21].mxu1  ;;  %v5000_v34 = vpack.c.bf16 %v4962_v47, %v4961_v26  ;;  %v10170_v26 = vld [vmem:[#allocation66_spill] sm:$0xff] }
 0x4b8   : > { %v7361_v52 = vadd.f32 %v4729_v36, %v10160_v59  ;;  %v7187_v23 = vpop.f32.mrb[22].mxu1  ;;  %v4999_v17 = vpack.c.bf16 %v4960_v29, %v4959_v63  ;;  %7291 = vmatpush3.bf16.msra.mxu0 %v7978_v31  ;;  %v10171_v59 = vld [vmem:[#allocation65_spill] sm:$0xff] }
 0x4b9   : > { %v4917_v21 = vadd.f32 %v7360_v6, %v9532_v28  ;;  %v7362_v37 = vadd.f32 %v7187_v23, %v10161_v18  ;;  %v4732_v49 = vpop.f32.mrb[23].mxu1 }
 0x4ba   : > { %v4915_v53 = vadd.f32 %v7361_v52, %v9532_v28  ;;  %v7363_v2 = vadd.f32 %v4732_v49, %v10162_v56  ;;  %7244 = vmatprep.mubr.bf16.mxu0 %v4999_v17  ;;  %v10173_v56 = vld [vmem:[#allocation69_spill] sm:$0xff] }
 0x4bb   : > { %v4918_v8 = vadd.f32 %v7362_v37, %v9532_v28  ;;  %7245 = vmatmul.mubr.bf16.gmra.mrb[180].mxu0 %v5000_v34  ;;  %v4965_v51 = vmax.f32 %v4917_v21, 0.0  ;;  %v10172_v21 = vld [vmem:[#allocation70_spill] sm:$0xff] }
 0x4bc   : > { %v4916_v50 = vadd.f32 %v7363_v2, %v9532_v28  ;;  %v4963_v27 = vmax.f32 %v4915_v53, 0.0 }
 0x4bd   : > { %v4966_v44 = vmax.f32 %v4918_v8, 0.0 }
 0x4be   : > { %v4964_v33 = vmax.f32 %v4916_v50, 0.0  ;;  %v7190_v32 = vpop.f32.mrb[24].mxu1 }
 0x4bf   : > { %v7364_v7 = vadd.f32 %v7190_v32, %v10163_v48  ;;  %v4745_v20 = vpop.f32.mrb[25].mxu1  ;;  %v5002_v5 = vpack.c.bf16 %v4966_v44, %v4965_v51  ;;  %v10174_v51 = vld [vmem:[#allocation73_spill] sm:$0xff] }
 0x4c0   : > { %v7365_v16 = vadd.f32 %v4745_v20, %v10164_v39  ;;  %v7191_v55 = vpop.f32.mrb[26].mxu1  ;;  %v5001_v22 = vpack.c.bf16 %v4964_v33, %v4963_v27 }
 0x4c1   : > { %v4921_v25 = vadd.f32 %v7364_v7, %v9532_v28  ;;  %v7366_v41 = vadd.f32 %v7191_v55, %v10165_v46  ;;  %v4748_v12 = vpop.f32.mrb[27].mxu1 }
 0x4c2   : > { %v4919_v62 = vadd.f32 %v7365_v16, %v9532_v28  ;;  %v7367_v35 = vadd.f32 %v4748_v12, %v10166_v10  ;;  %7248 = vmatprep.mubr.bf16.mxu0 %v5001_v22  ;;  %v10175_v22 = vld [vmem:[#allocation74_spill] sm:$0xff] }
 0x4c3   : > { %v4922_v9 = vadd.f32 %v7366_v41, %v9532_v28  ;;  %7249 = vmatmul.mubr.bf16.gmra.mrb[184].mxu0 %v5002_v5  ;;  %v4969_v0 = vmax.f32 %v4921_v25, 0.0 }
 0x4c4   : > { %v4920_v19 = vadd.f32 %v7367_v35, %v9532_v28  ;;  %v4967_v30 = vmax.f32 %v4919_v62, 0.0  ;;  %v10176_v62 = vld [vmem:[#allocation75_spill] sm:$0xff] }
 0x4c5   : > { %v4970_v38 = vmax.f32 %v4922_v9, 0.0 }
 0x4c6   : > { %v4968_v45 = vmax.f32 %v4920_v19, 0.0  ;;  %v7194_v58 = vpop.f32.mrb[28].mxu1  ;;  %v10177_v19 = vld [vmem:[#allocation76_spill] sm:$0xff] }
 0x4c7   : > { %v7368_v24 = vadd.f32 %v7194_v58, %v10167_v54  ;;  %v4761_v4 = vpop.f32.mrb[29].mxu1  ;;  %v5004_v60 = vpack.c.bf16 %v4970_v38, %v4969_v0 }
 0x4c8   : > { %v7369_v11 = vadd.f32 %v4761_v4, %v10168_v61  ;;  %v7195_v1 = vpop.f32.mrb[30].mxu1  ;;  %v5003_v31 = vpack.c.bf16 %v4968_v45, %v4967_v30  ;;  %v10178_v4 = vld [vmem:[#allocation77_spill] sm:$0xff] }
 0x4c9   : > { %v4925_v57 = vadd.f32 %v7368_v24, %v9532_v28  ;;  %v7370_v15 = vadd.f32 %v7195_v1, %v10169_v42  ;;  %v4764_v43 = vpop.f32.mrb[31].mxu1  ;;  %v10179_v1 = vld [vmem:[#allocation78_spill] sm:$0xff] }
 0x4ca   : > { %v4923_v13 = vadd.f32 %v7369_v11, %v9532_v28  ;;  %v7371_v47 = vadd.f32 %v4764_v43, %v10170_v26  ;;  %7252 = vmatprep.mubr.bf16.mxu0 %v5003_v31  ;;  %v10180_v43 = vld [vmem:[#allocation79_spill] sm:$0xff] }
 0x4cb   : > { %v4926_v63 = vadd.f32 %v7370_v15, %v9532_v28  ;;  %7253 = vmatmul.mubr.bf16.gmra.mrb[188].mxu0 %v5004_v60  ;;  %v4973_v40 = vmax.f32 %v4925_v57, 0.0 }
 0x4cc   : > { %v4924_v29 = vadd.f32 %v7371_v47, %v9532_v28  ;;  %v4971_v6 = vmax.f32 %v4923_v13, 0.0 }
 0x4cd   : > { %v4974_v3 = vmax.f32 %v4926_v63, 0.0  ;;  %v10181_v63 = vld [vmem:[#allocation80_spill] sm:$0xff] }
 0x4ce   : > { %v4972_v36 = vmax.f32 %v4924_v29, 0.0  ;;  %v7198_v34 = vpop.f32.mrb[32].mxu1 }
 0x4cf   : > { %v7372_v52 = vadd.f32 %v7198_v34, %v10171_v59  ;;  %v4777_v23 = vpop.f32.mrb[33].mxu1  ;;  %v5006_v17 = vpack.c.bf16 %v4974_v3, %v4973_v40 }
 0x4d0   : > { %v7373_v18 = vadd.f32 %v4777_v23, %v10172_v21  ;;  %v7199_v37 = vpop.f32.mrb[34].mxu1  ;;  %v5005_v49 = vpack.c.bf16 %v4972_v36, %v4971_v6  ;;  %v10182_v23 = vld [vmem:[#allocation81_spill] sm:$0xff] }
 0x4d1   : > { %v4929_v53 = vadd.f32 %v7372_v52, %v9532_v28  ;;  %v7374_v2 = vadd.f32 %v7199_v37, %v10173_v56  ;;  %v4780_v8 = vpop.f32.mrb[35].mxu1  ;;  %v10183_v37 = vld [vmem:[#allocation82_spill] sm:$0xff] }
 0x4d2   : > { %v4927_v50 = vadd.f32 %v7373_v18, %v9532_v28  ;;  %v7375_v44 = vadd.f32 %v4780_v8, %v10174_v51  ;;  %7256 = vmatprep.mubr.bf16.mxu0 %v5005_v49  ;;  %v10184_v8 = vld [vmem:[#allocation83_spill] sm:$0xff] }
 0x4d3   : > { %v4930_v27 = vadd.f32 %v7374_v2, %v9532_v28  ;;  %7257 = vmatmul.mubr.bf16.gmra.mrb[192].mxu0 %v5006_v17  ;;  %v4977_v32 = vmax.f32 %v4929_v53, 0.0 }
 0x4d4   : > { %v4928_v33 = vadd.f32 %v7375_v44, %v9532_v28  ;;  %v4975_v7 = vmax.f32 %v4927_v50, 0.0 }
 0x4d5   : > { %v4978_v48 = vmax.f32 %v4930_v27, 0.0  ;;  %v10185_v27 = vld [vmem:[#allocation84_spill] sm:$0xff] }
 0x4d6   : > { %v4976_v20 = vmax.f32 %v4928_v33, 0.0  ;;  %v7202_v5 = vpop.f32.mrb[36].mxu1 }
 0x4d7   : > { %v7376_v39 = vadd.f32 %v7202_v5, %v9306_v14  ;;  %v4793_v16 = vpop.f32.mrb[37].mxu1  ;;  %v5008_v55 = vpack.c.bf16 %v4978_v48, %v4977_v32  ;;  %v5311_v5 = vld [vmem:[%s8162_s28 + $0x19] sm:$0xff] }
 0x4d8   : > { %v7377_v25 = vadd.f32 %v4793_v16, %v10175_v22  ;;  %v7203_v46 = vpop.f32.mrb[38].mxu1  ;;  %v5007_v41 = vpack.c.bf16 %v4976_v20, %v4975_v7 }
 0x4d9   : > { %v4933_v12 = vadd.f32 %v7376_v39, %v9532_v28  ;;  %v7378_v10 = vadd.f32 %v7203_v46, %v10176_v62  ;;  %v4796_v35 = vpop.f32.mrb[39].mxu1  ;;  %v5312_v39 = vld [vmem:[%s8162_s28 + $0x21] sm:$0xff] }
 0x4da   : > { %v4931_v9 = vadd.f32 %v7377_v25, %v9532_v28  ;;  %v7379_v0 = vadd.f32 %v4796_v35, %v10177_v19  ;;  %7260 = vmatprep.mubr.bf16.mxu0 %v5007_v41  ;;  %v5359_v46 = vpack.c.bf16 %v5312_v39, %v5311_v5  ;;  %v5313_v41 = vld [vmem:[%s8162_s28 + $0x29] sm:$0xff]  ;;  %v5316_v62 = vld [vmem:[%s8162_s28 + $0x41] sm:$0xff]  ;;  %v5318_v19 = vld [vmem:[%s8162_s28 + $0x51] sm:$0xff] }
 0x4db   : > { %v4934_v38 = vadd.f32 %v7378_v10, %v9532_v28  ;;  %7261 = vmatmul.mubr.bf16.gmra.mrb[196].mxu0 %v5008_v55  ;;  %v4981_v30 = vmax.f32 %v4933_v12, 0.0  ;;  %v5315_v12 = vld [vmem:[%s8162_s28 + $0x39] sm:$0xff]  ;;  %v5352_v5 = vld [vmem:[%s8162_s28 + $0x161] sm:$0xff] }
 0x4dc   : > { %v4932_v14 = vadd.f32 %v7379_v0, %v9532_v28  ;;  %v4979_v58 = vmax.f32 %v4931_v9, 0.0  ;;  %v5361_v35 = vpack.c.bf16 %v5316_v62, %v5315_v12  ;;  %v5317_v9 = vld [vmem:[%s8162_s28 + $0x49] sm:$0xff]  ;;  %v5319_v0 = vld [vmem:[%s8162_s28 + $0x59] sm:$0xff]  ;;  %v5358_v62 = vld [vmem:[%s8162_s28 + $0x191] sm:$0xff] }
 0x4dd   : > { %v4982_v45 = vmax.f32 %v4934_v38, 0.0  ;;  %v5320_v38 = vld [vmem:[%s8162_s28 + $0x61] sm:$0xff]  ;;  %v5357_v12 = vld [vmem:[%s8162_s28 + $0x189] sm:$0xff] }
 0x4de   : > { %v4980_v54 = vmax.f32 %v4932_v14, 0.0  ;;  %v7206_v24 = vpop.f32.mrb[40].mxu1  ;;  %v5362_v14 = vpack.c.bf16 %v5318_v19, %v5317_v9  ;;  %v6104_v9 = vld [vmem:[%s9819_s9] ss:$0 sm:$0xff] }
 0x4df   : > { %v7380_v60 = vadd.f32 %v7206_v24, %v10178_v4  ;;  %v4809_v61 = vpop.f32.mrb[41].mxu1  ;;  %v5010_v11 = vpack.c.bf16 %v4982_v45, %v4981_v30  ;;  %v5363_v30 = vpack.c.bf16 %v5320_v38, %v5319_v0  ;;  %v5321_v45 = vld [vmem:[%s8162_s28 + $0x69] sm:$0xff]  ;;  %v5324_v24 = vld [vmem:[%s8162_s28 + $0x81] sm:$0xff] }
 0x4e0   : > { %v7381_v31 = vadd.f32 %v4809_v61, %v10179_v1  ;;  %v7207_v57 = vpop.f32.mrb[42].mxu1  ;;  %v5009_v42 = vpack.c.bf16 %v4980_v54, %v4979_v58  ;;  %v5322_v58 = vld [vmem:[%s8162_s28 + $0x71] sm:$0xff]  ;;  %v5323_v54 = vld [vmem:[%s8162_s28 + $0x79] sm:$0xff]  ;;  %v5325_v61 = vld [vmem:[%s8162_s28 + $0x89] sm:$0xff] }
 0x4e1   : > { %v4937_v15 = vadd.f32 %v7380_v60, %v9532_v28  ;;  %v7382_v13 = vadd.f32 %v7207_v57, %v10180_v43  ;;  %v4812_v26 = vpop.f32.mrb[43].mxu1  ;;  %v5364_v4 = vpack.c.bf16 %v5322_v58, %v5321_v45  ;;  %v5365_v60 = vpack.c.bf16 %v5324_v24, %v5323_v54  ;;  %v5327_v1 = vld [vmem:[%s8162_s28 + $0x99] sm:$0xff]  ;;  %v5330_v43 = vld [vmem:[%s8162_s28 + $0xb1] sm:$0xff] }
 0x4e2   : > { %v4935_v47 = vadd.f32 %v7381_v31, %v9532_v28  ;;  %v7383_v29 = vadd.f32 %v4812_v26, %v10181_v63  ;;  %7264 = vmatprep.mubr.bf16.mxu0 %v5009_v42  ;;  %v5328_v31 = vld [vmem:[%s8162_s28 + $0xa1] sm:$0xff] }
 0x4e3   : > { %v4938_v40 = vadd.f32 %v7382_v13, %v9532_v28  ;;  %7265 = vmatmul.mubr.bf16.gmra.mrb[200].mxu0 %v5010_v11  ;;  %v4985_v6 = vmax.f32 %v4937_v15, 0.0  ;;  %v5326_v11 = vld [vmem:[%s8162_s28 + $0x91] sm:$0xff]  ;;  %v5367_v42 = vpack.c.bf16 %v5328_v31, %v5327_v1  ;;  %v5329_v15 = vld [vmem:[%s8162_s28 + $0xa9] sm:$0xff]  ;;  %v5331_v13 = vld [vmem:[%s8162_s28 + $0xb9] sm:$0xff] }
 0x4e4   : > { %v4936_v3 = vadd.f32 %v7383_v29, %v9532_v28  ;;  %v4983_v34 = vmax.f32 %v4935_v47, 0.0  ;;  %v5366_v57 = vpack.c.bf16 %v5326_v11, %v5325_v61  ;;  %v5332_v26 = vld [vmem:[%s8162_s28 + $0xc1] sm:$0xff]  ;;  %v5368_v47 = vpack.c.bf16 %v5330_v43, %v5329_v15  ;;  %v5333_v29 = vld [vmem:[%s8162_s28 + $0xc9] sm:$0xff] }
 0x4e5   : > { %v4986_v36 = vmax.f32 %v4938_v40, 0.0  ;;  %v5369_v63 = vpack.c.bf16 %v5332_v26, %v5331_v13  ;;  %v5334_v40 = vld [vmem:[%s8162_s28 + $0xd1] sm:$0xff] }
 0x4e6   : > { %v4984_v59 = vmax.f32 %v4936_v3, 0.0  ;;  %v7210_v52 = vpop.f32.mrb[44].mxu1  ;;  %v5335_v3 = vld [vmem:[%s8162_s28 + $0xd9] sm:$0xff] }
 0x4e7   : > { %v7384_v17 = vadd.f32 %v7210_v52, %v10182_v23  ;;  %v4825_v21 = vpop.f32.mrb[45].mxu1  ;;  %v5012_v18 = vpack.c.bf16 %v4986_v36, %v4985_v6  ;;  %v5336_v6 = vld [vmem:[%s8162_s28 + $0xe1] sm:$0xff]  ;;  %v5370_v36 = vpack.c.bf16 %v5334_v40, %v5333_v29  ;;  %v5338_v52 = vld [vmem:[%s8162_s28 + $0xf1] sm:$0xff]  ;;  %v5339_v23 = vld [vmem:[%s8162_s28 + $0xf9] sm:$0xff] }
 0x4e8   : > { %v7385_v49 = vadd.f32 %v4825_v21, %v10183_v37  ;;  %v7211_v53 = vpop.f32.mrb[46].mxu1  ;;  %v5011_v56 = vpack.c.bf16 %v4984_v59, %v4983_v34  ;;  %v5371_v34 = vpack.c.bf16 %v5336_v6, %v5335_v3  ;;  %v5337_v59 = vld [vmem:[%s8162_s28 + $0xe9] sm:$0xff] }
 0x4e9   : > { %v4941_v2 = vadd.f32 %v7384_v17, %v9532_v28  ;;  %v7386_v50 = vadd.f32 %v7211_v53, %v10184_v8  ;;  %v4828_v51 = vpop.f32.mrb[47].mxu1  ;;  %v5340_v17 = vld [vmem:[%s8162_s28 + $0x101] sm:$0xff]  ;;  %v5372_v21 = vpack.c.bf16 %v5338_v52, %v5337_v59  ;;  %v5341_v37 = vld [vmem:[%s8162_s28 + $0x109] sm:$0xff]  ;;  %v5343_v53 = vld [vmem:[%s8162_s28 + $0x119] sm:$0xff] }
 0x4ea   : > { %v4939_v44 = vadd.f32 %v7385_v49, %v9532_v28  ;;  %v7387_v33 = vadd.f32 %v4828_v51, %v10185_v27  ;;  %7268 = vmatprep.mubr.bf16.mxu0 %v5011_v56  ;;  %v5342_v49 = vld [vmem:[%s8162_s28 + $0x111] sm:$0xff]  ;;  %v5344_v56 = vld [vmem:[%s8162_s28 + $0x121] sm:$0xff] }
 0x4eb   : > { %v4942_v32 = vadd.f32 %v7386_v50, %v9532_v28  ;;  %7269 = vmatmul.mubr.bf16.gmra.mrb[204].mxu0 %v5012_v18  ;;  %v4989_v7 = vmax.f32 %v4941_v2, 0.0  ;;  %v5373_v18 = vpack.c.bf16 %v5340_v17, %v5339_v23  ;;  %v5374_v2 = vpack.c.bf16 %v5342_v49, %v5341_v37  ;;  %v5345_v50 = vld [vmem:[%s8162_s28 + $0x129] sm:$0xff]  ;;  %v5346_v51 = vld [vmem:[%s8162_s28 + $0x131] sm:$0xff]  ;;  %v5348_v27 = vld [vmem:[%s8162_s28 + $0x141] sm:$0xff] }
 0x4ec   : > { %v4940_v48 = vadd.f32 %v7387_v33, %v9532_v28  ;;  %v4987_v16 = vmax.f32 %v4939_v44, 0.0  ;;  %v5314_v28 = vld [vmem:[%s8162_s28 + $0x31] sm:$0xff]  ;;  %v5375_v8 = vpack.c.bf16 %v5344_v56, %v5343_v53  ;;  %v5347_v44 = vld [vmem:[%s8162_s28 + $0x139] sm:$0xff]  ;;  %v5376_v33 = vpack.c.bf16 %v5346_v51, %v5345_v50 }
 0x4ed   : > { %v4990_v20 = vmax.f32 %v4942_v32, 0.0  ;;  %v5360_v10 = vpack.c.bf16 %v5314_v28, %v5313_v41  ;;  %v5377_v32 = vpack.c.bf16 %v5348_v27, %v5347_v44 }
 0x4ee   : > { %v4988_v55 = vmax.f32 %v4940_v48, 0.0  ;;  %v5349_v48 = vld [vmem:[%s8162_s28 + $0x149] sm:$0xff] }
 0x4ef   : > { %v5014_v22 = vpack.c.bf16 %v4990_v20, %v4989_v7  ;;  %v5350_v7 = vld [vmem:[%s8162_s28 + $0x151] sm:$0xff]  ;;  %v5351_v20 = vld [vmem:[%s8162_s28 + $0x159] sm:$0xff] }
 0x4f0   : > { %v5013_v25 = vpack.c.bf16 %v4988_v55, %v4987_v16  ;;  %v5378_v39 = vpack.c.bf16 %v5350_v7, %v5349_v48  ;;  %v5379_v16 = vpack.c.bf16 %v5352_v5, %v5351_v20  ;;  %v5353_v55 = vld [vmem:[%s8162_s28 + $0x169] sm:$0xff] }
 0x4f2   : > { %7272 = vmatprep.mubr.bf16.mxu0 %v5013_v25  ;;  %v5355_v25 = vld [vmem:[%s8162_s28 + $0x179] sm:$0xff] }
 0x4f3   : > { %7273 = vmatmul.mubr.bf16.gmra.mrb[208].mxu0 %v5014_v22  ;;  %v5354_v22 = vld [vmem:[%s8162_s28 + $0x171] sm:$0xff] }
 0x4f4   : > { %7292 = vmatprep.mubr.bf16.mxu0 %v5359_v46  ;;  %v5356_v46 = vld [vmem:[%s8162_s28 + $0x181] sm:$0xff]  ;;  %v5380_v41 = vpack.c.bf16 %v5354_v22, %v5353_v55 }
 0x4f5   : > { %v5381_v28 = vpack.c.bf16 %v5356_v46, %v5355_v25 }
 0x4fb   : > { %7293 = vmatmul.mubr.bf16.vlgmr.msra.gmra.mrb[164].mxu0 %v5360_v10  ;;  %v5382_v10 = vpack.c.bf16 %v5358_v62, %v5357_v12 }
 0x4fc   : > { %7296 = vmatprep.mubr.bf16.mxu0 %v5361_v35  ;;  %v6095_v35 = vld [vmem:[%s9817_s7] ss:$0 sm:$0xff] }
 0x4fd   : > { %v9705_v19 = vadd.f32 %v6104_v9, %v6095_v35 }
 0x503   : > { %7297 = vmatmul.mubr.bf16.gmra.mrb[168].mxu0 %v5362_v14 }
 0x504   : > { %7300 = vmatprep.mubr.bf16.mxu0 %v5363_v30 }
 0x50b   : > { %7301 = vmatmul.mubr.bf16.gmra.mrb[172].mxu0 %v5364_v4 }
 0x50c   : > { %7304 = vmatprep.mubr.bf16.mxu0 %v5365_v60 }
 0x513   : > { %7305 = vmatmul.mubr.bf16.gmra.mrb[176].mxu0 %v5366_v57 }
 0x514   : > { %7308 = vmatprep.mubr.bf16.mxu0 %v5367_v42 }
 0x51b   : > { %7309 = vmatmul.mubr.bf16.gmra.mrb[180].mxu0 %v5368_v47 }
 0x51c   : > { %7312 = vmatprep.mubr.bf16.mxu0 %v5369_v63 }
 0x523   : > { %7313 = vmatmul.mubr.bf16.gmra.mrb[184].mxu0 %v5370_v36 }
 0x524   : > { %7316 = vmatprep.mubr.bf16.mxu0 %v5371_v34 }
 0x52b   : > { %7317 = vmatmul.mubr.bf16.gmra.mrb[188].mxu0 %v5372_v21 }
 0x52c   : > { %7320 = vmatprep.mubr.bf16.mxu0 %v5373_v18 }
 0x533   : > { %7321 = vmatmul.mubr.bf16.gmra.mrb[192].mxu0 %v5374_v2 }
 0x534   : > { %7324 = vmatprep.mubr.bf16.mxu0 %v5375_v8 }
 0x53b   : > { %7325 = vmatmul.mubr.bf16.gmra.mrb[196].mxu0 %v5376_v33 }
 0x53c   : > { %7328 = vmatprep.mubr.bf16.mxu0 %v5377_v32 }
 0x543   : > { %7329 = vmatmul.mubr.bf16.gmra.mrb[200].mxu0 %v5378_v39 }
 0x544   : > { %7332 = vmatprep.mubr.bf16.mxu0 %v5379_v16 }
 0x54b   : > { %7333 = vmatmul.mubr.bf16.gmra.mrb[204].mxu0 %v5380_v41 }
 0x54c   : > { %7336 = vmatprep.mubr.bf16.mxu0 %v5381_v28 }
 0x553   : > { %7337 = vmatmul.mubr.bf16.gmra.mrb[208].mxu0 %v5382_v10 }
 0x5ce   : > { %v7294_v0 = vpop.f32.mrb[164].mxu0 }
 0x5cf   : > { %v7388_v38 = vadd.f32 %v7294_v0, %v6095_v35  ;;  %v5488_v14 = vpop.f32.mrb[165].mxu0 }
 0x5d0   : > { %v7390_v30 = vadd.f32 %v6095_v35, %v5488_v14  ;;  %v7295_v45 = vpop.f32.mrb[166].mxu0 }
 0x5d1   : > { %v7389_v58 = vadd.f32 %v7388_v38, %v6104_v9  ;;  %v7393_v54 = vadd.f32 %v9705_v19, %v7295_v45  ;;  %v5491_v24 = vpop.f32.mrb[167].mxu0 }
 0x5d2   : > { %v7391_v4 = vadd.f32 %v7390_v30, %v6104_v9  ;;  %v7395_v60 = vadd.f32 %v9705_v19, %v5491_v24 }
 0x5d3   : > { %v5729_v61 = vmax.f32 %v7389_v58, 0.0  ;;  %v5730_v11 = vmax.f32 %v7393_v54, 0.0 }
 0x5d4   : > { %v5727_v1 = vmax.f32 %v7391_v4, 0.0  ;;  %v5728_v31 = vmax.f32 %v7395_v60, 0.0 }
 0x5d5   : > { %5777 = vst [vmem:[%s9712_s30 + $0x10] sm:$0xff] %v5729_v61  ;;  %5778 = vst [vmem:[%s9712_s30 + $0x18] sm:$0xff] %v5730_v11 }
 0x5d6   : > { %5775 = vst [vmem:[%s9712_s30] sm:$0xff] %v5727_v1  ;;  %5776 = vst [vmem:[%s9712_s30 + $0x8] sm:$0xff] %v5728_v31  ;;  %v7298_v57 = vpop.f32.mrb[168].mxu0 }
 0x5d7   : > { %v7397_v42 = vadd.f32 %v9705_v19, %v7298_v57  ;;  %v5504_v15 = vpop.f32.mrb[169].mxu0 }
 0x5d8   : > { %v7399_v43 = vadd.f32 %v9705_v19, %v5504_v15  ;;  %v7299_v13 = vpop.f32.mrb[170].mxu0 }
 0x5d9   : > { %v5733_v26 = vmax.f32 %v7397_v42, 0.0  ;;  %v7401_v47 = vadd.f32 %v9705_v19, %v7299_v13  ;;  %v5507_v63 = vpop.f32.mrb[171].mxu0 }
 0x5da   : > { %v5731_v29 = vmax.f32 %v7399_v43, 0.0  ;;  %v7403_v40 = vadd.f32 %v9705_v19, %v5507_v63 }
 0x5db   : > { %5781 = vst [vmem:[%s9712_s30 + $0x30] sm:$0xff] %v5733_v26  ;;  %v5734_v3 = vmax.f32 %v7401_v47, 0.0 }
 0x5dc   : > { %5779 = vst [vmem:[%s9712_s30 + $0x20] sm:$0xff] %v5731_v29  ;;  %v5732_v6 = vmax.f32 %v7403_v40, 0.0 }
 0x5dd   : > { %5782 = vst [vmem:[%s9712_s30 + $0x38] sm:$0xff] %v5734_v3 }
 0x5de   : > { %5780 = vst [vmem:[%s9712_s30 + $0x28] sm:$0xff] %v5732_v6  ;;  %v7302_v36 = vpop.f32.mrb[172].mxu0 }
 0x5df   : > { %v7405_v34 = vadd.f32 %v9705_v19, %v7302_v36  ;;  %v5520_v59 = vpop.f32.mrb[173].mxu0 }
 0x5e0   : > { %v7407_v52 = vadd.f32 %v9705_v19, %v5520_v59  ;;  %v7303_v23 = vpop.f32.mrb[174].mxu0 }
 0x5e1   : > { %v5737_v17 = vmax.f32 %v7405_v34, 0.0  ;;  %v7409_v21 = vadd.f32 %v9705_v19, %v7303_v23  ;;  %v5523_v18 = vpop.f32.mrb[175].mxu0 }
 0x5e2   : > { %v5735_v37 = vmax.f32 %v7407_v52, 0.0  ;;  %v7411_v49 = vadd.f32 %v9705_v19, %v5523_v18 }
 0x5e3   : > { %5785 = vst [vmem:[%s9712_s30 + $0x50] sm:$0xff] %v5737_v17  ;;  %v5738_v53 = vmax.f32 %v7409_v21, 0.0 }
 0x5e4   : > { %5783 = vst [vmem:[%s9712_s30 + $0x40] sm:$0xff] %v5735_v37  ;;  %v5736_v56 = vmax.f32 %v7411_v49, 0.0 }
 0x5e5   : > { %5786 = vst [vmem:[%s9712_s30 + $0x58] sm:$0xff] %v5738_v53 }
 0x5e6   : > { %5784 = vst [vmem:[%s9712_s30 + $0x48] sm:$0xff] %v5736_v56  ;;  %v7306_v2 = vpop.f32.mrb[176].mxu0 }
 0x5e7   : > { %v7413_v8 = vadd.f32 %v9705_v19, %v7306_v2  ;;  %v5536_v50 = vpop.f32.mrb[177].mxu0 }
 0x5e8   : > { %v7415_v51 = vadd.f32 %v9705_v19, %v5536_v50  ;;  %v7307_v44 = vpop.f32.mrb[178].mxu0 }
 0x5e9   : > { %v5741_v27 = vmax.f32 %v7413_v8, 0.0  ;;  %v7417_v33 = vadd.f32 %v9705_v19, %v7307_v44  ;;  %v5539_v32 = vpop.f32.mrb[179].mxu0 }
 0x5ea   : > { %v5739_v48 = vmax.f32 %v7415_v51, 0.0  ;;  %v7419_v7 = vadd.f32 %v9705_v19, %v5539_v32 }
 0x5eb   : > { %5789 = vst [vmem:[%s9712_s30 + $0x70] sm:$0xff] %v5741_v27  ;;  %v5742_v20 = vmax.f32 %v7417_v33, 0.0 }
 0x5ec   : > { %5787 = vst [vmem:[%s9712_s30 + $0x60] sm:$0xff] %v5739_v48  ;;  %v5740_v5 = vmax.f32 %v7419_v7, 0.0 }
 0x5ed   : > { %5790 = vst [vmem:[%s9712_s30 + $0x78] sm:$0xff] %v5742_v20 }
 0x5ee   : > { %5788 = vst [vmem:[%s9712_s30 + $0x68] sm:$0xff] %v5740_v5  ;;  %v7310_v39 = vpop.f32.mrb[180].mxu0 }
 0x5ef   : > { %v7421_v16 = vadd.f32 %v9705_v19, %v7310_v39  ;;  %v5552_v55 = vpop.f32.mrb[181].mxu0 }
 0x5f0   : > { %v7423_v22 = vadd.f32 %v9705_v19, %v5552_v55  ;;  %v7311_v25 = vpop.f32.mrb[182].mxu0 }
 0x5f1   : > { %v5745_v46 = vmax.f32 %v7421_v16, 0.0  ;;  %v7425_v41 = vadd.f32 %v9705_v19, %v7311_v25  ;;  %v5555_v28 = vpop.f32.mrb[183].mxu0 }
 0x5f2   : > { %v5743_v12 = vmax.f32 %v7423_v22, 0.0  ;;  %v7427_v62 = vadd.f32 %v9705_v19, %v5555_v28 }
 0x5f3   : > { %5793 = vst [vmem:[%s9712_s30 + $0x90] sm:$0xff] %v5745_v46  ;;  %v5746_v10 = vmax.f32 %v7425_v41, 0.0 }
 0x5f4   : > { %5791 = vst [vmem:[%s9712_s30 + $0x80] sm:$0xff] %v5743_v12  ;;  %v5744_v35 = vmax.f32 %v7427_v62, 0.0 }
 0x5f5   : > { %5794 = vst [vmem:[%s9712_s30 + $0x98] sm:$0xff] %v5746_v10 }
 0x5f6   : > { %5792 = vst [vmem:[%s9712_s30 + $0x88] sm:$0xff] %v5744_v35  ;;  %v7314_v9 = vpop.f32.mrb[184].mxu0 }
 0x5f7   : > { %v7429_v0 = vadd.f32 %v9705_v19, %v7314_v9  ;;  %v5568_v38 = vpop.f32.mrb[185].mxu0 }
 0x5f8   : > { %v7431_v14 = vadd.f32 %v9705_v19, %v5568_v38  ;;  %v7315_v30 = vpop.f32.mrb[186].mxu0 }
 0x5f9   : > { %v5749_v45 = vmax.f32 %v7429_v0, 0.0  ;;  %v7433_v58 = vadd.f32 %v9705_v19, %v7315_v30  ;;  %v5571_v54 = vpop.f32.mrb[187].mxu0 }
 0x5fa   : > { %v5747_v24 = vmax.f32 %v7431_v14, 0.0  ;;  %v7435_v4 = vadd.f32 %v9705_v19, %v5571_v54 }
 0x5fb   : > { %5797 = vst [vmem:[%s9712_s30 + $0xb0] sm:$0xff] %v5749_v45  ;;  %v5750_v60 = vmax.f32 %v7433_v58, 0.0 }
 0x5fc   : > { %5795 = vst [vmem:[%s9712_s30 + $0xa0] sm:$0xff] %v5747_v24  ;;  %v5748_v61 = vmax.f32 %v7435_v4, 0.0 }
 0x5fd   : > { %5798 = vst [vmem:[%s9712_s30 + $0xb8] sm:$0xff] %v5750_v60 }
 0x5fe   : > { %5796 = vst [vmem:[%s9712_s30 + $0xa8] sm:$0xff] %v5748_v61  ;;  %v7318_v11 = vpop.f32.mrb[188].mxu0 }
 0x5ff   : > { %v7437_v1 = vadd.f32 %v9705_v19, %v7318_v11  ;;  %v5584_v31 = vpop.f32.mrb[189].mxu0 }
 0x600   : > { %v7439_v57 = vadd.f32 %v9705_v19, %v5584_v31  ;;  %v7319_v42 = vpop.f32.mrb[190].mxu0 }
 0x601   : > { %v5753_v15 = vmax.f32 %v7437_v1, 0.0  ;;  %v7441_v43 = vadd.f32 %v9705_v19, %v7319_v42  ;;  %v5587_v13 = vpop.f32.mrb[191].mxu0 }
 0x602   : > { %v5751_v26 = vmax.f32 %v7439_v57, 0.0  ;;  %v7443_v47 = vadd.f32 %v9705_v19, %v5587_v13 }
 0x603   : > { %5801 = vst [vmem:[%s9712_s30 + $0xd0] sm:$0xff] %v5753_v15  ;;  %v5754_v63 = vmax.f32 %v7441_v43, 0.0 }
 0x604   : > { %5799 = vst [vmem:[%s9712_s30 + $0xc0] sm:$0xff] %v5751_v26  ;;  %v5752_v29 = vmax.f32 %v7443_v47, 0.0 }
 0x605   : > { %5802 = vst [vmem:[%s9712_s30 + $0xd8] sm:$0xff] %v5754_v63 }
 0x606   : > { %5800 = vst [vmem:[%s9712_s30 + $0xc8] sm:$0xff] %v5752_v29  ;;  %v7322_v40 = vpop.f32.mrb[192].mxu0 }
 0x607   : > { %v7445_v3 = vadd.f32 %v9705_v19, %v7322_v40  ;;  %v5600_v6 = vpop.f32.mrb[193].mxu0 }
 0x608   : > { %v7447_v36 = vadd.f32 %v9705_v19, %v5600_v6  ;;  %v7323_v34 = vpop.f32.mrb[194].mxu0 }
 0x609   : > { %v5757_v59 = vmax.f32 %v7445_v3, 0.0  ;;  %v7449_v52 = vadd.f32 %v9705_v19, %v7323_v34  ;;  %v5603_v23 = vpop.f32.mrb[195].mxu0 }
 0x60a   : > { %v5755_v17 = vmax.f32 %v7447_v36, 0.0  ;;  %v7451_v21 = vadd.f32 %v9705_v19, %v5603_v23 }
 0x60b   : > { %5805 = vst [vmem:[%s9712_s30 + $0xf0] sm:$0xff] %v5757_v59  ;;  %v5758_v18 = vmax.f32 %v7449_v52, 0.0 }
 0x60c   : > { %5803 = vst [vmem:[%s9712_s30 + $0xe0] sm:$0xff] %v5755_v17  ;;  %v5756_v37 = vmax.f32 %v7451_v21, 0.0 }
 0x60d   : > { %5806 = vst [vmem:[%s9712_s30 + $0xf8] sm:$0xff] %v5758_v18 }
 0x60e   : > { %5804 = vst [vmem:[%s9712_s30 + $0xe8] sm:$0xff] %v5756_v37  ;;  %v7326_v49 = vpop.f32.mrb[196].mxu0 }
 0x60f   : > { %v7453_v53 = vadd.f32 %v9705_v19, %v7326_v49  ;;  %v5616_v56 = vpop.f32.mrb[197].mxu0 }
 0x610   : > { %v7455_v2 = vadd.f32 %v9705_v19, %v5616_v56  ;;  %v7327_v8 = vpop.f32.mrb[198].mxu0 }
 0x611   : > { %v5761_v50 = vmax.f32 %v7453_v53, 0.0  ;;  %v7457_v51 = vadd.f32 %v9705_v19, %v7327_v8  ;;  %v5619_v44 = vpop.f32.mrb[199].mxu0 }
 0x612   : > { %v5759_v27 = vmax.f32 %v7455_v2, 0.0  ;;  %v7459_v33 = vadd.f32 %v9705_v19, %v5619_v44 }
 0x613   : > { %5809 = vst [vmem:[%s9712_s30 + $0x110] sm:$0xff] %v5761_v50  ;;  %v5762_v32 = vmax.f32 %v7457_v51, 0.0 }
 0x614   : > { %5807 = vst [vmem:[%s9712_s30 + $0x100] sm:$0xff] %v5759_v27  ;;  %v5760_v48 = vmax.f32 %v7459_v33, 0.0 }
 0x615   : > { %5810 = vst [vmem:[%s9712_s30 + $0x118] sm:$0xff] %v5762_v32 }
 0x616   : > { %5808 = vst [vmem:[%s9712_s30 + $0x108] sm:$0xff] %v5760_v48  ;;  %v7330_v7 = vpop.f32.mrb[200].mxu0 }
 0x617   : > { %v7461_v20 = vadd.f32 %v9705_v19, %v7330_v7  ;;  %v5632_v5 = vpop.f32.mrb[201].mxu0 }
 0x618   : > { %v7463_v39 = vadd.f32 %v9705_v19, %v5632_v5  ;;  %v7331_v16 = vpop.f32.mrb[202].mxu0 }
 0x619   : > { %v5765_v55 = vmax.f32 %v7461_v20, 0.0  ;;  %v7465_v22 = vadd.f32 %v9705_v19, %v7331_v16  ;;  %v5635_v25 = vpop.f32.mrb[203].mxu0 }
 0x61a   : > { %v5763_v46 = vmax.f32 %v7463_v39, 0.0  ;;  %v7467_v41 = vadd.f32 %v9705_v19, %v5635_v25 }
 0x61b   : > { %5813 = vst [vmem:[%s9712_s30 + $0x130] sm:$0xff] %v5765_v55  ;;  %v5766_v28 = vmax.f32 %v7465_v22, 0.0 }
 0x61c   : > { %5811 = vst [vmem:[%s9712_s30 + $0x120] sm:$0xff] %v5763_v46  ;;  %v5764_v12 = vmax.f32 %v7467_v41, 0.0 }
 0x61d   : > { %5814 = vst [vmem:[%s9712_s30 + $0x138] sm:$0xff] %v5766_v28 }
 0x61e   : > { %5812 = vst [vmem:[%s9712_s30 + $0x128] sm:$0xff] %v5764_v12  ;;  %v7334_v62 = vpop.f32.mrb[204].mxu0 }
 0x61f   : > { %v7469_v10 = vadd.f32 %v9705_v19, %v7334_v62  ;;  %v5648_v35 = vpop.f32.mrb[205].mxu0 }
 0x620   : > { %v7471_v9 = vadd.f32 %v9705_v19, %v5648_v35  ;;  %v7335_v0 = vpop.f32.mrb[206].mxu0 }
 0x621   : > { %v5769_v38 = vmax.f32 %v7469_v10, 0.0  ;;  %v7473_v14 = vadd.f32 %v9705_v19, %v7335_v0  ;;  %v5651_v30 = vpop.f32.mrb[207].mxu0 }
 0x622   : > { %v5767_v45 = vmax.f32 %v7471_v9, 0.0  ;;  %v7475_v58 = vadd.f32 %v9705_v19, %v5651_v30 }
 0x623   : > { %5817 = vst [vmem:[%s9712_s30 + $0x150] sm:$0xff] %v5769_v38  ;;  %v5770_v54 = vmax.f32 %v7473_v14, 0.0 }
 0x624   : > { %5815 = vst [vmem:[%s9712_s30 + $0x140] sm:$0xff] %v5767_v45  ;;  %v5768_v24 = vmax.f32 %v7475_v58, 0.0 }
 0x625   : > { %5818 = vst [vmem:[%s9712_s30 + $0x158] sm:$0xff] %v5770_v54 }
 0x626   : > { %5816 = vst [vmem:[%s9712_s30 + $0x148] sm:$0xff] %v5768_v24  ;;  %v7338_v4 = vpop.f32.mrb[208].mxu0 }
 0x627   : > { %v7477_v60 = vadd.f32 %v9705_v19, %v7338_v4  ;;  %v5664_v61 = vpop.f32.mrb[209].mxu0 }
 0x628   : > { %v7479_v11 = vadd.f32 %v9705_v19, %v5664_v61  ;;  %v7339_v1 = vpop.f32.mrb[210].mxu0 }
 0x629   : > { %v5773_v31 = vmax.f32 %v7477_v60, 0.0  ;;  %v7481_v57 = vadd.f32 %v9705_v19, %v7339_v1  ;;  %v5667_v42 = vpop.f32.mrb[211].mxu0 }
 0x62a   : > { %v5771_v15 = vmax.f32 %v7479_v11, 0.0  ;;  %v7483_v43 = vadd.f32 %v9705_v19, %v5667_v42 }
 0x62b   : > { %5821 = vst [vmem:[%s9712_s30 + $0x170] sm:$0xff] %v5773_v31  ;;  %v5774_v13 = vmax.f32 %v7481_v57, 0.0 }
 0x62c   : > { %5819 = vst [vmem:[%s9712_s30 + $0x160] sm:$0xff] %v5771_v15  ;;  %v5772_v26 = vmax.f32 %v7483_v43, 0.0 }
 0x62d   : > { %5822 = vst [vmem:[%s9712_s30 + $0x178] sm:$0xff] %v5774_v13 }
 0x62e   : > { %5820 = vst [vmem:[%s9712_s30 + $0x168] sm:$0xff] %v5772_v26 }
 0x62f PF: > { %s20_s13 = sadd.s32 1, %s8034_s13  }
 0x630   : > { %p17_p4 = scmp.ge.s32.totalorder %s20_s13, 4  }
 0x632   :  { %19 = sbr.rel (!%p17_p4) target bundleno = 1 (0x1), region = 98 }

</bundles_post_ra>
